<compile_context>
chip_gen: v5e
topology: v5e:2x2
jax: 0.10.0
libtpu: 0.0.40
codegen_flags: <defaults>
</compile_context>

<pallas_src>
import functools

import jax
import jax.numpy as jnp
from jax.experimental import pallas as pl
from jax.experimental.pallas import tpu as pltpu


# ---------------------------------------------------------------------------
# Fully fused bottleneck kernel (one batch element per grid step)
# ---------------------------------------------------------------------------
def _bottleneck_kernel(x_ref, xsc_ref, w0_ref, b0_ref, w1_ref, b1_ref,
                       w2_ref, b2_ref, *rest, stride, has_sc_conv):
    if has_sc_conv:
        wsc_ref, bsc_ref, o_ref, t_ref = rest
    else:
        o_ref, t_ref = rest

    sh, sw = stride
    _, H, W, Cin = x_ref.shape
    Cm = w0_ref.shape[1]              # mid channels (out_c)
    _, Ho, Wo, Co4 = o_ref.shape      # out channels (4 * out_c)
    Csc = xsc_ref.shape[3]

    # --- conv0: 1x1 (BN scale folded into w0) + bias + ReLU, f32 accum -----
    x2 = x_ref[0].reshape(H * W, Cin).astype(jnp.bfloat16)
    t = jnp.dot(x2, w0_ref[...], preferred_element_type=jnp.float32)
    t = jnp.maximum(t + b0_ref[...], 0.0)

    # Zero-padded (padding=1) conv0 output lives only in VMEM scratch.
    t_ref[...] = jnp.zeros_like(t_ref)
    t_ref[1:H + 1, 1:W + 1, :] = t.reshape(H, W, Cm)

    # --- conv1: 3x3/stride as 9 shifted (Ho*Wo, Cm) @ (Cm, Cm) MXU dots ----
    acc = jnp.broadcast_to(b1_ref[...], (Ho * Wo, Cm)).astype(jnp.float32)
    for kh in range(3):
        for kw in range(3):
            if sh == 1 and sw == 1:
                p = t_ref[kh:kh + Ho, kw:kw + Wo, :]
            else:
                p = t_ref[pl.ds(kh, Ho, sh), pl.ds(kw, Wo, sw), :]
            acc = acc + jnp.dot(
                p.reshape(Ho * Wo, Cm).astype(jnp.bfloat16),
                w1_ref[kh * 3 + kw],
                preferred_element_type=jnp.float32)
    y1 = jnp.maximum(acc, 0.0).astype(jnp.bfloat16)

    # --- conv2: 1x1 to 4*out_c (no activation) ------------------------------
    y2 = jnp.dot(y1, w2_ref[...], preferred_element_type=jnp.float32)
    y2 = y2 + b2_ref[...]

    # --- shortcut: 1x1 conv (pre-pooled / pre-strided input) or identity ----
    xsc2 = xsc_ref[0].reshape(Ho * Wo, Csc)
    if has_sc_conv:
        sc = jnp.dot(xsc2.astype(jnp.bfloat16), wsc_ref[...],
                     preferred_element_type=jnp.float32) + bsc_ref[...]
    else:
        sc = xsc2.astype(jnp.float32)

    out = jnp.maximum(y2 + sc, 0.0)
    o_ref[...] = out.reshape(1, Ho, Wo, Co4).astype(o_ref.dtype)


def bottleneck_fused(x_nhwc, xsc_nhwc, kp, *, stride, has_sc_conv, out_dtype):
    """Whole bottleneck block in one pallas_call (grid over batch)."""
    N, H, W, Cin = x_nhwc.shape
    Cm = kp["w0"].shape[1]
    Co4 = kp["w2"].shape[1]
    sh, sw = stride
    Ho = (H + 2 - 3) // sh + 1
    Wo = (W + 2 - 3) // sw + 1
    Csc = xsc_nhwc.shape[-1]
    assert xsc_nhwc.shape[1] == Ho and xsc_nhwc.shape[2] == Wo, xsc_nhwc.shape

    in_specs = [
        pl.BlockSpec((1, H, W, Cin), lambda n: (n, 0, 0, 0)),
        pl.BlockSpec((1, Ho, Wo, Csc), lambda n: (n, 0, 0, 0)),
        pl.BlockSpec((Cin, Cm), lambda n: (0, 0)),
        pl.BlockSpec((1, Cm), lambda n: (0, 0)),
        pl.BlockSpec((9, Cm, Cm), lambda n: (0, 0, 0)),
        pl.BlockSpec((1, Cm), lambda n: (0, 0)),
        pl.BlockSpec((Cm, Co4), lambda n: (0, 0)),
        pl.BlockSpec((1, Co4), lambda n: (0, 0)),
    ]
    args = [x_nhwc, xsc_nhwc, kp["w0"], kp["b0"], kp["w1"], kp["b1"],
            kp["w2"], kp["b2"]]
    if has_sc_conv:
        in_specs += [pl.BlockSpec((Csc, Co4), lambda n: (0, 0)),
                     pl.BlockSpec((1, Co4), lambda n: (0, 0))]
        args += [kp["wsc"], kp["bsc"]]

    flops = 2 * N * (H * W * Cin * Cm
                     + Ho * Wo * 9 * Cm * Cm
                     + Ho * Wo * Cm * Co4)
    if has_sc_conv:
        flops += 2 * N * Ho * Wo * Csc * Co4
    ob = jnp.dtype(out_dtype).itemsize
    bytes_accessed = (sum(int(a.size) * a.dtype.itemsize for a in args)
                      + N * Ho * Wo * Co4 * ob)

    return pl.pallas_call(
        functools.partial(_bottleneck_kernel, stride=stride,
                          has_sc_conv=has_sc_conv),
        out_shape=jax.ShapeDtypeStruct((N, Ho, Wo, Co4), out_dtype),
        grid_spec=pltpu.PrefetchScalarGridSpec(
            num_scalar_prefetch=0,
            grid=(N,),
            in_specs=in_specs,
            out_specs=pl.BlockSpec((1, Ho, Wo, Co4), lambda n: (n, 0, 0, 0)),
            scratch_shapes=[pltpu.VMEM((H + 2, W + 2, Cm), jnp.float32)],
        ),
        compiler_params=pltpu.CompilerParams(
            dimension_semantics=("parallel",),
            vmem_limit_bytes=64 * 1024 * 1024),
        cost_estimate=pl.CostEstimate(flops=flops, transcendentals=0,
                                      bytes_accessed=bytes_accessed),
    )(*args)


# ---------------------------------------------------------------------------
# Glue (pooling / strided shortcut input prep / parameter folding) -- plain JAX
# ---------------------------------------------------------------------------
def fold_bn(gamma, beta, mean, var, eps=1e-5):
    scale = gamma / jnp.sqrt(var + eps)
    bias = beta - mean * scale
    return scale, bias


def avg_pool_ceil(x, k):
    """AvgPool2d(kernel=k, stride=k, padding=0, ceil_mode=True) in NHWC."""
    kh, kw = k
    if kh == 1 and kw == 1:
        return x
    # TODO(synk): partial-window divisor matches PyTorch only for padding=0.
    N, H, W, C = x.shape
    pad = [(0, 0), (0, (-H) % kh), (0, (-W) % kw), (0, 0)]
    sums = jax.lax.reduce_window(x, 0.0, jax.lax.add,
                                 (1, kh, kw, 1), (1, kh, kw, 1), pad)
    ones = jnp.ones((1, H, W, 1), x.dtype)
    cnt = jax.lax.reduce_window(ones, 0.0, jax.lax.add,
                                (1, kh, kw, 1), (1, kh, kw, 1), pad)
    return sums / cnt


def bottleneck_forward(x_nchw, kp, stride, if_first, in_c, out_c):
    out_c4 = 4 * out_c
    sh, sw = stride
    # TODO(synk): NCHW<->NHWC boundary transposes kept to match the PyTorch
    # module layout; feed NHWC end-to-end to drop these two HBM passes.
    x = jnp.transpose(x_nchw, (0, 2, 3, 1))  # NCHW -> NHWC

    has_sc_conv = (in_c != out_c4) or (sh != 1) or if_first
    if has_sc_conv:
        if ((in_c != out_c4) or (sh != 1)) and not if_first:
            xsc = avg_pool_ceil(x, stride)            # pool + 1x1 conv (stride 1)
        else:
            xsc = x[:, ::sh, ::sw, :]                 # strided 1x1 conv
    else:
        xsc = x                                       # identity shortcut

    out = bottleneck_fused(x, xsc, kp, stride=stride,
                           has_sc_conv=has_sc_conv, out_dtype=x_nchw.dtype)
    return jnp.transpose(out, (0, 3, 1, 2))           # back to NCHW


# ---------------------------------------------------------------------------
# Deterministic parameter init (synthetic weights; eval-mode BN stats)
# ---------------------------------------------------------------------------
def init_params(key, in_c, out_c):
    out_c4 = 4 * out_c
    ks = jax.random.split(key, 8)

    def bn(k, c):
        k1, k2, k3, k4 = jax.random.split(k, 4)
        gamma = jax.random.uniform(k1, (c,), jnp.float32, 0.5, 1.5)
        beta = 0.1 * jax.random.normal(k2, (c,), jnp.float32)
        mean = 0.1 * jax.random.normal(k3, (c,), jnp.float32)
        var = jax.random.uniform(k4, (c,), jnp.float32, 0.5, 1.5)
        return fold_bn(gamma, beta, mean, var)

    p = {}
    p["w0"] = 0.3 * jax.random.normal(ks[0], (in_c, out_c), jnp.float32)
    p["s0"], p["b0"] = bn(ks[1], out_c)
    # 3x3 weight stored as (9, Cin, Cout), tap-major (kh, kw)
    p["w1"] = 0.2 * jax.random.normal(ks[2], (9, out_c, out_c), jnp.float32)
    p["s1"], p["b1"] = bn(ks[3], out_c)
    p["w2"] = 0.3 * jax.random.normal(ks[4], (out_c, out_c4), jnp.float32)
    p["s2"], p["b2"] = bn(ks[5], out_c4)
    p["wsc"] = 0.3 * jax.random.normal(ks[6], (in_c, out_c4), jnp.float32)
    p["ssc"], p["bsc"] = bn(ks[7], out_c4)
    return p


def prepare_kernel_params(p):
    """Fold BN scale into the conv weights; cast weights to bf16 once."""
    return {
        "w0": (p["w0"] * p["s0"][None, :]).astype(jnp.bfloat16),
        "b0": p["b0"].reshape(1, -1).astype(jnp.float32),
        "w1": (p["w1"] * p["s1"][None, None, :]).astype(jnp.bfloat16),
        "b1": p["b1"].reshape(1, -1).astype(jnp.float32),
        "w2": (p["w2"] * p["s2"][None, :]).astype(jnp.bfloat16),
        "b2": p["b2"].reshape(1, -1).astype(jnp.float32),
        "wsc": (p["wsc"] * p["ssc"][None, :]).astype(jnp.bfloat16),
        "bsc": p["bsc"].reshape(1, -1).astype(jnp.float32),
    }


# ---------------------------------------------------------------------------
# Pure-JAX reference (independent path via lax.conv) for a sanity check
# ---------------------------------------------------------------------------
def reference_forward(x_nchw, p, stride, if_first, in_c, out_c):
    out_c4 = 4 * out_c
    x = jnp.transpose(x_nchw, (0, 2, 3, 1))

    def conv_bn(x, w4d, s, pad, scale, bias, relu):
        y = jax.lax.conv_general_dilated(
            x, w4d, (s[0], s[1]), [(pad, pad), (pad, pad)],
            dimension_numbers=("NHWC", "HWIO", "NHWC"),
            precision=jax.lax.Precision.HIGHEST)
        y = y * scale + bias
        return jnp.maximum(y, 0.0) if relu else y

    y = conv_bn(x, p["w0"].reshape(1, 1, in_c, out_c), (1, 1), 0,
                p["s0"], p["b0"], True)
    y = conv_bn(y, p["w1"].reshape(3, 3, out_c, out_c), stride, 1,
                p["s1"], p["b1"], True)
    y = conv_bn(y, p["w2"].reshape(1, 1, out_c, out_c4), (1, 1), 0,
                p["s2"], p["b2"], False)

    if (in_c != out_c4) or (stride[0] != 1) or if_first:
        if ((in_c != out_c4) or (stride[0] != 1)) and not if_first:
            xs = avg_pool_ceil(x, stride)
            sc = conv_bn(xs, p["wsc"].reshape(1, 1, in_c, out_c4), (1, 1), 0,
                         p["ssc"], p["bsc"], False)
        else:
            sc = conv_bn(x, p["wsc"].reshape(1, 1, in_c, out_c4), stride, 0,
                         p["ssc"], p["bsc"], False)
    else:
        sc = x

    out = jnp.maximum(y + sc, 0.0)
    return jnp.transpose(out, (0, 3, 1, 2))


# ---------------------------------------------------------------------------
if __name__ == "__main__":
    key = jax.random.PRNGKey(0)
    k_x, k_p = jax.random.split(key)

    # BottleneckBlock(in_channels=4, out_channels=4, stride=(1, 1), if_first=True)
    in_c, out_c = 4, 4
    stride = (1, 1)
    if_first = True

    x = jax.random.normal(k_x, (2, in_c, 16, 16), jnp.float32)  # NCHW, like PyTorch
    params = init_params(k_p, in_c, out_c)
    kparams = prepare_kernel_params(params)

    fwd = jax.jit(lambda xx, pp: bottleneck_forward(xx, pp, stride, if_first,
                                                    in_c, out_c))
    out = jax.block_until_ready(fwd(x, kparams))

    ref = jax.block_until_ready(
        reference_forward(x, params, stride, if_first, in_c, out_c))

    assert out.shape == (2, 4 * out_c, 16, 16), out.shape
    err = float(jnp.max(jnp.abs(out - ref)))
    assert jnp.allclose(out, ref, rtol=2e-2, atol=2e-2), err

    print("KERNEL_OK")
</pallas_src>

<mosaic_0001>
module attributes {stable_mosaic.version = 11 : i64} {
  func.func @_bottleneck_kernel(%arg0: i32, %arg1: memref<1x16x16x4xf32, #tpu.memory_space<vmem>>, %arg2: memref<1x16x16x4xf32, #tpu.memory_space<vmem>>, %arg3: memref<4x4xbf16, #tpu.memory_space<vmem>>, %arg4: memref<1x4xf32, #tpu.memory_space<vmem>>, %arg5: memref<9x4x4xbf16, #tpu.memory_space<vmem>>, %arg6: memref<1x4xf32, #tpu.memory_space<vmem>>, %arg7: memref<4x16xbf16, #tpu.memory_space<vmem>>, %arg8: memref<1x16xf32, #tpu.memory_space<vmem>>, %arg9: memref<4x16xbf16, #tpu.memory_space<vmem>>, %arg10: memref<1x16xf32, #tpu.memory_space<vmem>>, %arg11: memref<1x16x16x16xf32, #tpu.memory_space<vmem>>, %arg12: memref<18x18x4xf32, #tpu.memory_space<vmem>>) attributes {dimension_semantics = [#tpu.dimension_semantics<parallel>], iteration_bounds = array<i64: 2>, scalar_prefetch = 0 : i64, scratch_operands = 1 : i64, tpu.core_type = #tpu.core_type<tc>, window_params = [{transform_indices = @transform_0, window_bounds = array<i64: 1, 16, 16, 4>}, {transform_indices = @transform_1, window_bounds = array<i64: 1, 16, 16, 4>}, {pipeline_mode = #tpu.pipeline_mode<synchronous>, transform_indices = @transform_2, window_bounds = array<i64: 4, 4>}, {pipeline_mode = #tpu.pipeline_mode<synchronous>, transform_indices = @transform_3, window_bounds = array<i64: 1, 4>}, {pipeline_mode = #tpu.pipeline_mode<synchronous>, transform_indices = @transform_4, window_bounds = array<i64: 9, 4, 4>}, {pipeline_mode = #tpu.pipeline_mode<synchronous>, transform_indices = @transform_5, window_bounds = array<i64: 1, 4>}, {pipeline_mode = #tpu.pipeline_mode<synchronous>, transform_indices = @transform_6, window_bounds = array<i64: 4, 16>}, {pipeline_mode = #tpu.pipeline_mode<synchronous>, transform_indices = @transform_7, window_bounds = array<i64: 1, 16>}, {pipeline_mode = #tpu.pipeline_mode<synchronous>, transform_indices = @transform_8, window_bounds = array<i64: 4, 16>}, {pipeline_mode = #tpu.pipeline_mode<synchronous>, transform_indices = @transform_9, window_bounds = array<i64: 1, 16>}, {transform_indices = @transform_10, window_bounds = array<i64: 1, 16, 16, 16>}]} {
    %c0 = arith.constant 0 : index
    %c0_0 = arith.constant 0 : index
    %c0_1 = arith.constant 0 : index
    %c0_2 = arith.constant 0 : index
    %0 = vector.load %arg1[%c0, %c0_0, %c0_1, %c0_2] : memref<1x16x16x4xf32, #tpu.memory_space<vmem>>, vector<1x16x16x4xf32>
    %1 = vector.shape_cast %0 : vector<1x16x16x4xf32> to vector<16x16x4xf32>
    %2 = vector.shape_cast %1 : vector<16x16x4xf32> to vector<256x4xf32>
    %3 = arith.truncf %2 : vector<256x4xf32> to vector<256x4xbf16>
    %c0_3 = arith.constant 0 : index
    %c0_4 = arith.constant 0 : index
    %4 = vector.load %arg3[%c0_3, %c0_4] : memref<4x4xbf16, #tpu.memory_space<vmem>>, vector<4x4xbf16>
    %cst = arith.constant dense<0.000000e+00> : vector<256x4xf32>
    %5 = tpu.matmul %3, %4, %cst {dimension_numbers = #tpu.dot_dimension_numbers<[1], [0], [0], [1], [0, 0, 1, 1], [], []>} : vector<256x4xbf16>, vector<4x4xbf16>, vector<256x4xf32> -> vector<256x4xf32>
    %c0_5 = arith.constant 0 : index
    %c0_6 = arith.constant 0 : index
    %6 = vector.load %arg4[%c0_5, %c0_6] : memref<1x4xf32, #tpu.memory_space<vmem>>, vector<1x4xf32>
    %7 = vector.broadcast %6 : vector<1x4xf32> to vector<256x4xf32>
    %8 = arith.addf %5, %7 : vector<256x4xf32>
    %cst_7 = arith.constant 0.000000e+00 : f32
    %9 = vector.broadcast %cst_7 : f32 to vector<256x4xf32>
    %10 = arith.maximumf %8, %9 : vector<256x4xf32>
    %cst_8 = arith.constant 0.000000e+00 : f32
    %11 = vector.broadcast %cst_8 : f32 to vector<18x18x4xf32>
    %c0_9 = arith.constant 0 : index
    %c0_10 = arith.constant 0 : index
    %c0_11 = arith.constant 0 : index
    %12 = vector.load %arg12[%c0_9, %c0_10, %c0_11] : memref<18x18x4xf32, #tpu.memory_space<vmem>>, vector<18x18x4xf32>
    tpu.vector_store %arg12[%c0_9, %c0_10, %c0_11], %11 {strides = array<i32>} : memref<18x18x4xf32, #tpu.memory_space<vmem>>, vector<18x18x4xf32>,
    %13 = vector.shape_cast %10 : vector<256x4xf32> to vector<16x16x4xf32>
    %c1 = arith.constant 1 : index
    %c1_12 = arith.constant 1 : index
    %c0_13 = arith.constant 0 : index
    %14 = vector.load %arg12[%c1, %c1_12, %c0_13] : memref<18x18x4xf32, #tpu.memory_space<vmem>>, vector<16x16x4xf32>
    tpu.vector_store %arg12[%c1, %c1_12, %c0_13], %13 {strides = array<i32>} : memref<18x18x4xf32, #tpu.memory_space<vmem>>, vector<16x16x4xf32>,
    %c0_14 = arith.constant 0 : index
    %c0_15 = arith.constant 0 : index
    %15 = vector.load %arg6[%c0_14, %c0_15] : memref<1x4xf32, #tpu.memory_space<vmem>>, vector<1x4xf32>
    %16 = vector.shape_cast %15 : vector<1x4xf32> to vector<1x4xf32>
    %17 = vector.broadcast %16 : vector<1x4xf32> to vector<256x4xf32>
    %c0_16 = arith.constant 0 : index
    %c0_17 = arith.constant 0 : index
    %c0_18 = arith.constant 0 : index
    %18 = vector.load %arg12[%c0_16, %c0_17, %c0_18] : memref<18x18x4xf32, #tpu.memory_space<vmem>>, vector<16x16x4xf32>
    %19 = vector.shape_cast %18 : vector<16x16x4xf32> to vector<256x4xf32>
    %20 = arith.truncf %19 : vector<256x4xf32> to vector<256x4xbf16>
    %c0_19 = arith.constant 0 : index
    %c0_20 = arith.constant 0 : index
    %c0_21 = arith.constant 0 : index
    %21 = vector.load %arg5[%c0_19, %c0_20, %c0_21] : memref<9x4x4xbf16, #tpu.memory_space<vmem>>, vector<1x4x4xbf16>
    %22 = vector.shape_cast %21 : vector<1x4x4xbf16> to vector<4x4xbf16>
    %cst_22 = arith.constant dense<0.000000e+00> : vector<256x4xf32>
    %23 = tpu.matmul %20, %22, %cst_22 {dimension_numbers = #tpu.dot_dimension_numbers<[1], [0], [0], [1], [0, 0, 1, 1], [], []>} : vector<256x4xbf16>, vector<4x4xbf16>, vector<256x4xf32> -> vector<256x4xf32>
    %24 = arith.addf %17, %23 : vector<256x4xf32>
    %c0_23 = arith.constant 0 : index
    %c1_24 = arith.constant 1 : index
    %c0_25 = arith.constant 0 : index
    %25 = vector.load %arg12[%c0_23, %c1_24, %c0_25] : memref<18x18x4xf32, #tpu.memory_space<vmem>>, vector<16x16x4xf32>
    %26 = vector.shape_cast %25 : vector<16x16x4xf32> to vector<256x4xf32>
    %27 = arith.truncf %26 : vector<256x4xf32> to vector<256x4xbf16>
    %c1_26 = arith.constant 1 : index
    %c0_27 = arith.constant 0 : index
    %c0_28 = arith.constant 0 : index
    %28 = vector.load %arg5[%c1_26, %c0_27, %c0_28] : memref<9x4x4xbf16, #tpu.memory_space<vmem>>, vector<1x4x4xbf16>
    %29 = vector.shape_cast %28 : vector<1x4x4xbf16> to vector<4x4xbf16>
    %cst_29 = arith.constant dense<0.000000e+00> : vector<256x4xf32>
    %30 = tpu.matmul %27, %29, %cst_29 {dimension_numbers = #tpu.dot_dimension_numbers<[1], [0], [0], [1], [0, 0, 1, 1], [], []>} : vector<256x4xbf16>, vector<4x4xbf16>, vector<256x4xf32> -> vector<256x4xf32>
    %31 = arith.addf %24, %30 : vector<256x4xf32>
    %c0_30 = arith.constant 0 : index
    %c2 = arith.constant 2 : index
    %c0_31 = arith.constant 0 : index
    %32 = vector.load %arg12[%c0_30, %c2, %c0_31] : memref<18x18x4xf32, #tpu.memory_space<vmem>>, vector<16x16x4xf32>
    %33 = vector.shape_cast %32 : vector<16x16x4xf32> to vector<256x4xf32>
    %34 = arith.truncf %33 : vector<256x4xf32> to vector<256x4xbf16>
    %c2_32 = arith.constant 2 : index
    %c0_33 = arith.constant 0 : index
    %c0_34 = arith.constant 0 : index
    %35 = vector.load %arg5[%c2_32, %c0_33, %c0_34] : memref<9x4x4xbf16, #tpu.memory_space<vmem>>, vector<1x4x4xbf16>
    %36 = vector.shape_cast %35 : vector<1x4x4xbf16> to vector<4x4xbf16>
    %cst_35 = arith.constant dense<0.000000e+00> : vector<256x4xf32>
    %37 = tpu.matmul %34, %36, %cst_35 {dimension_numbers = #tpu.dot_dimension_numbers<[1], [0], [0], [1], [0, 0, 1, 1], [], []>} : vector<256x4xbf16>, vector<4x4xbf16>, vector<256x4xf32> -> vector<256x4xf32>
    %38 = arith.addf %31, %37 : vector<256x4xf32>
    %c1_36 = arith.constant 1 : index
    %c0_37 = arith.constant 0 : index
    %c0_38 = arith.constant 0 : index
    %39 = vector.load %arg12[%c1_36, %c0_37, %c0_38] : memref<18x18x4xf32, #tpu.memory_space<vmem>>, vector<16x16x4xf32>
    %40 = vector.shape_cast %39 : vector<16x16x4xf32> to vector<256x4xf32>
    %41 = arith.truncf %40 : vector<256x4xf32> to vector<256x4xbf16>
    %c3 = arith.constant 3 : index
    %c0_39 = arith.constant 0 : index
    %c0_40 = arith.constant 0 : index
    %42 = vector.load %arg5[%c3, %c0_39, %c0_40] : memref<9x4x4xbf16, #tpu.memory_space<vmem>>, vector<1x4x4xbf16>
    %43 = vector.shape_cast %42 : vector<1x4x4xbf16> to vector<4x4xbf16>
    %cst_41 = arith.constant dense<0.000000e+00> : vector<256x4xf32>
    %44 = tpu.matmul %41, %43, %cst_41 {dimension_numbers = #tpu.dot_dimension_numbers<[1], [0], [0], [1], [0, 0, 1, 1], [], []>} : vector<256x4xbf16>, vector<4x4xbf16>, vector<256x4xf32> -> vector<256x4xf32>
    %45 = arith.addf %38, %44 : vector<256x4xf32>
    %c1_42 = arith.constant 1 : index
    %c1_43 = arith.constant 1 : index
    %c0_44 = arith.constant 0 : index
    %46 = vector.load %arg12[%c1_42, %c1_43, %c0_44] : memref<18x18x4xf32, #tpu.memory_space<vmem>>, vector<16x16x4xf32>
    %47 = vector.shape_cast %46 : vector<16x16x4xf32> to vector<256x4xf32>
    %48 = arith.truncf %47 : vector<256x4xf32> to vector<256x4xbf16>
    %c4 = arith.constant 4 : index
    %c0_45 = arith.constant 0 : index
    %c0_46 = arith.constant 0 : index
    %49 = vector.load %arg5[%c4, %c0_45, %c0_46] : memref<9x4x4xbf16, #tpu.memory_space<vmem>>, vector<1x4x4xbf16>
    %50 = vector.shape_cast %49 : vector<1x4x4xbf16> to vector<4x4xbf16>
    %cst_47 = arith.constant dense<0.000000e+00> : vector<256x4xf32>
    %51 = tpu.matmul %48, %50, %cst_47 {dimension_numbers = #tpu.dot_dimension_numbers<[1], [0], [0], [1], [0, 0, 1, 1], [], []>} : vector<256x4xbf16>, vector<4x4xbf16>, vector<256x4xf32> -> vector<256x4xf32>
    %52 = arith.addf %45, %51 : vector<256x4xf32>
    %c1_48 = arith.constant 1 : index
    %c2_49 = arith.constant 2 : index
    %c0_50 = arith.constant 0 : index
    %53 = vector.load %arg12[%c1_48, %c2_49, %c0_50] : memref<18x18x4xf32, #tpu.memory_space<vmem>>, vector<16x16x4xf32>
    %54 = vector.shape_cast %53 : vector<16x16x4xf32> to vector<256x4xf32>
    %55 = arith.truncf %54 : vector<256x4xf32> to vector<256x4xbf16>
    %c5 = arith.constant 5 : index
    %c0_51 = arith.constant 0 : index
    %c0_52 = arith.constant 0 : index
    %56 = vector.load %arg5[%c5, %c0_51, %c0_52] : memref<9x4x4xbf16, #tpu.memory_space<vmem>>, vector<1x4x4xbf16>
    %57 = vector.shape_cast %56 : vector<1x4x4xbf16> to vector<4x4xbf16>
    %cst_53 = arith.constant dense<0.000000e+00> : vector<256x4xf32>
    %58 = tpu.matmul %55, %57, %cst_53 {dimension_numbers = #tpu.dot_dimension_numbers<[1], [0], [0], [1], [0, 0, 1, 1], [], []>} : vector<256x4xbf16>, vector<4x4xbf16>, vector<256x4xf32> -> vector<256x4xf32>
    %59 = arith.addf %52, %58 : vector<256x4xf32>
    %c2_54 = arith.constant 2 : index
    %c0_55 = arith.constant 0 : index
    %c0_56 = arith.constant 0 : index
    %60 = vector.load %arg12[%c2_54, %c0_55, %c0_56] : memref<18x18x4xf32, #tpu.memory_space<vmem>>, vector<16x16x4xf32>
    %61 = vector.shape_cast %60 : vector<16x16x4xf32> to vector<256x4xf32>
    %62 = arith.truncf %61 : vector<256x4xf32> to vector<256x4xbf16>
    %c6 = arith.constant 6 : index
    %c0_57 = arith.constant 0 : index
    %c0_58 = arith.constant 0 : index
    %63 = vector.load %arg5[%c6, %c0_57, %c0_58] : memref<9x4x4xbf16, #tpu.memory_space<vmem>>, vector<1x4x4xbf16>
    %64 = vector.shape_cast %63 : vector<1x4x4xbf16> to vector<4x4xbf16>
    %cst_59 = arith.constant dense<0.000000e+00> : vector<256x4xf32>
    %65 = tpu.matmul %62, %64, %cst_59 {dimension_numbers = #tpu.dot_dimension_numbers<[1], [0], [0], [1], [0, 0, 1, 1], [], []>} : vector<256x4xbf16>, vector<4x4xbf16>, vector<256x4xf32> -> vector<256x4xf32>
    %66 = arith.addf %59, %65 : vector<256x4xf32>
    %c2_60 = arith.constant 2 : index
    %c1_61 = arith.constant 1 : index
    %c0_62 = arith.constant 0 : index
    %67 = vector.load %arg12[%c2_60, %c1_61, %c0_62] : memref<18x18x4xf32, #tpu.memory_space<vmem>>, vector<16x16x4xf32>
    %68 = vector.shape_cast %67 : vector<16x16x4xf32> to vector<256x4xf32>
    %69 = arith.truncf %68 : vector<256x4xf32> to vector<256x4xbf16>
    %c7 = arith.constant 7 : index
    %c0_63 = arith.constant 0 : index
    %c0_64 = arith.constant 0 : index
    %70 = vector.load %arg5[%c7, %c0_63, %c0_64] : memref<9x4x4xbf16, #tpu.memory_space<vmem>>, vector<1x4x4xbf16>
    %71 = vector.shape_cast %70 : vector<1x4x4xbf16> to vector<4x4xbf16>
    %cst_65 = arith.constant dense<0.000000e+00> : vector<256x4xf32>
    %72 = tpu.matmul %69, %71, %cst_65 {dimension_numbers = #tpu.dot_dimension_numbers<[1], [0], [0], [1], [0, 0, 1, 1], [], []>} : vector<256x4xbf16>, vector<4x4xbf16>, vector<256x4xf32> -> vector<256x4xf32>
    %73 = arith.addf %66, %72 : vector<256x4xf32>
    %c2_66 = arith.constant 2 : index
    %c2_67 = arith.constant 2 : index
    %c0_68 = arith.constant 0 : index
    %74 = vector.load %arg12[%c2_66, %c2_67, %c0_68] : memref<18x18x4xf32, #tpu.memory_space<vmem>>, vector<16x16x4xf32>
    %75 = vector.shape_cast %74 : vector<16x16x4xf32> to vector<256x4xf32>
    %76 = arith.truncf %75 : vector<256x4xf32> to vector<256x4xbf16>
    %c8 = arith.constant 8 : index
    %c0_69 = arith.constant 0 : index
    %c0_70 = arith.constant 0 : index
    %77 = vector.load %arg5[%c8, %c0_69, %c0_70] : memref<9x4x4xbf16, #tpu.memory_space<vmem>>, vector<1x4x4xbf16>
    %78 = vector.shape_cast %77 : vector<1x4x4xbf16> to vector<4x4xbf16>
    %cst_71 = arith.constant dense<0.000000e+00> : vector<256x4xf32>
    %79 = tpu.matmul %76, %78, %cst_71 {dimension_numbers = #tpu.dot_dimension_numbers<[1], [0], [0], [1], [0, 0, 1, 1], [], []>} : vector<256x4xbf16>, vector<4x4xbf16>, vector<256x4xf32> -> vector<256x4xf32>
    %80 = arith.addf %73, %79 : vector<256x4xf32>
    %cst_72 = arith.constant 0.000000e+00 : f32
    %81 = vector.broadcast %cst_72 : f32 to vector<256x4xf32>
    %82 = arith.maximumf %80, %81 : vector<256x4xf32>
    %83 = arith.truncf %82 : vector<256x4xf32> to vector<256x4xbf16>
    %c0_73 = arith.constant 0 : index
    %c0_74 = arith.constant 0 : index
    %84 = vector.load %arg7[%c0_73, %c0_74] : memref<4x16xbf16, #tpu.memory_space<vmem>>, vector<4x16xbf16>
    %cst_75 = arith.constant dense<0.000000e+00> : vector<256x16xf32>
    %85 = tpu.matmul %83, %84, %cst_75 {dimension_numbers = #tpu.dot_dimension_numbers<[1], [0], [0], [1], [0, 0, 1, 1], [], []>} : vector<256x4xbf16>, vector<4x16xbf16>, vector<256x16xf32> -> vector<256x16xf32>
    %c0_76 = arith.constant 0 : index
    %c0_77 = arith.constant 0 : index
    %86 = vector.load %arg8[%c0_76, %c0_77] : memref<1x16xf32, #tpu.memory_space<vmem>>, vector<1x16xf32>
    %87 = vector.broadcast %86 : vector<1x16xf32> to vector<256x16xf32>
    %88 = arith.addf %85, %87 : vector<256x16xf32>
    %c0_78 = arith.constant 0 : index
    %c0_79 = arith.constant 0 : index
    %c0_80 = arith.constant 0 : index
    %c0_81 = arith.constant 0 : index
    %89 = vector.load %arg2[%c0_78, %c0_79, %c0_80, %c0_81] : memref<1x16x16x4xf32, #tpu.memory_space<vmem>>, vector<1x16x16x4xf32>
    %90 = vector.shape_cast %89 : vector<1x16x16x4xf32> to vector<16x16x4xf32>
    %91 = vector.shape_cast %90 : vector<16x16x4xf32> to vector<256x4xf32>
    %92 = arith.truncf %91 : vector<256x4xf32> to vector<256x4xbf16>
    %c0_82 = arith.constant 0 : index
    %c0_83 = arith.constant 0 : index
    %93 = vector.load %arg9[%c0_82, %c0_83] : memref<4x16xbf16, #tpu.memory_space<vmem>>, vector<4x16xbf16>
    %cst_84 = arith.constant dense<0.000000e+00> : vector<256x16xf32>
    %94 = tpu.matmul %92, %93, %cst_84 {dimension_numbers = #tpu.dot_dimension_numbers<[1], [0], [0], [1], [0, 0, 1, 1], [], []>} : vector<256x4xbf16>, vector<4x16xbf16>, vector<256x16xf32> -> vector<256x16xf32>
    %c0_85 = arith.constant 0 : index
    %c0_86 = arith.constant 0 : index
    %95 = vector.load %arg10[%c0_85, %c0_86] : memref<1x16xf32, #tpu.memory_space<vmem>>, vector<1x16xf32>
    %96 = vector.broadcast %95 : vector<1x16xf32> to vector<256x16xf32>
    %97 = arith.addf %94, %96 : vector<256x16xf32>
    %98 = arith.addf %88, %97 : vector<256x16xf32>
    %cst_87 = arith.constant 0.000000e+00 : f32
    %99 = vector.broadcast %cst_87 : f32 to vector<256x16xf32>
    %100 = arith.maximumf %98, %99 : vector<256x16xf32>
    %101 = vector.shape_cast %100 : vector<256x16xf32> to vector<1x16x16x16xf32>
    %c0_88 = arith.constant 0 : index
    %c0_89 = arith.constant 0 : index
    %c0_90 = arith.constant 0 : index
    %c0_91 = arith.constant 0 : index
    %102 = vector.load %arg11[%c0_88, %c0_89, %c0_90, %c0_91] : memref<1x16x16x16xf32, #tpu.memory_space<vmem>>, vector<1x16x16x16xf32>
    tpu.vector_store %arg11[%c0_88, %c0_89, %c0_90, %c0_91], %101 {strides = array<i32>} : memref<1x16x16x16xf32, #tpu.memory_space<vmem>>, vector<1x16x16x16xf32>,
    return
  }
  func.func @transform_0(%arg0: i32) -> (i32, i32, i32, i32) {
    %c0_i32 = arith.constant 0 : i32
    %c0_i32_0 = arith.constant 0 : i32
    %c0_i32_1 = arith.constant 0 : i32
    %c0_i32_2 = arith.constant 0 : i32
    return %arg0, %c0_i32, %c0_i32_0, %c0_i32_1 : i32, i32, i32, i32
  }
  func.func @transform_1(%arg0: i32) -> (i32, i32, i32, i32) {
    %c0_i32 = arith.constant 0 : i32
    %c0_i32_0 = arith.constant 0 : i32
    %c0_i32_1 = arith.constant 0 : i32
    %c0_i32_2 = arith.constant 0 : i32
    return %arg0, %c0_i32, %c0_i32_0, %c0_i32_1 : i32, i32, i32, i32
  }
  func.func @transform_2(%arg0: i32) -> (i32, i32) {
    %c0_i32 = arith.constant 0 : i32
    %c0_i32_0 = arith.constant 0 : i32
    %c0_i32_1 = arith.constant 0 : i32
    return %c0_i32, %c0_i32_0 : i32, i32
  }
  func.func @transform_3(%arg0: i32) -> (i32, i32) {
    %c0_i32 = arith.constant 0 : i32
    %c0_i32_0 = arith.constant 0 : i32
    %c0_i32_1 = arith.constant 0 : i32
    return %c0_i32, %c0_i32_0 : i32, i32
  }
  func.func @transform_4(%arg0: i32) -> (i32, i32, i32) {
    %c0_i32 = arith.constant 0 : i32
    %c0_i32_0 = arith.constant 0 : i32
    %c0_i32_1 = arith.constant 0 : i32
    %c0_i32_2 = arith.constant 0 : i32
    return %c0_i32, %c0_i32_0, %c0_i32_1 : i32, i32, i32
  }
  func.func @transform_5(%arg0: i32) -> (i32, i32) {
    %c0_i32 = arith.constant 0 : i32
    %c0_i32_0 = arith.constant 0 : i32
    %c0_i32_1 = arith.constant 0 : i32
    return %c0_i32, %c0_i32_0 : i32, i32
  }
  func.func @transform_6(%arg0: i32) -> (i32, i32) {
    %c0_i32 = arith.constant 0 : i32
    %c0_i32_0 = arith.constant 0 : i32
    %c0_i32_1 = arith.constant 0 : i32
    return %c0_i32, %c0_i32_0 : i32, i32
  }
  func.func @transform_7(%arg0: i32) -> (i32, i32) {
    %c0_i32 = arith.constant 0 : i32
    %c0_i32_0 = arith.constant 0 : i32
    %c0_i32_1 = arith.constant 0 : i32
    return %c0_i32, %c0_i32_0 : i32, i32
  }
  func.func @transform_8(%arg0: i32) -> (i32, i32) {
    %c0_i32 = arith.constant 0 : i32
    %c0_i32_0 = arith.constant 0 : i32
    %c0_i32_1 = arith.constant 0 : i32
    return %c0_i32, %c0_i32_0 : i32, i32
  }
  func.func @transform_9(%arg0: i32) -> (i32, i32) {
    %c0_i32 = arith.constant 0 : i32
    %c0_i32_0 = arith.constant 0 : i32
    %c0_i32_1 = arith.constant 0 : i32
    return %c0_i32, %c0_i32_0 : i32, i32
  }
  func.func @transform_10(%arg0: i32) -> (i32, i32, i32, i32) {
    %c0_i32 = arith.constant 0 : i32
    %c0_i32_0 = arith.constant 0 : i32
    %c0_i32_1 = arith.constant 0 : i32
    %c0_i32_2 = arith.constant 0 : i32
    return %arg0, %c0_i32, %c0_i32_0, %c0_i32_1 : i32, i32, i32, i32
  }
}

</mosaic_0001>

<bundles_post_ra>
// kernel: _lambda_.1
= control target key start
LH: loop header
LB: loop body
LE: loop exit
PB: predicated region body
PF: predicated region fallthrough
CT: control target
= control target key end

     0   :  { %s3541_s13 = smov 0   ;;  %s4860_s0 = inlined_call_operand.vmem [shape: f32[2,16,16,4], index: 0, kind: input, shape index: {}, may-alias: {0,1}]   ;;  %s4861_s1 = inlined_call_operand.vmem [shape: f32[2,16,16,4], index: 1, kind: input, shape index: {}, may-alias: {0,1}]   ;;  %s4862_s2 = inlined_call_operand.vmem [shape: bf16[4,4], index: 2, kind: input, shape index: {}]   ;;  %s4863_s3 = inlined_call_operand.vmem [shape: f32[1,4], index: 3, kind: input, shape index: {}]   ;;  %s4864_s4 = inlined_call_operand.vmem [shape: bf16[9,4,4], index: 4, kind: input, shape index: {}]   ;;  %s4865_s5 = inlined_call_operand.vmem [shape: f32[1,4], index: 5, kind: input, shape index: {}]   ;;  %s4866_s6 = inlined_call_operand.vmem [shape: bf16[4,16], index: 6, kind: input, shape index: {}]   ;;  %s4867_s7 = inlined_call_operand.vmem [shape: f32[1,16], index: 7, kind: input, shape index: {}]   ;;  %s4868_s8 = inlined_call_operand.vmem [shape: bf16[4,16], index: 8, kind: input, shape index: {}]   ;;  %s4869_s9 = inlined_call_operand.vmem [shape: f32[1,16], index: 9, kind: input, shape index: {}]   ;;  %s4870_s10 = inlined_call_operand.vmem [shape: f32[2,16,16,16], index: 10, kind: output, shape index: {}]  }
   0x1 LB: > { %s3248_s14 = sadd.s32 4294967295, %s3483_s13   ;;  %p3252_p0 = scmp.ge.s32.totalorder %s3483_s13, 1  ;;  %s3483_s13 = sphi %s3541_s13, %s20_s13  }
   0x2   : > { %p322_p1 = scmp.lt.s32.totalorder %s3483_s13, 3 }
   0x4   : > { %p323_p2 = pnand %p3252_p0, %p322_p1 }
   0x6   : > { %326 = sbr.rel (%p323_p2) target bundleno = 1190 (0x4a6), region = 60 }
   0xb   : > { %v429_v0 = vld [vmem:[%s4862_s2] sm:$0x3]  ;;  %vm483_vm0 = vcmask 1041408   ;;  %p365_p3 = scmp.lt.s32.totalorder %s3248_s14, 1  ;;  %vm434_vm1 = vcmask 31744   ;;  %vm610_vm2 = vcmask 25600  }
   0xc   : > { %v485_v1 = vsel %vm483_vm0, %v429_v0, 0  ;;  %v3485_v20 = vmov 0.0   ;;  %v3291_v21 = vld [vmem:[%s4864_s4 + $0x2] sm:$0x3]  ;;  %v3308_v22 = vld [vmem:[%s4864_s4 + $0x4] sm:$0x3] }
   0xd   : > { %494 = vmatpush.bf16.msra.mxu0 %v485_v1  ;;  %s4917_s14 = smov (!%p365_p3, %s3248_s14), 1  ;;  %608 = vst.msk [vmem:[#allocation2] sm:$0xff] %vm434_vm1, %v3485_v20  ;;  %v1020_v23 = vsel %vm483_vm0, %v3291_v21, 0  ;;  %v1242_v24 = vsel %vm483_vm0, %v3308_v22, 0  ;;  %v748_v27 = vld [vmem:[%s4864_s4] sm:$0x3] }
   0xe   : > { %s3553_s17 = sshll.u32 %s4917_s14, 8  ;;  %609 = vst.msk [vmem:[#allocation2 + $0x8] sm:$0xff] %vm434_vm1, %v3485_v20  ;;  %1029 = vmatpush.bf16.msra.mxu2 %v1020_v23  ;;  %1251 = vmatpush.bf16.msra.mxu3 %v1242_v24  ;;  %v798_v31 = vsel %vm483_vm0, %v748_v27, 0  ;;  %v3325_v39 = vld [vmem:[%s4864_s4 + $0x6] sm:$0x3]  ;;  %vm3148_vm3 = vcmask 130048  }
   0xf   : > { %s3559_s20 = scalar_lea.vmem %s4860_s0, %s3553_s17  ;;  %611 = vst.msk [vmem:[#allocation2 + $0x10] sm:$0x3] %vm610_vm2, %v3485_v20  ;;  %807 = vmatpush.bf16.msra.mxu1 %v798_v31  ;;  %v3342_v40 = vld [vmem:[%s4864_s4 + $0x8] sm:$0x3]  ;;  %v1464_v41 = vsel %vm483_vm0, %v3325_v39, 0  ;;  %s4524_s11 = scalar_lea.vmem %s4861_s1, %s3553_s17 }
  0x10   : > { %v381_v2 = vld [vmem:[%s3559_s20] sm:$0xff]  ;;  %v382_v3 = vld [vmem:[%s3559_s20 + $0x8] sm:$0xff]  ;;  %v383_v5 = vld [vmem:[%s3559_s20 + $0x10] sm:$0xff]  ;;  %612 = vst.msk [vmem:[#allocation2 + $0x18] sm:$0xff] %vm434_vm1, %v3485_v20  ;;  %v1686_v42 = vsel %vm483_vm0, %v3342_v40, 0 }
  0x11   : > { %v413_v4 = vpack.c.bf16 %v382_v3, %v381_v2  ;;  %v384_v6 = vld [vmem:[%s3559_s20 + $0x18] sm:$0xff]  ;;  %v385_v8 = vld [vmem:[%s3559_s20 + $0x20] sm:$0xff]  ;;  %v386_v9 = vld [vmem:[%s3559_s20 + $0x28] sm:$0xff]  ;;  %613 = vst.msk [vmem:[#allocation2 + $0x20] sm:$0xff] %vm434_vm1, %v3485_v20  ;;  %1473 = vmatpush.bf16.msrb.mxu0 %v1464_v41 }
  0x12   : > { %v414_v7 = vpack.c.bf16 %v384_v6, %v383_v5  ;;  %v415_v10 = vpack.c.bf16 %v386_v9, %v385_v8  ;;  %v387_v11 = vld [vmem:[%s3559_s20 + $0x30] sm:$0xff]  ;;  %v388_v12 = vld [vmem:[%s3559_s20 + $0x38] sm:$0xff]  ;;  %v389_v14 = vld [vmem:[%s3559_s20 + $0x40] sm:$0xff]  ;;  %614 = vst.msk [vmem:[#allocation2 + $0x28] sm:$0x3] %vm610_vm2, %v3485_v20 }
  0x13   : > { %3259 = vmatmul.msk.bf16.vlgmr.msra.gmra.mxu0 %vm434_vm1, %v413_v4  ;;  %v416_v13 = vpack.c.bf16 %v388_v12, %v387_v11  ;;  %v390_v15 = vld [vmem:[%s3559_s20 + $0x48] sm:$0xff]  ;;  %v391_v17 = vld [vmem:[%s3559_s20 + $0x50] sm:$0xff]  ;;  %v392_v18 = vld [vmem:[%s3559_s20 + $0x58] sm:$0xff]  ;;  %615 = vst.msk [vmem:[#allocation2 + $0x30] sm:$0xff] %vm434_vm1, %v3485_v20  ;;  %1695 = vmatpush.bf16.msrb.mxu1 %v1686_v42 }
  0x14   : > { %v417_v16 = vpack.c.bf16 %v390_v15, %v389_v14  ;;  %v418_v19 = vpack.c.bf16 %v392_v18, %v391_v17  ;;  %616 = vst.msk [vmem:[#allocation2 + $0x38] sm:$0xff] %vm434_vm1, %v3485_v20  ;;  %v393_v29 = vld [vmem:[%s3559_s20 + $0x60] sm:$0xff]  ;;  %v394_v33 = vld [vmem:[%s3559_s20 + $0x68] sm:$0xff]  ;;  %v395_v43 = vld [vmem:[%s3559_s20 + $0x70] sm:$0xff] }
  0x15   : > { %v921_v25 = vld [vmem:[#allocation2 + $0x1] sm:$0xff]  ;;  %617 = vst.msk [vmem:[#allocation2 + $0x40] sm:$0x3] %vm610_vm2, %v3485_v20  ;;  %v419_v38 = vpack.c.bf16 %v394_v33, %v393_v29  ;;  %v396_v44 = vld [vmem:[%s3559_s20 + $0x78] sm:$0xff]  ;;  %v3703_v48 = vld [vmem:[%s4863_s3] ss:$0 sm:$0xff] }
  0x16   : > { %v922_v26 = vld [vmem:[#allocation2 + $0x9] sm:$0xff]  ;;  %618 = vst.msk [vmem:[#allocation2 + $0x48] sm:$0xff] %vm434_vm1, %v3485_v20  ;;  %v700_v35 = vld [vmem:[#allocation2] sm:$0xff]  ;;  %v420_v45 = vpack.c.bf16 %v396_v44, %v395_v43  ;;  %v400_v57 = vld [vmem:[%s3559_s20 + $0x98] sm:$0xff] }
  0x17   : > { %v1143_v28 = vld [vmem:[#allocation2 + $0x2] sm:$0xff]  ;;  %v953_v30 = vpack.c.bf16 %v922_v26, %v921_v25  ;;  %619 = vst.msk [vmem:[#allocation2 + $0x50] sm:$0xff] %vm434_vm1, %v3485_v20  ;;  %v1144_v32 = vld [vmem:[#allocation2 + $0xa] sm:$0xff]  ;;  %v404_v29 = vld [vmem:[%s3559_s20 + $0xb8] sm:$0xff] }
  0x18   : > { %620 = vst.msk [vmem:[#allocation2 + $0x58] sm:$0x3] %vm610_vm2, %v3485_v20  ;;  %v1175_v34 = vpack.c.bf16 %v1144_v32, %v1143_v28  ;;  %v701_v36 = vld [vmem:[#allocation2 + $0x8] sm:$0xff]  ;;  %v397_v46 = vld [vmem:[%s3559_s20 + $0x80] sm:$0xff]  ;;  %v399_v56 = vld [vmem:[%s3559_s20 + $0x90] sm:$0xff] }
  0x19   : > { %3292 = vmatmul.msk.bf16.vlgmr.msra.gmra.mxu2 %vm434_vm1, %v953_v30  ;;  %621 = vst.msk [vmem:[#allocation2 + $0x60] sm:$0xff] %vm434_vm1, %v3485_v20  ;;  %v732_v37 = vpack.c.bf16 %v701_v36, %v700_v35  ;;  %v398_v47 = vld [vmem:[%s3559_s20 + $0x88] sm:$0xff]  ;;  %v422_v58 = vpack.c.bf16 %v400_v57, %v399_v56  ;;  %v403_v28 = vld [vmem:[%s3559_s20 + $0xb0] sm:$0xff] }
  0x1a   : > { %622 = vst.msk [vmem:[#allocation2 + $0x68] sm:$0xff] %vm434_vm1, %v3485_v20  ;;  %3309 = vmatmul.msk.bf16.vlgmr.msra.gmra.mxu3 %vm434_vm1, %v1175_v34  ;;  %v421_v49 = vpack.c.bf16 %v398_v47, %v397_v46  ;;  %v402_v11 = vld [vmem:[%s3559_s20 + $0xa8] sm:$0xff]  ;;  %v424_v30 = vpack.c.bf16 %v404_v29, %v403_v28  ;;  %v405_v46 = vld [vmem:[%s3559_s20 + $0xc0] sm:$0xff] }
  0x1b   : > { %623 = vst.msk [vmem:[#allocation2 + $0x70] sm:$0x3] %vm610_vm2, %v3485_v20  ;;  %3275 = vmatmul.msk.bf16.vlgmr.msra.gmra.mxu1 %vm434_vm1, %v732_v37  ;;  %v406_v47 = vld [vmem:[%s3559_s20 + $0xc8] sm:$0xff] }
  0x1c   : > { %624 = vst.msk [vmem:[#allocation2 + $0x78] sm:$0xff] %vm434_vm1, %v3485_v20 }
  0x1d   : > { %625 = vst.msk [vmem:[#allocation2 + $0x80] sm:$0xff] %vm434_vm1, %v3485_v20 }
  0x1e   : > { %626 = vst.msk [vmem:[#allocation2 + $0x88] sm:$0x3] %vm610_vm2, %v3485_v20 }
  0x1f   : > { %627 = vst.msk [vmem:[#allocation2 + $0x90] sm:$0xff] %vm434_vm1, %v3485_v20 }
  0x20   : > { %628 = vst.msk [vmem:[#allocation2 + $0x98] sm:$0xff] %vm434_vm1, %v3485_v20 }
  0x21   : > { %629 = vst.msk [vmem:[#allocation2 + $0xa0] sm:$0x3] %vm610_vm2, %v3485_v20 }
  0x22   : > { %630 = vst.msk [vmem:[#allocation2 + $0xa8] sm:$0xff] %vm434_vm1, %v3485_v20 }
  0x23   : > { %3260 = vmatmul.msk.bf16.gmra.mxu0 %vm434_vm1, %v414_v7  ;;  %631 = vst.msk [vmem:[#allocation2 + $0xb0] sm:$0xff] %vm434_vm1, %v3485_v20 }
  0x24   : > { %632 = vst.msk [vmem:[#allocation2 + $0xb8] sm:$0x3] %vm610_vm2, %v3485_v20 }
  0x25   : > { %633 = vst.msk [vmem:[#allocation2 + $0xc0] sm:$0xff] %vm434_vm1, %v3485_v20 }
  0x26   : > { %634 = vst.msk [vmem:[#allocation2 + $0xc8] sm:$0xff] %vm434_vm1, %v3485_v20 }
  0x27   : > { %635 = vst.msk [vmem:[#allocation2 + $0xd0] sm:$0x3] %vm610_vm2, %v3485_v20 }
  0x28   : > { %636 = vst.msk [vmem:[#allocation2 + $0xd8] sm:$0xff] %vm434_vm1, %v3485_v20 }
  0x29   : > { %637 = vst.msk [vmem:[#allocation2 + $0xe0] sm:$0xff] %vm434_vm1, %v3485_v20 }
  0x2a   : > { %638 = vst.msk [vmem:[#allocation2 + $0xe8] sm:$0x3] %vm610_vm2, %v3485_v20 }
  0x2b   : > { %639 = vst.msk [vmem:[#allocation2 + $0xf0] sm:$0xff] %vm434_vm1, %v3485_v20 }
  0x2c   : > { %640 = vst.msk [vmem:[#allocation2 + $0xf8] sm:$0xff] %vm434_vm1, %v3485_v20 }
  0x2d   : > { %641 = vst.msk [vmem:[#allocation2 + $0x100] sm:$0x3] %vm610_vm2, %v3485_v20 }
  0x2e   : > { %642 = vst.msk [vmem:[#allocation2 + $0x108] sm:$0xff] %vm434_vm1, %v3485_v20 }
  0x2f   : > { %643 = vst.msk [vmem:[#allocation2 + $0x110] sm:$0xff] %vm434_vm1, %v3485_v20 }
  0x30   : > { %644 = vst.msk [vmem:[#allocation2 + $0x118] sm:$0x3] %vm610_vm2, %v3485_v20 }
  0x31   : > { %645 = vst.msk [vmem:[#allocation2 + $0x120] sm:$0xff] %vm434_vm1, %v3485_v20 }
  0x32   : > { %646 = vst.msk [vmem:[#allocation2 + $0x128] sm:$0xff] %vm434_vm1, %v3485_v20 }
  0x33   : > { %3261 = vmatmul.msk.bf16.gmra.mxu0 %vm434_vm1, %v415_v10  ;;  %647 = vst.msk [vmem:[#allocation2 + $0x130] sm:$0x3] %vm610_vm2, %v3485_v20  ;;  %v401_v10 = vld [vmem:[%s3559_s20 + $0xa0] sm:$0xff] }
  0x34   : > { %648 = vst.msk [vmem:[#allocation2 + $0x138] sm:$0xff] %vm434_vm1, %v3485_v20  ;;  %v423_v12 = vpack.c.bf16 %v402_v11, %v401_v10 }
  0x35   : > { %649 = vst.msk [vmem:[#allocation2 + $0x140] sm:$0xff] %vm434_vm1, %v3485_v20 }
  0x36   : > { %650 = vst.msk [vmem:[#allocation2 + $0x148] sm:$0x3] %vm610_vm2, %v3485_v20 }
  0x37   : > { %651 = vst.msk [vmem:[#allocation2 + $0x150] sm:$0xff] %vm434_vm1, %v3485_v20 }
  0x38   : > { %652 = vst.msk [vmem:[#allocation2 + $0x158] sm:$0xff] %vm434_vm1, %v3485_v20 }
  0x39   : > { %653 = vst.msk [vmem:[#allocation2 + $0x160] sm:$0x3] %vm610_vm2, %v3485_v20 }
  0x3a   : > { %654 = vst.msk [vmem:[#allocation2 + $0x168] sm:$0xff] %vm434_vm1, %v3485_v20 }
  0x3b   : > { %655 = vst.msk [vmem:[#allocation2 + $0x170] sm:$0xff] %vm434_vm1, %v3485_v20 }
  0x3c   : > { %656 = vst.msk [vmem:[#allocation2 + $0x178] sm:$0x3] %vm610_vm2, %v3485_v20 }
  0x3d   : > { %657 = vst.msk [vmem:[#allocation2 + $0x180] sm:$0xff] %vm434_vm1, %v3485_v20 }
  0x3e   : > { %658 = vst.msk [vmem:[#allocation2 + $0x188] sm:$0xff] %vm434_vm1, %v3485_v20 }
  0x3f   : > { %659 = vst.msk [vmem:[#allocation2 + $0x190] sm:$0x3] %vm610_vm2, %v3485_v20 }
  0x40   : > { %660 = vst.msk [vmem:[#allocation2 + $0x198] sm:$0xff] %vm434_vm1, %v3485_v20 }
  0x41   : > { %661 = vst.msk [vmem:[#allocation2 + $0x1a0] sm:$0xff] %vm434_vm1, %v3485_v20 }
  0x42   : > { %662 = vst.msk [vmem:[#allocation2 + $0x1a8] sm:$0x3] %vm610_vm2, %v3485_v20 }
  0x43   : > { %3262 = vmatmul.msk.bf16.gmra.mxu0 %vm434_vm1, %v416_v13 }
  0x53   : > { %3263 = vmatmul.msk.bf16.gmra.mxu0 %vm434_vm1, %v417_v16 }
  0x63   : > { %3264 = vmatmul.msk.bf16.gmra.mxu0 %vm434_vm1, %v418_v19 }
  0x73   : > { %3265 = vmatmul.msk.bf16.gmra.mxu0 %vm434_vm1, %v419_v38 }
  0x83   : > { %3266 = vmatmul.msk.bf16.gmra.mxu0 %vm434_vm1, %v420_v45 }
  0x90   : > { %v496_v50 = vpop.f32.mrf.mxu0 }
  0x91   : > { %v497_v51 = vadd.f32 %v3703_v48, %v496_v50 }
  0x93   : > { %v576_v52 = vmax.f32 %v497_v51, 0.0  ;;  %3267 = vmatmul.msk.bf16.gmra.mxu0 %vm434_vm1, %v421_v49  ;;  %v425_v49 = vpack.c.bf16 %v406_v47, %v405_v46 }
  0x95   : > { %664 = vst.msk [vmem:[#allocation2 + $0x19] sm:$0xff] %vm434_vm1, %v576_v52 }
  0x98   : > { %v498_v53 = vpop.f32.mrf.mxu0  ;;  %v809_v28 = vpop.f32.mrf.mxu1 }
  0x99   : > { %v499_v54 = vadd.f32 %v3703_v48, %v498_v53 }
  0x9b   : > { %v577_v55 = vmax.f32 %v499_v54, 0.0 }
  0x9c   : > { %v702_v62 = vld [vmem:[#allocation2 + $0x18] sm:$0xff] }
  0x9d   : > { %665 = vst.msk [vmem:[#allocation2 + $0x21] sm:$0xff] %vm434_vm1, %v577_v55  ;;  %v923_v63 = vld [vmem:[#allocation2 + $0x19] sm:$0xff] }
  0xa0   : > { %v501_v59 = vpop.f32.mrf.mxu0 }
  0xa1   : > { %v502_v60 = vadd.f32 %v3703_v48, %v501_v59 }
  0xa3   : > { %v578_v61 = vmax.f32 %v502_v60, 0.0  ;;  %3268 = vmatmul.msk.bf16.gmra.mxu0 %vm434_vm1, %v422_v58 }
  0xa4   : > { %v703_v0 = vld [vmem:[#allocation2 + $0x20] sm:$0xff] }
  0xa5   : > { %v924_v1 = vld [vmem:[#allocation2 + $0x21] sm:$0xff]  ;;  %666 = vst.msk [vmem:[#allocation2 + $0x31] sm:$0xff] %vm434_vm1, %v578_v61  ;;  %v3733_v3 = vpack.c.bf16 %v703_v0, %v702_v62 }
  0xa6   : > { %v1145_v2 = vld [vmem:[#allocation2 + $0x1a] sm:$0xff]  ;;  %v3735_v4 = vpack.c.bf16 %v924_v1, %v923_v63  ;;  %v1146_v5 = vld [vmem:[#allocation2 + $0x22] sm:$0xff]  ;;  %v407_v1 = vld [vmem:[%s3559_s20 + $0xd0] sm:$0xff] }
  0xa7   : > { %v3737_v6 = vpack.c.bf16 %v1146_v5, %v1145_v2  ;;  %3276 = vmatmul.msk.bf16.gmra.mxu1 %vm434_vm1, %v3733_v3  ;;  %v408_v2 = vld [vmem:[%s3559_s20 + $0xd8] sm:$0xff] }
  0xa8   : > { %3293 = vmatmul.msk.bf16.gmra.mxu2 %vm434_vm1, %v3735_v4  ;;  %v503_v7 = vpop.f32.mrf.mxu0  ;;  %v426_v5 = vpack.c.bf16 %v408_v2, %v407_v1 }
  0xa9   : > { %3310 = vmatmul.msk.bf16.gmra.mxu3 %vm434_vm1, %v3737_v6  ;;  %v504_v8 = vadd.f32 %v3703_v48, %v503_v7 }
  0xab   : > { %v579_v9 = vmax.f32 %v504_v8, 0.0 }
  0xac   : > { %v704_v16 = vld [vmem:[#allocation2 + $0x30] sm:$0xff] }
  0xad   : > { %667 = vst.msk [vmem:[#allocation2 + $0x39] sm:$0xff] %vm434_vm1, %v579_v9  ;;  %v925_v17 = vld [vmem:[#allocation2 + $0x31] sm:$0xff] }
  0xb0   : > { %v506_v13 = vpop.f32.mrf.mxu0 }
  0xb1   : > { %v507_v14 = vadd.f32 %v3703_v48, %v506_v13 }
  0xb3   : > { %v580_v15 = vmax.f32 %v507_v14, 0.0  ;;  %3269 = vmatmul.msk.bf16.gmra.mxu0 %vm434_vm1, %v423_v12 }
  0xb4   : > { %v705_v18 = vld [vmem:[#allocation2 + $0x38] sm:$0xff] }
  0xb5   : > { %v926_v19 = vld [vmem:[#allocation2 + $0x39] sm:$0xff]  ;;  %668 = vst.msk [vmem:[#allocation2 + $0x49] sm:$0xff] %vm434_vm1, %v580_v15  ;;  %v3752_v21 = vpack.c.bf16 %v705_v18, %v704_v16 }
  0xb6   : > { %v1147_v20 = vld [vmem:[#allocation2 + $0x32] sm:$0xff]  ;;  %v3754_v22 = vpack.c.bf16 %v926_v19, %v925_v17  ;;  %v1148_v23 = vld [vmem:[#allocation2 + $0x3a] sm:$0xff] }
  0xb7   : > { %v3756_v24 = vpack.c.bf16 %v1148_v23, %v1147_v20  ;;  %3277 = vmatmul.msk.bf16.gmra.mxu1 %vm434_vm1, %v3752_v21 }
  0xb8   : > { %3294 = vmatmul.msk.bf16.gmra.mxu2 %vm434_vm1, %v3754_v22  ;;  %v508_v25 = vpop.f32.mrf.mxu0 }
  0xb9   : > { %3311 = vmatmul.msk.bf16.gmra.mxu3 %vm434_vm1, %v3756_v24  ;;  %v509_v26 = vadd.f32 %v3703_v48, %v508_v25  ;;  %v409_v25 = vld [vmem:[%s3559_s20 + $0xe0] sm:$0xff] }
  0xbb   : > { %v581_v27 = vmax.f32 %v509_v26, 0.0  ;;  %v410_v26 = vld [vmem:[%s3559_s20 + $0xe8] sm:$0xff] }
  0xbc   : > { %v706_v34 = vld [vmem:[#allocation2 + $0x48] sm:$0xff]  ;;  %v427_v29 = vpack.c.bf16 %v410_v26, %v409_v25 }
  0xbd   : > { %669 = vst.msk [vmem:[#allocation2 + $0x51] sm:$0xff] %vm434_vm1, %v581_v27  ;;  %v927_v35 = vld [vmem:[#allocation2 + $0x49] sm:$0xff]  ;;  %v3828_v27 = vld [vmem:[%s4865_s5] ss:$0 sm:$0xff] }
  0xc0   : > { %v511_v31 = vpop.f32.mrf.mxu0 }
  0xc1   : > { %v512_v32 = vadd.f32 %v3703_v48, %v511_v31 }
  0xc3   : > { %v582_v33 = vmax.f32 %v512_v32, 0.0  ;;  %3270 = vmatmul.msk.bf16.gmra.mxu0 %vm434_vm1, %v424_v30  ;;  %v889_v30 = vadd.f32 %v3828_v27, %v809_v28  ;;  %v1031_v32 = vpop.f32.mrf.mxu2 }
  0xc4   : > { %v707_v36 = vld [vmem:[#allocation2 + $0x50] sm:$0xff] }
  0xc5   : > { %v928_v37 = vld [vmem:[#allocation2 + $0x51] sm:$0xff]  ;;  %670 = vst.msk [vmem:[#allocation2 + $0x61] sm:$0xff] %vm434_vm1, %v582_v33  ;;  %v3771_v39 = vpack.c.bf16 %v707_v36, %v706_v34  ;;  %v1111_v34 = vadd.f32 %v1031_v32, %v889_v30 }
  0xc6   : > { %v1149_v38 = vld [vmem:[#allocation2 + $0x4a] sm:$0xff]  ;;  %v3773_v40 = vpack.c.bf16 %v928_v37, %v927_v35  ;;  %v1150_v41 = vld [vmem:[#allocation2 + $0x52] sm:$0xff] }
  0xc7   : > { %v3775_v42 = vpack.c.bf16 %v1150_v41, %v1149_v38  ;;  %3278 = vmatmul.msk.bf16.gmra.mxu1 %vm434_vm1, %v3771_v39 }
  0xc8   : > { %3295 = vmatmul.msk.bf16.gmra.mxu2 %vm434_vm1, %v3773_v40  ;;  %v513_v43 = vpop.f32.mrf.mxu0 }
  0xc9   : > { %3312 = vmatmul.msk.bf16.gmra.mxu3 %vm434_vm1, %v3775_v42  ;;  %v514_v44 = vadd.f32 %v3703_v48, %v513_v43 }
  0xcb   : > { %v583_v45 = vmax.f32 %v514_v44, 0.0  ;;  %v1253_v44 = vpop.f32.mrf.mxu3 }
  0xcc   : > { %v708_v53 = vld [vmem:[#allocation2 + $0x60] sm:$0xff] }
  0xcd   : > { %671 = vst.msk [vmem:[#allocation2 + $0x69] sm:$0xff] %vm434_vm1, %v583_v45  ;;  %v929_v54 = vld [vmem:[#allocation2 + $0x61] sm:$0xff] }
  0xd0   : > { %v516_v50 = vpop.f32.mrf.mxu0 }
  0xd1   : > { %v517_v51 = vadd.f32 %v3703_v48, %v516_v50 }
  0xd3   : > { %v584_v52 = vmax.f32 %v517_v51, 0.0  ;;  %3271 = vmatmul.msk.bf16.gmra.mxu0 %vm434_vm1, %v425_v49  ;;  %v3838_v49 = vadd.f32 %v1253_v44, %v1111_v34 }
  0xd4   : > { %v709_v55 = vld [vmem:[#allocation2 + $0x68] sm:$0xff] }
  0xd5   : > { %v930_v56 = vld [vmem:[#allocation2 + $0x69] sm:$0xff]  ;;  %672 = vst.msk [vmem:[#allocation2 + $0x79] sm:$0xff] %vm434_vm1, %v584_v52  ;;  %v3790_v58 = vpack.c.bf16 %v709_v55, %v708_v53  ;;  %v412_v55 = vld [vmem:[%s3559_s20 + $0xf8] sm:$0xff] }
  0xd6   : > { %v1151_v57 = vld [vmem:[#allocation2 + $0x62] sm:$0xff]  ;;  %v3792_v59 = vpack.c.bf16 %v930_v56, %v929_v54  ;;  %v1152_v60 = vld [vmem:[#allocation2 + $0x6a] sm:$0xff] }
  0xd7   : > { %v3794_v61 = vpack.c.bf16 %v1152_v60, %v1151_v57  ;;  %3279 = vmatmul.msk.bf16.gmra.mxu1 %vm434_vm1, %v3790_v58  ;;  %v411_v54 = vld [vmem:[%s3559_s20 + $0xf0] sm:$0xff]  ;;  %s4655_s20 = scalar_lea.vmem %s4870_s10, %s3553_s17 }
  0xd8   : > { %3296 = vmatmul.msk.bf16.gmra.mxu2 %vm434_vm1, %v3792_v59  ;;  %v518_v62 = vpop.f32.mrf.mxu0  ;;  %v428_v56 = vpack.c.bf16 %v412_v55, %v411_v54 }
  0xd9   : > { %3313 = vmatmul.msk.bf16.gmra.mxu3 %vm434_vm1, %v3794_v61  ;;  %v519_v63 = vadd.f32 %v3703_v48, %v518_v62 }
  0xdb   : > { %v585_v0 = vmax.f32 %v519_v63, 0.0 }
  0xdc   : > { %v710_v10 = vld [vmem:[#allocation2 + $0x78] sm:$0xff] }
  0xdd   : > { %673 = vst.msk [vmem:[#allocation2 + $0x81] sm:$0xff] %vm434_vm1, %v585_v0  ;;  %v931_v11 = vld [vmem:[#allocation2 + $0x79] sm:$0xff] }
  0xe0   : > { %v521_v7 = vpop.f32.mrf.mxu0 }
  0xe1   : > { %v522_v8 = vadd.f32 %v3703_v48, %v521_v7 }
  0xe3   : > { %v586_v9 = vmax.f32 %v522_v8, 0.0  ;;  %3272 = vmatmul.msk.bf16.gmra.mxu0 %vm434_vm1, %v426_v5 }
  0xe4   : > { %v711_v12 = vld [vmem:[#allocation2 + $0x80] sm:$0xff] }
  0xe5   : > { %v932_v13 = vld [vmem:[#allocation2 + $0x81] sm:$0xff]  ;;  %674 = vst.msk [vmem:[#allocation2 + $0x91] sm:$0xff] %vm434_vm1, %v586_v9  ;;  %v3809_v15 = vpack.c.bf16 %v711_v12, %v710_v10  ;;  %v3359_v10 = vld [vmem:[%s4864_s4 + $0xa] sm:$0x3] }
  0xe6   : > { %v1153_v14 = vld [vmem:[#allocation2 + $0x7a] sm:$0xff]  ;;  %v3811_v16 = vpack.c.bf16 %v932_v13, %v931_v11  ;;  %v1154_v17 = vld [vmem:[#allocation2 + $0x82] sm:$0xff]  ;;  %v3376_v11 = vld [vmem:[%s4864_s4 + $0xc] sm:$0x3]  ;;  %v1908_v13 = vsel %vm483_vm0, %v3359_v10, 0 }
  0xe7   : > { %v3813_v18 = vpack.c.bf16 %v1154_v17, %v1153_v14  ;;  %3280 = vmatmul.msk.bf16.gmra.mxu1 %vm434_vm1, %v3809_v15  ;;  %v2131_v14 = vsel %vm483_vm0, %v3376_v11, 0  ;;  %1917 = vmatpush.bf16.msrb.mxu2 %v1908_v13 }
  0xe8   : > { %3297 = vmatmul.msk.bf16.gmra.mxu2 %vm434_vm1, %v3811_v16  ;;  %v523_v19 = vpop.f32.mrf.mxu0  ;;  %2140 = vmatpush.bf16.msrb.mxu3 %v2131_v14 }
  0xe9   : > { %3314 = vmatmul.msk.bf16.gmra.mxu3 %vm434_vm1, %v3813_v18  ;;  %v524_v20 = vadd.f32 %v3703_v48, %v523_v19 }
  0xeb   : > { %v587_v23 = vmax.f32 %v524_v20, 0.0 }
  0xec   : > { %v712_v36 = vld [vmem:[#allocation2 + $0x90] sm:$0xff] }
  0xed   : > { %675 = vst.msk [vmem:[#allocation2 + $0x99] sm:$0xff] %vm434_vm1, %v587_v23  ;;  %v933_v37 = vld [vmem:[#allocation2 + $0x91] sm:$0xff] }
  0xf0   : > { %v526_v31 = vpop.f32.mrf.mxu0 }
  0xf1   : > { %v527_v33 = vadd.f32 %v3703_v48, %v526_v31 }
  0xf3   : > { %v588_v35 = vmax.f32 %v527_v33, 0.0  ;;  %3273 = vmatmul.msk.bf16.gmra.mxu0 %vm434_vm1, %v427_v29 }
  0xf4   : > { %v713_v38 = vld [vmem:[#allocation2 + $0x98] sm:$0xff] }
  0xf5   : > { %v934_v41 = vld [vmem:[#allocation2 + $0x99] sm:$0xff]  ;;  %676 = vst.msk [vmem:[#allocation2 + $0xa9] sm:$0xff] %vm434_vm1, %v588_v35  ;;  %v3834_v45 = vpack.c.bf16 %v713_v38, %v712_v36 }
  0xf6   : > { %v1155_v43 = vld [vmem:[#allocation2 + $0x92] sm:$0xff]  ;;  %v3836_v46 = vpack.c.bf16 %v934_v41, %v933_v37  ;;  %v1156_v47 = vld [vmem:[#allocation2 + $0x9a] sm:$0xff]  ;;  %v3888_v41 = vpop.f32.mrf.mxu1 }
  0xf7   : > { %v3840_v50 = vpack.c.bf16 %v1156_v47, %v1155_v43  ;;  %3281 = vmatmul.msk.bf16.gmra.mxu1 %vm434_vm1, %v3834_v45  ;;  %v3892_v47 = vpop.f32.mrf.mxu2 }
  0xf8   : > { %3298 = vmatmul.msk.bf16.gmra.mxu2 %vm434_vm1, %v3836_v46  ;;  %v528_v51 = vpop.f32.mrf.mxu0 }
  0xf9   : > { %3315 = vmatmul.msk.bf16.gmra.mxu3 %vm434_vm1, %v3840_v50  ;;  %v529_v52 = vadd.f32 %v3703_v48, %v528_v51  ;;  %v3894_v51 = vpop.f32.mrf.mxu3 }
  0xfb   : > { %v589_v53 = vmax.f32 %v529_v52, 0.0 }
  0xfc   : > { %v714_v63 = vld [vmem:[#allocation2 + $0xa8] sm:$0xff] }
  0xfd   : > { %677 = vst.msk [vmem:[#allocation2 + $0xb1] sm:$0xff] %vm434_vm1, %v589_v53  ;;  %v935_v0 = vld [vmem:[#allocation2 + $0xa9] sm:$0xff] }
 0x100   : > { %v531_v57 = vpop.f32.mrf.mxu0 }
 0x101   : > { %v532_v60 = vadd.f32 %v3703_v48, %v531_v57 }
 0x103   : > { %v590_v62 = vmax.f32 %v532_v60, 0.0  ;;  %3274 = vmatmul.msk.bf16.gmra.mxu0 %vm434_vm1, %v428_v56 }
 0x104   : > { %v715_v1 = vld [vmem:[#allocation2 + $0xb0] sm:$0xff] }
 0x105   : > { %v936_v2 = vld [vmem:[#allocation2 + $0xb1] sm:$0xff]  ;;  %678 = vst.msk [vmem:[#allocation2 + $0xc1] sm:$0xff] %vm434_vm1, %v590_v62  ;;  %v3855_v7 = vpack.c.bf16 %v715_v1, %v714_v63 }
 0x106   : > { %v1157_v5 = vld [vmem:[#allocation2 + $0xaa] sm:$0xff]  ;;  %v960_v8 = vpack.c.bf16 %v936_v2, %v935_v0  ;;  %v1158_v9 = vld [vmem:[#allocation2 + $0xb2] sm:$0xff] }
 0x107   : > { %v1182_v12 = vpack.c.bf16 %v1158_v9, %v1157_v5  ;;  %3282 = vmatmul.msk.bf16.gmra.mxu1 %vm434_vm1, %v3855_v7 }
 0x108   : > { %3299 = vmatmul.msk.bf16.gmra.mxu2 %vm434_vm1, %v960_v8  ;;  %v533_v17 = vpop.f32.mrf.mxu0 }
 0x109   : > { %3316 = vmatmul.msk.bf16.gmra.mxu3 %vm434_vm1, %v1182_v12  ;;  %v534_v19 = vadd.f32 %v3703_v48, %v533_v17 }
 0x10b   : > { %v591_v20 = vmax.f32 %v534_v19, 0.0 }
 0x10c   : > { %v716_v28 = vld [vmem:[#allocation2 + $0xc0] sm:$0xff] }
 0x10d   : > { %679 = vst.msk [vmem:[#allocation2 + $0xc9] sm:$0xff] %vm434_vm1, %v591_v20  ;;  %v937_v29 = vld [vmem:[#allocation2 + $0xc1] sm:$0xff] }
 0x110   : > { %v536_v23 = vpop.f32.mrf.mxu0 }
 0x111   : > { %v537_v25 = vadd.f32 %v3703_v48, %v536_v23 }
 0x113   : > { %v592_v26 = vmax.f32 %v537_v25, 0.0  ;;  %3326 = vmatmul.msk.bf16.vlgmr.msrb.gmra.mxu0 %vm434_vm1, %v3733_v3 }
 0x114   : > { %v717_v30 = vld [vmem:[#allocation2 + $0xc8] sm:$0xff] }
 0x115   : > { %v938_v31 = vld [vmem:[#allocation2 + $0xc9] sm:$0xff]  ;;  %680 = vst.msk [vmem:[#allocation2 + $0xd9] sm:$0xff] %vm434_vm1, %v592_v26  ;;  %v3875_v33 = vpack.c.bf16 %v717_v30, %v716_v28 }
 0x116   : > { %v1159_v32 = vld [vmem:[#allocation2 + $0xc2] sm:$0xff]  ;;  %v3877_v34 = vpack.c.bf16 %v938_v31, %v937_v29  ;;  %v1160_v35 = vld [vmem:[#allocation2 + $0xca] sm:$0xff] }
 0x117   : > { %v3879_v36 = vpack.c.bf16 %v1160_v35, %v1159_v32  ;;  %3283 = vmatmul.msk.bf16.gmra.mxu1 %vm434_vm1, %v3875_v33 }
 0x118   : > { %3300 = vmatmul.msk.bf16.gmra.mxu2 %vm434_vm1, %v3877_v34  ;;  %v538_v3 = vpop.f32.mrf.mxu0 }
 0x119   : > { %3317 = vmatmul.msk.bf16.gmra.mxu3 %vm434_vm1, %v3879_v36  ;;  %v539_v37 = vadd.f32 %v3703_v48, %v538_v3 }
 0x11b   : > { %v593_v38 = vmax.f32 %v539_v37, 0.0 }
 0x11c   : > { %v718_v53 = vld [vmem:[#allocation2 + $0xd8] sm:$0xff] }
 0x11d   : > { %681 = vst.msk [vmem:[#allocation2 + $0xe1] sm:$0xff] %vm434_vm1, %v593_v38  ;;  %v939_v54 = vld [vmem:[#allocation2 + $0xd9] sm:$0xff] }
 0x120   : > { %v541_v43 = vpop.f32.mrf.mxu0 }
 0x121   : > { %v542_v44 = vadd.f32 %v3703_v48, %v541_v43 }
 0x123   : > { %v594_v52 = vmax.f32 %v542_v44, 0.0  ;;  %3327 = vmatmul.msk.bf16.gmra.mxu0 %vm434_vm1, %v3752_v21 }
 0x124   : > { %v814_v55 = vpop.f32.mrf.mxu1  ;;  %v719_v56 = vld [vmem:[#allocation2 + $0xe0] sm:$0xff] }
 0x125   : > { %v940_v57 = vld [vmem:[#allocation2 + $0xe1] sm:$0xff]  ;;  %682 = vst.msk [vmem:[#allocation2 + $0xf1] sm:$0xff] %vm434_vm1, %v594_v52  ;;  %v3899_v62 = vpack.c.bf16 %v719_v56, %v718_v53  ;;  %v891_v5 = vadd.f32 %v3828_v27, %v814_v55 }
 0x126   : > { %v1161_v60 = vld [vmem:[#allocation2 + $0xda] sm:$0xff]  ;;  %v3901_v63 = vpack.c.bf16 %v940_v57, %v939_v54  ;;  %v1162_v0 = vld [vmem:[#allocation2 + $0xe2] sm:$0xff] }
 0x127   : > { %v3903_v1 = vpack.c.bf16 %v1162_v0, %v1161_v60  ;;  %3284 = vmatmul.msk.bf16.gmra.mxu1 %vm434_vm1, %v3899_v62 }
 0x128   : > { %3301 = vmatmul.msk.bf16.gmra.mxu2 %vm434_vm1, %v3901_v63  ;;  %v543_v2 = vpop.f32.mrf.mxu0 }
 0x129   : > { %3318 = vmatmul.msk.bf16.gmra.mxu3 %vm434_vm1, %v3903_v1  ;;  %v544_v8 = vadd.f32 %v3703_v48, %v543_v2 }
 0x12b   : > { %v1036_v9 = vpop.f32.mrf.mxu2  ;;  %v595_v10 = vmax.f32 %v544_v8, 0.0 }
 0x12c   : > { %v1113_v11 = vadd.f32 %v1036_v9, %v891_v5  ;;  %v1258_v12 = vpop.f32.mrf.mxu3  ;;  %v816_v13 = vpop.f32.mrf.mxu1  ;;  %v720_v29 = vld [vmem:[#allocation2 + $0xf0] sm:$0xff] }
 0x12d   : > { %683 = vst.msk [vmem:[#allocation2 + $0xf9] sm:$0xff] %vm434_vm1, %v595_v10  ;;  %v892_v19 = vadd.f32 %v3828_v27, %v816_v13  ;;  %v941_v30 = vld [vmem:[#allocation2 + $0xf1] sm:$0xff] }
 0x12e   : > { %v3914_v14 = vadd.f32 %v1258_v12, %v1113_v11 }
 0x130   : > { %v546_v17 = vpop.f32.mrf.mxu0 }
 0x131   : > { %v547_v20 = vadd.f32 %v3703_v48, %v546_v17 }
 0x133   : > { %v1038_v23 = vpop.f32.mrf.mxu2  ;;  %v596_v25 = vmax.f32 %v547_v20, 0.0  ;;  %3328 = vmatmul.msk.bf16.gmra.mxu0 %vm434_vm1, %v3771_v39 }
 0x134   : > { %v1114_v26 = vadd.f32 %v1038_v23, %v892_v19  ;;  %v1260_v28 = vpop.f32.mrf.mxu3  ;;  %v819_v31 = vpop.f32.mrf.mxu1  ;;  %v721_v32 = vld [vmem:[#allocation2 + $0xf8] sm:$0xff] }
 0x135   : > { %v942_v35 = vld [vmem:[#allocation2 + $0xf9] sm:$0xff]  ;;  %684 = vst.msk [vmem:[#allocation2 + $0x109] sm:$0xff] %vm434_vm1, %v596_v25  ;;  %v3923_v38 = vpack.c.bf16 %v721_v32, %v720_v29  ;;  %v893_v54 = vadd.f32 %v3828_v27, %v819_v31 }
 0x136   : > { %v1163_v3 = vld [vmem:[#allocation2 + $0xf2] sm:$0xff]  ;;  %v3921_v37 = vadd.f32 %v1260_v28, %v1114_v26  ;;  %v3925_v43 = vpack.c.bf16 %v942_v35, %v941_v30  ;;  %v1164_v44 = vld [vmem:[#allocation2 + $0xfa] sm:$0xff] }
 0x137   : > { %v3927_v52 = vpack.c.bf16 %v1164_v44, %v1163_v3  ;;  %3285 = vmatmul.msk.bf16.gmra.mxu1 %vm434_vm1, %v3923_v38 }
 0x138   : > { %3302 = vmatmul.msk.bf16.gmra.mxu2 %vm434_vm1, %v3925_v43  ;;  %v548_v53 = vpop.f32.mrf.mxu0 }
 0x139   : > { %4882 = vst [vmem:[#allocation3_spill] sm:$0xff] %v3927_v52  ;;  %3319 = vmatmul.msk.bf16.gmra.mxu3 %vm434_vm1, %v3927_v52  ;;  %v549_v55 = vadd.f32 %v3703_v48, %v548_v53 }
 0x13b   : > { %v1041_v56 = vpop.f32.mrf.mxu2  ;;  %v597_v57 = vmax.f32 %v549_v55, 0.0 }
 0x13c   : > { %v1115_v60 = vadd.f32 %v1041_v56, %v893_v54  ;;  %v1263_v0 = vpop.f32.mrf.mxu3  ;;  %v821_v2 = vpop.f32.mrf.mxu1  ;;  %v722_v19 = vld [vmem:[#allocation2 + $0x108] sm:$0xff] }
 0x13d   : > { %685 = vst.msk [vmem:[#allocation2 + $0x111] sm:$0xff] %vm434_vm1, %v597_v57  ;;  %v894_v9 = vadd.f32 %v3828_v27, %v821_v2  ;;  %v943_v20 = vld [vmem:[#allocation2 + $0x109] sm:$0xff] }
 0x13e   : > { %v3938_v5 = vadd.f32 %v1263_v0, %v1115_v60 }
 0x140   : > { %v551_v8 = vpop.f32.mrf.mxu0 }
 0x141   : > { %v552_v10 = vadd.f32 %v3703_v48, %v551_v8 }
 0x143   : > { %v1043_v11 = vpop.f32.mrf.mxu2  ;;  %v598_v12 = vmax.f32 %v552_v10, 0.0  ;;  %3329 = vmatmul.msk.bf16.gmra.mxu0 %vm434_vm1, %v3790_v58 }
 0x144   : > { %v1116_v13 = vadd.f32 %v1043_v11, %v894_v9  ;;  %v1265_v17 = vpop.f32.mrf.mxu3  ;;  %v824_v23 = vpop.f32.mrf.mxu1  ;;  %v723_v25 = vld [vmem:[#allocation2 + $0x110] sm:$0xff] }
 0x145   : > { %v944_v26 = vld [vmem:[#allocation2 + $0x111] sm:$0xff]  ;;  %686 = vst.msk [vmem:[#allocation2 + $0x121] sm:$0xff] %vm434_vm1, %v598_v12  ;;  %v3947_v30 = vpack.c.bf16 %v723_v25, %v722_v19  ;;  %v895_v44 = vadd.f32 %v3828_v27, %v824_v23 }
 0x146   : > { %v1165_v28 = vld [vmem:[#allocation2 + $0x10a] sm:$0xff]  ;;  %v3945_v29 = vadd.f32 %v1265_v17, %v1116_v13  ;;  %v3949_v31 = vpack.c.bf16 %v944_v26, %v943_v20  ;;  %v1166_v32 = vld [vmem:[#allocation2 + $0x112] sm:$0xff] }
 0x147   : > { %v3951_v35 = vpack.c.bf16 %v1166_v32, %v1165_v28  ;;  %3286 = vmatmul.msk.bf16.gmra.mxu1 %vm434_vm1, %v3947_v30 }
 0x148   : > { %4883 = vst [vmem:[#allocation4_spill] sm:$0xff] %v3949_v31  ;;  %3303 = vmatmul.msk.bf16.gmra.mxu2 %vm434_vm1, %v3949_v31  ;;  %v553_v3 = vpop.f32.mrf.mxu0 }
 0x149   : > { %4884 = vst [vmem:[#allocation5_spill] sm:$0xff] %v3951_v35  ;;  %3320 = vmatmul.msk.bf16.gmra.mxu3 %vm434_vm1, %v3951_v35  ;;  %v554_v53 = vadd.f32 %v3703_v48, %v553_v3 }
 0x14b   : > { %v1046_v54 = vpop.f32.mrf.mxu2  ;;  %v599_v55 = vmax.f32 %v554_v53, 0.0 }
 0x14c   : > { %v1117_v56 = vadd.f32 %v1046_v54, %v895_v44  ;;  %v1268_v57 = vpop.f32.mrf.mxu3  ;;  %v826_v60 = vpop.f32.mrf.mxu1  ;;  %v724_v17 = vld [vmem:[#allocation2 + $0x120] sm:$0xff] }
 0x14d   : > { %687 = vst.msk [vmem:[#allocation2 + $0x129] sm:$0xff] %vm434_vm1, %v599_v55  ;;  %v896_v8 = vadd.f32 %v3828_v27, %v826_v60  ;;  %v945_v19 = vld [vmem:[#allocation2 + $0x121] sm:$0xff] }
 0x14e   : > { %v3962_v0 = vadd.f32 %v1268_v57, %v1117_v56 }
 0x150   : > { %v556_v2 = vpop.f32.mrf.mxu0 }
 0x151   : > { %v557_v9 = vadd.f32 %v3703_v48, %v556_v2 }
 0x153   : > { %v1048_v10 = vpop.f32.mrf.mxu2  ;;  %v600_v11 = vmax.f32 %v557_v9, 0.0  ;;  %3330 = vmatmul.msk.bf16.gmra.mxu0 %vm434_vm1, %v3809_v15 }
 0x154   : > { %v1118_v12 = vadd.f32 %v1048_v10, %v896_v8  ;;  %v1270_v13 = vpop.f32.mrf.mxu3  ;;  %v829_v20 = vpop.f32.mrf.mxu1  ;;  %v725_v23 = vld [vmem:[#allocation2 + $0x128] sm:$0xff] }
 0x155   : > { %v946_v25 = vld [vmem:[#allocation2 + $0x129] sm:$0xff]  ;;  %688 = vst.msk [vmem:[#allocation2 + $0x139] sm:$0xff] %vm434_vm1, %v600_v11  ;;  %v3971_v32 = vpack.c.bf16 %v725_v23, %v724_v17  ;;  %v897_v55 = vadd.f32 %v3828_v27, %v829_v20 }
 0x156   : > { %v1167_v26 = vld [vmem:[#allocation2 + $0x122] sm:$0xff]  ;;  %v3969_v28 = vadd.f32 %v1270_v13, %v1118_v12  ;;  %v3973_v3 = vpack.c.bf16 %v946_v25, %v945_v19  ;;  %v1168_v44 = vld [vmem:[#allocation2 + $0x12a] sm:$0xff] }
 0x157   : > { %v3975_v53 = vpack.c.bf16 %v1168_v44, %v1167_v26  ;;  %3287 = vmatmul.msk.bf16.gmra.mxu1 %vm434_vm1, %v3971_v32 }
 0x158   : > { %4885 = vst [vmem:[#allocation6_spill] sm:$0xff] %v3973_v3  ;;  %3304 = vmatmul.msk.bf16.gmra.mxu2 %vm434_vm1, %v3973_v3  ;;  %v558_v54 = vpop.f32.mrf.mxu0 }
 0x159   : > { %4886 = vst [vmem:[#allocation7_spill] sm:$0xff] %v3975_v53  ;;  %3321 = vmatmul.msk.bf16.gmra.mxu3 %vm434_vm1, %v3975_v53  ;;  %v559_v56 = vadd.f32 %v3703_v48, %v558_v54 }
 0x15b   : > { %v1051_v57 = vpop.f32.mrf.mxu2  ;;  %v601_v60 = vmax.f32 %v559_v56, 0.0 }
 0x15c   : > { %v1119_v2 = vadd.f32 %v1051_v57, %v897_v55  ;;  %v1273_v8 = vpop.f32.mrf.mxu3  ;;  %v831_v9 = vpop.f32.mrf.mxu1  ;;  %v726_v25 = vld [vmem:[#allocation2 + $0x138] sm:$0xff] }
 0x15d   : > { %689 = vst.msk [vmem:[#allocation2 + $0x141] sm:$0xff] %vm434_vm1, %v601_v60  ;;  %v898_v12 = vadd.f32 %v3828_v27, %v831_v9  ;;  %v947_v26 = vld [vmem:[#allocation2 + $0x139] sm:$0xff] }
 0x15e   : > { %v3986_v10 = vadd.f32 %v1273_v8, %v1119_v2 }
 0x160   : > { %v561_v11 = vpop.f32.mrf.mxu0 }
 0x161   : > { %v562_v13 = vadd.f32 %v3703_v48, %v561_v11 }
 0x163   : > { %v1053_v17 = vpop.f32.mrf.mxu2  ;;  %v602_v19 = vmax.f32 %v562_v13, 0.0  ;;  %3331 = vmatmul.msk.bf16.gmra.mxu0 %vm434_vm1, %v3834_v45 }
 0x164   : > { %v1120_v23 = vadd.f32 %v1053_v17, %v898_v12  ;;  %v1275_v20 = vpop.f32.mrf.mxu3  ;;  %v834_v44 = vpop.f32.mrf.mxu1  ;;  %v727_v54 = vld [vmem:[#allocation2 + $0x140] sm:$0xff] }
 0x165   : > { %v948_v55 = vld [vmem:[#allocation2 + $0x141] sm:$0xff]  ;;  %690 = vst.msk [vmem:[#allocation2 + $0x151] sm:$0xff] %vm434_vm1, %v602_v19  ;;  %v3995_v60 = vpack.c.bf16 %v727_v54, %v726_v25  ;;  %v899_v12 = vadd.f32 %v3828_v27, %v834_v44 }
 0x166   : > { %v1169_v56 = vld [vmem:[#allocation2 + $0x13a] sm:$0xff]  ;;  %v3993_v57 = vadd.f32 %v1275_v20, %v1120_v23  ;;  %v3997_v2 = vpack.c.bf16 %v948_v55, %v947_v26  ;;  %v1170_v8 = vld [vmem:[#allocation2 + $0x142] sm:$0xff] }
 0x167   : > { %v3999_v9 = vpack.c.bf16 %v1170_v8, %v1169_v56  ;;  %3288 = vmatmul.msk.bf16.gmra.mxu1 %vm434_vm1, %v3995_v60 }
 0x168   : > { %4887 = vst [vmem:[#allocation8_spill] sm:$0xff] %v3997_v2  ;;  %3305 = vmatmul.msk.bf16.gmra.mxu2 %vm434_vm1, %v3997_v2  ;;  %v563_v11 = vpop.f32.mrf.mxu0 }
 0x169   : > { %4888 = vst [vmem:[#allocation9_spill] sm:$0xff] %v3999_v9  ;;  %3322 = vmatmul.msk.bf16.gmra.mxu3 %vm434_vm1, %v3999_v9  ;;  %v564_v13 = vadd.f32 %v3703_v48, %v563_v11 }
 0x16b   : > { %v1056_v17 = vpop.f32.mrf.mxu2  ;;  %v603_v19 = vmax.f32 %v564_v13, 0.0 }
 0x16c   : > { %v1121_v23 = vadd.f32 %v1056_v17, %v899_v12  ;;  %v1278_v20 = vpop.f32.mrf.mxu3  ;;  %v836_v25 = vpop.f32.mrf.mxu1  ;;  %v728_v11 = vld [vmem:[#allocation2 + $0x150] sm:$0xff] }
 0x16d   : > { %691 = vst.msk [vmem:[#allocation2 + $0x159] sm:$0xff] %vm434_vm1, %v603_v19  ;;  %v900_v55 = vadd.f32 %v3828_v27, %v836_v25  ;;  %v949_v12 = vld [vmem:[#allocation2 + $0x151] sm:$0xff] }
 0x16e   : > { %v4010_v26 = vadd.f32 %v1278_v20, %v1121_v23 }
 0x170   : > { %v566_v54 = vpop.f32.mrf.mxu0 }
 0x171   : > { %v567_v56 = vadd.f32 %v3703_v48, %v566_v54 }
 0x173   : > { %v1058_v8 = vpop.f32.mrf.mxu2  ;;  %v604_v9 = vmax.f32 %v567_v56, 0.0  ;;  %3332 = vmatmul.msk.bf16.gmra.mxu0 %vm434_vm1, %v3855_v7 }
 0x174   : > { %v1122_v2 = vadd.f32 %v1058_v8, %v900_v55  ;;  %v1280_v44 = vpop.f32.mrf.mxu3  ;;  %v839_v13 = vpop.f32.mrf.mxu1  ;;  %v729_v17 = vld [vmem:[#allocation2 + $0x158] sm:$0xff]  ;;  %v3393_v55 = vld [vmem:[%s4864_s4 + $0xe] sm:$0x3] }
 0x175   : > { %v950_v53 = vld [vmem:[#allocation2 + $0x159] sm:$0xff]  ;;  %692 = vst.msk [vmem:[#allocation2 + $0x169] sm:$0xff] %vm434_vm1, %v604_v9  ;;  %v4019_v20 = vpack.c.bf16 %v729_v17, %v728_v11  ;;  %v2353_v8 = vsel %vm483_vm0, %v3393_v55, 0  ;;  %v901_v9 = vadd.f32 %v3828_v27, %v839_v13 }
 0x176   : > { %v1171_v19 = vld [vmem:[#allocation2 + $0x152] sm:$0xff]  ;;  %v4017_v23 = vadd.f32 %v1280_v44, %v1122_v2  ;;  %v4021_v25 = vpack.c.bf16 %v950_v53, %v949_v12  ;;  %v1172_v54 = vld [vmem:[#allocation2 + $0x15a] sm:$0xff]  ;;  %2362 = vmatpush.bf16.msra.mxu0 %v2353_v8  ;;  %v3410_v2 = vld [vmem:[%s4864_s4 + $0x10] sm:$0x3] }
 0x177   : > { %v4026_v56 = vpack.c.bf16 %v1172_v54, %v1171_v19  ;;  %3289 = vmatmul.msk.bf16.gmra.mxu1 %vm434_vm1, %v4019_v20  ;;  %v2575_v11 = vsel %vm483_vm0, %v3410_v2, 0 }
 0x178   : > { %4889 = vst [vmem:[#allocation10_spill] sm:$0xff] %v4021_v25  ;;  %3306 = vmatmul.msk.bf16.gmra.mxu2 %vm434_vm1, %v4021_v25  ;;  %v568_v53 = vpop.f32.mrf.mxu0  ;;  %2584 = vmatpush.bf16.msra.mxu1 %v2575_v11 }
 0x179   : > { %4890 = vst [vmem:[#allocation11_spill] sm:$0xff] %v4026_v56  ;;  %3323 = vmatmul.msk.bf16.gmra.mxu3 %vm434_vm1, %v4026_v56  ;;  %v569_v44 = vadd.f32 %v3703_v48, %v568_v53 }
 0x17b   : > { %v1061_v12 = vpop.f32.mrf.mxu2  ;;  %v605_v17 = vmax.f32 %v569_v44, 0.0 }
 0x17c   : > { %v1123_v19 = vadd.f32 %v1061_v12, %v901_v9  ;;  %v1283_v54 = vpop.f32.mrf.mxu3  ;;  %v841_v55 = vpop.f32.mrf.mxu1  ;;  %v730_v2 = vld [vmem:[#allocation2 + $0x168] sm:$0xff] }
 0x17d   : > { %693 = vst.msk [vmem:[#allocation2 + $0x171] sm:$0xff] %vm434_vm1, %v605_v17  ;;  %v902_v25 = vadd.f32 %v3828_v27, %v841_v55  ;;  %v951_v9 = vld [vmem:[#allocation2 + $0x169] sm:$0xff] }
 0x17e   : > { %v4042_v56 = vadd.f32 %v1283_v54, %v1123_v19 }
 0x180   : > { %v571_v8 = vpop.f32.mrf.mxu0 }
 0x181   : > { %v572_v3 = vadd.f32 %v3703_v48, %v571_v8 }
 0x183   : > { %v1063_v13 = vpop.f32.mrf.mxu2  ;;  %v606_v35 = vmax.f32 %v572_v3, 0.0  ;;  %3333 = vmatmul.msk.bf16.gmra.mxu0 %vm434_vm1, %v3875_v33 }
 0x184   : > { %v1124_v53 = vadd.f32 %v1063_v13, %v902_v25  ;;  %v1285_v31 = vpop.f32.mrf.mxu3  ;;  %v844_v44 = vpop.f32.mrf.mxu1  ;;  %v731_v11 = vld [vmem:[#allocation2 + $0x170] sm:$0xff] }
 0x185   : > { %v952_v12 = vld [vmem:[#allocation2 + $0x171] sm:$0xff]  ;;  %694 = vst.msk [vmem:[#allocation2 + $0x181] sm:$0xff] %vm434_vm1, %v606_v35  ;;  %v4051_v54 = vpack.c.bf16 %v731_v11, %v730_v2 }
 0x186   : > { %v1173_v17 = vld [vmem:[#allocation2 + $0x16a] sm:$0xff]  ;;  %v4049_v19 = vadd.f32 %v1285_v31, %v1124_v53  ;;  %v4053_v55 = vpack.c.bf16 %v952_v12, %v951_v9  ;;  %v1174_v3 = vld [vmem:[#allocation2 + $0x172] sm:$0xff]  ;;  %v903_v31 = vadd.f32 %v3828_v27, %v844_v44 }
 0x187   : > { %v4055_v25 = vpack.c.bf16 %v1174_v3, %v1173_v17  ;;  %3290 = vmatmul.msk.bf16.gmra.mxu1 %vm434_vm1, %v4051_v54 }
 0x188   : > { %4891 = vst [vmem:[#allocation12_spill] sm:$0xff] %v4053_v55  ;;  %3307 = vmatmul.msk.bf16.gmra.mxu2 %vm434_vm1, %v4053_v55  ;;  %v573_v8 = vpop.f32.mrf.mxu0 }
 0x189   : > { %4892 = vst [vmem:[#allocation13_spill] sm:$0xff] %v4055_v25  ;;  %3324 = vmatmul.msk.bf16.gmra.mxu3 %vm434_vm1, %v4055_v25  ;;  %v574_v35 = vadd.f32 %v3703_v48, %v573_v8 }
 0x18b   : > { %v1066_v13 = vpop.f32.mrf.mxu2  ;;  %v607_v53 = vmax.f32 %v574_v35, 0.0 }
 0x18c   : > { %v1125_v2 = vadd.f32 %v1066_v13, %v903_v31  ;;  %v1288_v9 = vpop.f32.mrf.mxu3  ;;  %v846_v11 = vpop.f32.mrf.mxu1 }
 0x18d   : > { %695 = vst.msk [vmem:[#allocation2 + $0x189] sm:$0xff] %vm434_vm1, %v607_v53  ;;  %v904_v3 = vadd.f32 %v3828_v27, %v846_v11 }
 0x18e   : > { %v4066_v12 = vadd.f32 %v1288_v9, %v1125_v2 }
 0x190   : > { %v1475_v17 = vpop.f32.mrf.mxu0 }
 0x191   : > { %v4070_v55 = vadd.f32 %v1475_v17, %v3838_v49 }
 0x193   : > { %v1068_v25 = vpop.f32.mrf.mxu2  ;;  %3334 = vmatmul.msk.bf16.gmra.mxu0 %vm434_vm1, %v3899_v62 }
 0x194   : > { %v1126_v52 = vadd.f32 %v1068_v25, %v904_v3  ;;  %v1290_v44 = vpop.f32.mrf.mxu3  ;;  %v849_v48 = vpop.f32.mrf.mxu1 }
 0x195   : > { %v905_v25 = vadd.f32 %v3828_v27, %v849_v48 }
 0x196   : > { %v4074_v8 = vadd.f32 %v1290_v44, %v1126_v52 }
 0x197   : > { %3343 = vmatmul.msk.bf16.vlgmr.msrb.gmra.mxu1 %vm434_vm1, %v3735_v4 }
 0x198   : > { %3360 = vmatmul.msk.bf16.vlgmr.msrb.gmra.mxu2 %vm434_vm1, %v3737_v6  ;;  %v4082_v49 = vpop.f32.mrf.mxu0 }
 0x199   : > { %3377 = vmatmul.msk.bf16.vlgmr.msrb.gmra.mxu3 %vm434_vm1, %v3752_v21 }
 0x19b   : > { %v1071_v31 = vpop.f32.mrf.mxu2 }
 0x19c   : > { %v1127_v35 = vadd.f32 %v1071_v31, %v905_v25  ;;  %v1293_v13 = vpop.f32.mrf.mxu3  ;;  %v851_v53 = vpop.f32.mrf.mxu1 }
 0x19d   : > { %v906_v9 = vadd.f32 %v3828_v27, %v851_v53 }
 0x19e   : > { %v4085_v2 = vadd.f32 %v1293_v13, %v1127_v35 }
 0x1a0   : > { %v1480_v52 = vpop.f32.mrf.mxu0 }
 0x1a1   : > { %v4089_v4 = vadd.f32 %v1480_v52, %v3914_v14 }
 0x1a3   : > { %v1073_v6 = vpop.f32.mrf.mxu2  ;;  %3335 = vmatmul.msk.bf16.gmra.mxu0 %vm434_vm1, %v3923_v38 }
 0x1a4   : > { %v1128_v11 = vadd.f32 %v1073_v6, %v906_v9  ;;  %v1295_v17 = vpop.f32.mrf.mxu3  ;;  %v854_v21 = vpop.f32.mrf.mxu1 }
 0x1a5   : > { %v907_v44 = vadd.f32 %v3828_v27, %v854_v21 }
 0x1a6   : > { %v4093_v3 = vadd.f32 %v1295_v17, %v1128_v11 }
 0x1a7   : > { %3344 = vmatmul.msk.bf16.gmra.mxu1 %vm434_vm1, %v3754_v22 }
 0x1a8   : > { %3361 = vmatmul.msk.bf16.gmra.mxu2 %vm434_vm1, %v3756_v24  ;;  %v1482_v14 = vpop.f32.mrf.mxu0 }
 0x1a9   : > { %3378 = vmatmul.msk.bf16.gmra.mxu3 %vm434_vm1, %v3771_v39  ;;  %v4103_v48 = vadd.f32 %v1482_v14, %v3921_v37 }
 0x1ab   : > { %v1076_v25 = vpop.f32.mrf.mxu2 }
 0x1ac   : > { %v1129_v31 = vadd.f32 %v1076_v25, %v907_v44  ;;  %v1298_v35 = vpop.f32.mrf.mxu3  ;;  %v856_v13 = vpop.f32.mrf.mxu1 }
 0x1ad   : > { %v908_v22 = vadd.f32 %v3828_v27, %v856_v13 }
 0x1ae   : > { %v4105_v53 = vadd.f32 %v1298_v35, %v1129_v31 }
 0x1b0   : > { %v1485_v52 = vpop.f32.mrf.mxu0 }
 0x1b1   : > { %v4109_v24 = vadd.f32 %v1485_v52, %v3938_v5 }
 0x1b3   : > { %v1078_v9 = vpop.f32.mrf.mxu2  ;;  %3336 = vmatmul.msk.bf16.gmra.mxu0 %vm434_vm1, %v3947_v30 }
 0x1b4   : > { %v1130_v39 = vadd.f32 %v1078_v9, %v908_v22  ;;  %v1300_v6 = vpop.f32.mrf.mxu3  ;;  %v859_v37 = vpop.f32.mrf.mxu1 }
 0x1b5   : > { %v909_v17 = vadd.f32 %v3828_v27, %v859_v37 }
 0x1b6   : > { %v4113_v11 = vadd.f32 %v1300_v6, %v1130_v39 }
 0x1b7   : > { %3345 = vmatmul.msk.bf16.gmra.mxu1 %vm434_vm1, %v3773_v40 }
 0x1b8   : > { %3362 = vmatmul.msk.bf16.gmra.mxu2 %vm434_vm1, %v3775_v42  ;;  %v1487_v5 = vpop.f32.mrf.mxu0 }
 0x1b9   : > { %3379 = vmatmul.msk.bf16.gmra.mxu3 %vm434_vm1, %v3790_v58  ;;  %v4123_v21 = vadd.f32 %v1487_v5, %v3945_v29 }
 0x1bb   : > { %v1081_v14 = vpop.f32.mrf.mxu2 }
 0x1bc   : > { %v1131_v44 = vadd.f32 %v1081_v14, %v909_v17  ;;  %v1303_v25 = vpop.f32.mrf.mxu3  ;;  %v861_v31 = vpop.f32.mrf.mxu1 }
 0x1bd   : > { %v910_v40 = vadd.f32 %v3828_v27, %v861_v31 }
 0x1be   : > { %v4125_v35 = vadd.f32 %v1303_v25, %v1131_v44 }
 0x1c0   : > { %v1490_v13 = vpop.f32.mrf.mxu0 }
 0x1c1   : > { %v4129_v42 = vadd.f32 %v1490_v13, %v3962_v0 }
 0x1c3   : > { %v1083_v52 = vpop.f32.mrf.mxu2  ;;  %3337 = vmatmul.msk.bf16.gmra.mxu0 %vm434_vm1, %v3971_v32 }
 0x1c4   : > { %v1132_v58 = vadd.f32 %v1083_v52, %v910_v40  ;;  %v1305_v22 = vpop.f32.mrf.mxu3  ;;  %v864_v29 = vpop.f32.mrf.mxu1 }
 0x1c5   : > { %v911_v39 = vadd.f32 %v3828_v27, %v864_v29 }
 0x1c6   : > { %v4133_v9 = vadd.f32 %v1305_v22, %v1132_v58 }
 0x1c7   : > { %3346 = vmatmul.msk.bf16.gmra.mxu1 %vm434_vm1, %v3792_v59 }
 0x1c8   : > { %3363 = vmatmul.msk.bf16.gmra.mxu2 %vm434_vm1, %v3794_v61  ;;  %v1492_v0 = vpop.f32.mrf.mxu0 }
 0x1c9   : > { %3380 = vmatmul.msk.bf16.gmra.mxu3 %vm434_vm1, %v3809_v15  ;;  %v4143_v6 = vadd.f32 %v1492_v0, %v3969_v28 }
 0x1cb   : > { %v1086_v37 = vpop.f32.mrf.mxu2 }
 0x1cc   : > { %v1133_v5 = vadd.f32 %v1086_v37, %v911_v39  ;;  %v1308_v17 = vpop.f32.mrf.mxu3  ;;  %v866_v14 = vpop.f32.mrf.mxu1 }
 0x1cd   : > { %v912_v59 = vadd.f32 %v3828_v27, %v866_v14 }
 0x1ce   : > { %v4145_v44 = vadd.f32 %v1308_v17, %v1133_v5 }
 0x1d0   : > { %v1495_v25 = vpop.f32.mrf.mxu0 }
 0x1d1   : > { %v4149_v61 = vadd.f32 %v1495_v25, %v3986_v10 }
 0x1d3   : > { %v1088_v31 = vpop.f32.mrf.mxu2  ;;  %3338 = vmatmul.msk.bf16.gmra.mxu0 %vm434_vm1, %v3995_v60 }
 0x1d4   : > { %v1134_v15 = vadd.f32 %v1088_v31, %v912_v59  ;;  %v1310_v13 = vpop.f32.mrf.mxu3  ;;  %v869_v28 = vpop.f32.mrf.mxu1 }
 0x1d5   : > { %v913_v52 = vadd.f32 %v3828_v27, %v869_v28 }
 0x1d6   : > { %v4153_v40 = vadd.f32 %v1310_v13, %v1134_v15 }
 0x1d7   : > { %3347 = vmatmul.msk.bf16.gmra.mxu1 %vm434_vm1, %v3811_v16 }
 0x1d8   : > { %3364 = vmatmul.msk.bf16.gmra.mxu2 %vm434_vm1, %v3813_v18  ;;  %v1497_v10 = vpop.f32.mrf.mxu0 }
 0x1d9   : > { %3381 = vmatmul.msk.bf16.gmra.mxu3 %vm434_vm1, %v3834_v45  ;;  %v4163_v58 = vadd.f32 %v1497_v10, %v3993_v57 }
 0x1db   : > { %v1091_v22 = vpop.f32.mrf.mxu2 }
 0x1dc   : > { %v1135_v29 = vadd.f32 %v1091_v22, %v913_v52  ;;  %v1313_v0 = vpop.f32.mrf.mxu3  ;;  %v871_v39 = vpop.f32.mrf.mxu1 }
 0x1dd   : > { %v914_v16 = vadd.f32 %v3828_v27, %v871_v39  ;;  %v1822_v39 = vld [vmem:[#allocation2 + $0xb2] sm:$0xff] }
 0x1de   : > { %v4165_v37 = vadd.f32 %v1313_v0, %v1135_v29  ;;  %v1821_v0 = vld [vmem:[#allocation2 + $0xaa] sm:$0xff] }
 0x1e0   : > { %v1500_v5 = vpop.f32.mrf.mxu0 }
 0x1e1   : > { %v4169_v18 = vadd.f32 %v1500_v5, %v4010_v26 }
 0x1e3   : > { %v1093_v17 = vpop.f32.mrf.mxu2  ;;  %3339 = vmatmul.msk.bf16.gmra.mxu0 %vm434_vm1, %v4019_v20 }
 0x1e4   : > { %v1136_v45 = vadd.f32 %v1093_v17, %v914_v16  ;;  %v1315_v14 = vpop.f32.mrf.mxu3  ;;  %v874_v57 = vpop.f32.mrf.mxu1  ;;  %v1599_v17 = vld [vmem:[#allocation2 + $0xa9] sm:$0xff] }
 0x1e5   : > { %v915_v59 = vadd.f32 %v3828_v27, %v874_v57  ;;  %v4197_v57 = vpack.c.bf16 %v1822_v39, %v1821_v0 }
 0x1e6   : > { %v4173_v25 = vadd.f32 %v1315_v14, %v1136_v45 }
 0x1e7   : > { %3348 = vmatmul.msk.bf16.gmra.mxu1 %vm434_vm1, %v3836_v46 }
 0x1e8   : > { %3365 = vmatmul.msk.bf16.gmra.mxu2 %vm434_vm1, %v3840_v50  ;;  %v1502_v26 = vpop.f32.mrf.mxu0 }
 0x1e9   : > { %3382 = vmatmul.msk.bf16.gmra.mxu3 %vm434_vm1, %v3855_v7  ;;  %v4183_v31 = vadd.f32 %v1502_v26, %v4017_v23  ;;  %v1600_v7 = vld [vmem:[#allocation2 + $0xb1] sm:$0xff] }
 0x1ea   : > { %v4195_v14 = vpack.c.bf16 %v1600_v7, %v1599_v17 }
 0x1eb   : > { %v1096_v15 = vpop.f32.mrf.mxu2 }
 0x1ec   : > { %v1137_v13 = vadd.f32 %v1096_v15, %v915_v59  ;;  %v1318_v28 = vpop.f32.mrf.mxu3  ;;  %v876_v10 = vpop.f32.mrf.mxu1 }
 0x1ed   : > { %v916_v46 = vadd.f32 %v3828_v27, %v876_v10 }
 0x1ee   : > { %v4185_v52 = vadd.f32 %v1318_v28, %v1137_v13 }
 0x1f0   : > { %v1505_v22 = vpop.f32.mrf.mxu0 }
 0x1f1   : > { %v4189_v50 = vadd.f32 %v1505_v22, %v4042_v56  ;;  %v1395_v22 = vld [vmem:[#allocation2 + $0x180] sm:$0xff] }
 0x1f3   : > { %v1098_v29 = vpop.f32.mrf.mxu2  ;;  %3340 = vmatmul.msk.bf16.gmra.mxu0 %vm434_vm1, %v4051_v54 }
 0x1f4   : > { %v1138_v5 = vadd.f32 %v1098_v29, %v916_v46  ;;  %v1320_v16 = vpop.f32.mrf.mxu3  ;;  %v879_v23 = vpop.f32.mrf.mxu1  ;;  %v1396_v46 = vld [vmem:[#allocation2 + $0x188] sm:$0xff] }
 0x1f5   : > { %v917_v26 = vadd.f32 %v3828_v27, %v879_v23  ;;  %v4211_v7 = vpack.c.bf16 %v1396_v46, %v1395_v22 }
 0x1f6   : > { %v4193_v45 = vadd.f32 %v1320_v16, %v1138_v5 }
 0x1f7   : > { %3349 = vmatmul.msk.bf16.gmra.mxu1 %vm434_vm1, %v4195_v14 }
 0x1f8   : > { %3366 = vmatmul.msk.bf16.gmra.mxu2 %vm434_vm1, %v4197_v57  ;;  %v1507_v56 = vpop.f32.mrf.mxu0 }
 0x1f9   : > { %3383 = vmatmul.msk.bf16.gmra.mxu3 %vm434_vm1, %v3875_v33  ;;  %v4207_v59 = vadd.f32 %v1507_v56, %v4049_v19  ;;  %v2746_v56 = vld [vmem:[%s4866_s6] sm:$0x3] }
 0x1fb   : > { %v1101_v15 = vpop.f32.mrf.mxu2 }
 0x1fc   : > { %v1139_v13 = vadd.f32 %v1101_v15, %v917_v26  ;;  %v1323_v28 = vpop.f32.mrf.mxu3  ;;  %v881_v10 = vpop.f32.mrf.mxu1  ;;  %v2939_v26 = vld [vmem:[%s4868_s8] sm:$0x3] }
 0x1fd   : > { %v918_v39 = vadd.f32 %v3828_v27, %v881_v10  ;;  %v2993_v15 = vsel %vm483_vm0, %v2939_v26, 0 }
 0x1fe   : > { %v4209_v29 = vadd.f32 %v1323_v28, %v1139_v13  ;;  %3002 = vmatpush.bf16.msra.mxu3 %v2993_v15 }
 0x200   : > { %v1510_v0 = vpop.f32.mrf.mxu0 }
 0x201   : > { %v4215_v33 = vadd.f32 %v1510_v0, %v4066_v12  ;;  %v2800_v12 = vsel %vm483_vm0, %v2746_v56, 0 }
 0x202   : > { %2809 = vmatpush.bf16.msra.mxu2 %v2800_v12 }
 0x203   : > { %v1103_v5 = vpop.f32.mrf.mxu2  ;;  %3341 = vmatmul.msk.bf16.gmra.mxu0 %vm434_vm1, %v4211_v7 }
 0x204   : > { %v1140_v16 = vadd.f32 %v1103_v5, %v918_v39  ;;  %v1325_v19 = vpop.f32.mrf.mxu3  ;;  %v884_v23 = vpop.f32.mrf.mxu1 }
 0x205   : > { %v919_v28 = vadd.f32 %v3828_v27, %v884_v23 }
 0x206   : > { %v4219_v17 = vadd.f32 %v1325_v19, %v1140_v16 }
 0x207   : > { %3350 = vmatmul.msk.bf16.gmra.mxu1 %vm434_vm1, %v3877_v34  ;;  %v2255_v34 = vld [vmem:[#allocation2 + $0x39] sm:$0xff] }
 0x208   : > { %3367 = vmatmul.msk.bf16.gmra.mxu2 %vm434_vm1, %v3879_v36  ;;  %v1512_v13 = vpop.f32.mrf.mxu0  ;;  %v2254_v36 = vld [vmem:[#allocation2 + $0x31] sm:$0xff] }
 0x209   : > { %3384 = vmatmul.msk.bf16.gmra.mxu3 %vm434_vm1, %v3899_v62  ;;  %v4237_v10 = vadd.f32 %v1512_v13, %v4074_v8  ;;  %v890_v62 = vadd.f32 %v3828_v27, %v3888_v41  ;;  %v2286_v8 = vpack.c.bf16 %v2255_v34, %v2254_v36  ;;  %v2256_v36 = vld [vmem:[#allocation2 + $0x49] sm:$0xff] }
 0x20b   : > { %v1106_v22 = vpop.f32.mrf.mxu2  ;;  %v1112_v13 = vadd.f32 %v3892_v47, %v890_v62 }
 0x20c   : > { %v1141_v46 = vadd.f32 %v1106_v22, %v919_v28  ;;  %v1328_v0 = vpop.f32.mrf.mxu3  ;;  %v886_v39 = vpop.f32.mrf.mxu1 }
 0x20d   : > { %v920_v19 = vadd.f32 %v3828_v27, %v886_v39  ;;  %v1334_v41 = vadd.f32 %v3894_v51, %v1112_v13 }
 0x20e   : > { %v4239_v5 = vadd.f32 %v1328_v0, %v1141_v46 }
 0x20f   : > { %v1556_v46 = vadd.f32 %v4082_v49, %v1334_v41 }
 0x210   : > { %v1515_v16 = vpop.f32.mrf.mxu0 }
 0x211   : > { %v4245_v23 = vadd.f32 %v1515_v16, %v4085_v2  ;;  %v2257_v16 = vld [vmem:[#allocation2 + $0x51] sm:$0xff] }
 0x212   : > { %v2287_v62 = vpack.c.bf16 %v2257_v16, %v2256_v36  ;;  %v4894_v36 = vld [vmem:[#allocation4_spill] sm:$0xff] }
 0x213   : > { %v1108_v56 = vpop.f32.mrf.mxu2  ;;  %3394 = vmatmul.msk.bf16.vlgmr.msra.gmra.mxu0 %vm434_vm1, %v2286_v8 }
 0x214   : > { %v1142_v26 = vadd.f32 %v1108_v56, %v920_v19  ;;  %v1330_v12 = vpop.f32.mrf.mxu3  ;;  %v1697_v15 = vpop.f32.mrf.mxu1 }
 0x215   : > { %v1777_v22 = vadd.f32 %v1697_v15, %v4070_v55 }
 0x216   : > { %v4249_v28 = vadd.f32 %v1330_v12, %v1142_v26  ;;  %v4893_v26 = vld [vmem:[#allocation3_spill] sm:$0xff] }
 0x217   : > { %3351 = vmatmul.msk.bf16.gmra.mxu1 %vm434_vm1, %v3901_v63 }
 0x218   : > { %3368 = vmatmul.msk.bf16.gmra.mxu2 %vm434_vm1, %v3903_v1  ;;  %v1517_v27 = vpop.f32.mrf.mxu0 }
 0x219   : > { %3385 = vmatmul.msk.bf16.gmra.mxu3 %vm434_vm1, %v3923_v38  ;;  %v4260_v2 = vadd.f32 %v1517_v27, %v4093_v3 }
 0x21b   : > { %v1919_v47 = vpop.f32.mrf.mxu2 }
 0x21c   : > { %v1999_v0 = vadd.f32 %v1919_v47, %v1777_v22  ;;  %v2142_v55 = vpop.f32.mrf.mxu3  ;;  %v1699_v39 = vpop.f32.mrf.mxu1  ;;  %v2259_v47 = vld [vmem:[#allocation2 + $0x69] sm:$0xff] }
 0x21d   : > { %v1778_v63 = vadd.f32 %v1699_v39, %v1556_v46  ;;  %v2258_v46 = vld [vmem:[#allocation2 + $0x61] sm:$0xff] }
 0x21e   : > { %v4263_v34 = vadd.f32 %v2142_v55, %v1999_v0  ;;  %v2288_v55 = vpack.c.bf16 %v2259_v47, %v2258_v46  ;;  %v4896_v46 = vld [vmem:[#allocation6_spill] sm:$0xff] }
 0x220   : > { %v1520_v1 = vpop.f32.mrf.mxu0 }
 0x221   : > { %v4266_v38 = vadd.f32 %v1520_v1, %v4105_v53 }
 0x223   : > { %v1921_v51 = vpop.f32.mrf.mxu2  ;;  %3395 = vmatmul.msk.bf16.gmra.mxu0 %vm434_vm1, %v2287_v62 }
 0x224   : > { %v2000_v19 = vadd.f32 %v1921_v51, %v1778_v63  ;;  %v2144_v3 = vpop.f32.mrf.mxu3  ;;  %v1702_v8 = vpop.f32.mrf.mxu1 }
 0x225   : > { %v1779_v56 = vadd.f32 %v1702_v8, %v4089_v4 }
 0x226   : > { %v4269_v49 = vadd.f32 %v2144_v3, %v2000_v19 }
 0x227   : > { %3352 = vmatmul.msk.bf16.gmra.mxu1 %vm434_vm1, %v3925_v43 }
 0x228   : > { %3369 = vmatmul.msk.bf16.gmra.mxu2 %vm434_vm1, %v4893_v26  ;;  %v1522_v53 = vpop.f32.mrf.mxu0  ;;  %v2261_v26 = vld [vmem:[#allocation2 + $0x81] sm:$0xff] }
 0x229   : > { %3386 = vmatmul.msk.bf16.gmra.mxu3 %vm434_vm1, %v3947_v30  ;;  %v4279_v12 = vadd.f32 %v1522_v53, %v4113_v11 }
 0x22b   : > { %v1924_v15 = vpop.f32.mrf.mxu2 }
 0x22c   : > { %v2001_v13 = vadd.f32 %v1924_v15, %v1779_v56  ;;  %v2147_v22 = vpop.f32.mrf.mxu3  ;;  %v1704_v27 = vpop.f32.mrf.mxu1  ;;  %v2260_v15 = vld [vmem:[#allocation2 + $0x79] sm:$0xff] }
 0x22d   : > { %v1780_v4 = vadd.f32 %v1704_v27, %v4103_v48  ;;  %v4895_v48 = vld [vmem:[#allocation5_spill] sm:$0xff] }
 0x22e   : > { %v4281_v41 = vadd.f32 %v2147_v22, %v2001_v13  ;;  %v2289_v22 = vpack.c.bf16 %v2261_v26, %v2260_v15 }
 0x230   : > { %v1525_v43 = vpop.f32.mrf.mxu0 }
 0x231   : > { %v4285_v0 = vadd.f32 %v1525_v43, %v4125_v35 }
 0x233   : > { %v1926_v30 = vpop.f32.mrf.mxu2  ;;  %3396 = vmatmul.msk.bf16.gmra.mxu0 %vm434_vm1, %v2288_v55 }
 0x234   : > { %v2002_v39 = vadd.f32 %v1926_v30, %v1780_v4  ;;  %v2149_v63 = vpop.f32.mrf.mxu3  ;;  %v1707_v11 = vpop.f32.mrf.mxu1 }
 0x235   : > { %v1781_v1 = vadd.f32 %v1707_v11, %v4109_v24 }
 0x236   : > { %v4288_v16 = vadd.f32 %v2149_v63, %v2002_v39 }
 0x237   : > { %3353 = vmatmul.msk.bf16.gmra.mxu1 %vm434_vm1, %v4894_v36  ;;  %v2263_v36 = vld [vmem:[#allocation2 + $0x99] sm:$0xff] }
 0x238   : > { %3370 = vmatmul.msk.bf16.gmra.mxu2 %vm434_vm1, %v4895_v48  ;;  %v1527_v35 = vpop.f32.mrf.mxu0 }
 0x239   : > { %3387 = vmatmul.msk.bf16.gmra.mxu3 %vm434_vm1, %v3971_v32  ;;  %v4298_v62 = vadd.f32 %v1527_v35, %v4133_v9  ;;  %v2262_v35 = vld [vmem:[#allocation2 + $0x91] sm:$0xff] }
 0x23b   : > { %v1929_v51 = vpop.f32.mrf.mxu2 }
 0x23c   : > { %v2003_v19 = vadd.f32 %v1929_v51, %v1781_v1  ;;  %v2152_v3 = vpop.f32.mrf.mxu3  ;;  %v1709_v8 = vpop.f32.mrf.mxu1 }
 0x23d   : > { %v1782_v24 = vadd.f32 %v1709_v8, %v4123_v21  ;;  %v4897_v21 = vld [vmem:[#allocation7_spill] sm:$0xff] }
 0x23e   : > { %v4300_v56 = vadd.f32 %v2152_v3, %v2003_v19  ;;  %v2290_v19 = vpack.c.bf16 %v2263_v36, %v2262_v35 }
 0x240   : > { %v1530_v53 = vpop.f32.mrf.mxu0 }
 0x241   : > { %v4304_v13 = vadd.f32 %v1530_v53, %v4145_v44  ;;  %v4898_v53 = vld [vmem:[#allocation8_spill] sm:$0xff] }
 0x243   : > { %v1931_v32 = vpop.f32.mrf.mxu2  ;;  %3397 = vmatmul.msk.bf16.gmra.mxu0 %vm434_vm1, %v2289_v22 }
 0x244   : > { %v2004_v27 = vadd.f32 %v1931_v32, %v1782_v24  ;;  %v2154_v4 = vpop.f32.mrf.mxu3  ;;  %v1712_v9 = vpop.f32.mrf.mxu1 }
 0x245   : > { %v1783_v43 = vadd.f32 %v1712_v9, %v4129_v42 }
 0x246   : > { %v4307_v47 = vadd.f32 %v2154_v4, %v2004_v27 }
 0x247   : > { %3354 = vmatmul.msk.bf16.gmra.mxu1 %vm434_vm1, %v4896_v46 }
 0x248   : > { %3371 = vmatmul.msk.bf16.gmra.mxu2 %vm434_vm1, %v4897_v21  ;;  %v1532_v44 = vpop.f32.mrf.mxu0 }
 0x249   : > { %3388 = vmatmul.msk.bf16.gmra.mxu3 %vm434_vm1, %v3995_v60  ;;  %v4317_v55 = vadd.f32 %v1532_v44, %v4153_v40 }
 0x24b   : > { %v1934_v30 = vpop.f32.mrf.mxu2 }
 0x24c   : > { %v2005_v39 = vadd.f32 %v1934_v30, %v1783_v43  ;;  %v2157_v63 = vpop.f32.mrf.mxu3  ;;  %v1714_v11 = vpop.f32.mrf.mxu1  ;;  %v4900_v30 = vld [vmem:[#allocation10_spill] sm:$0xff] }
 0x24d   : > { %v1784_v42 = vadd.f32 %v1714_v11, %v4143_v6  ;;  %v4899_v6 = vld [vmem:[#allocation9_spill] sm:$0xff] }
 0x24e   : > { %v4319_v1 = vadd.f32 %v2157_v63, %v2005_v39  ;;  %v4901_v39 = vld [vmem:[#allocation11_spill] sm:$0xff] }
 0x250   : > { %v1535_v48 = vpop.f32.mrf.mxu0 }
 0x251   : > { %v4323_v51 = vadd.f32 %v1535_v48, %v4165_v37  ;;  %v2267_v48 = vld [vmem:[#allocation2 + $0xc9] sm:$0xff] }
 0x253   : > { %v1936_v60 = vpop.f32.mrf.mxu2  ;;  %3398 = vmatmul.msk.bf16.gmra.mxu0 %vm434_vm1, %v2290_v19  ;;  %v2266_v19 = vld [vmem:[#allocation2 + $0xc1] sm:$0xff] }
 0x254   : > { %v2006_v3 = vadd.f32 %v1936_v60, %v1784_v42  ;;  %v2159_v8 = vpop.f32.mrf.mxu3  ;;  %v1717_v40 = vpop.f32.mrf.mxu1 }
 0x255   : > { %v1785_v26 = vadd.f32 %v1717_v40, %v4149_v61 }
 0x256   : > { %v4326_v24 = vadd.f32 %v2159_v8, %v2006_v3 }
 0x257   : > { %3355 = vmatmul.msk.bf16.gmra.mxu1 %vm434_vm1, %v4898_v53 }
 0x258   : > { %3372 = vmatmul.msk.bf16.gmra.mxu2 %vm434_vm1, %v4899_v6  ;;  %v1537_v37 = vpop.f32.mrf.mxu0 }
 0x259   : > { %3389 = vmatmul.msk.bf16.gmra.mxu3 %vm434_vm1, %v4019_v20  ;;  %v4336_v15 = vadd.f32 %v1537_v37, %v4173_v25 }
 0x25b   : > { %v1939_v22 = vpop.f32.mrf.mxu2 }
 0x25c   : > { %v2007_v32 = vadd.f32 %v1939_v22, %v1785_v26  ;;  %v2162_v27 = vpop.f32.mrf.mxu3  ;;  %v1719_v4 = vpop.f32.mrf.mxu1  ;;  %v4902_v26 = vld [vmem:[#allocation12_spill] sm:$0xff] }
 0x25d   : > { %v4341_v61 = vadd.f32 %v1719_v4, %v4163_v58  ;;  %v2269_v4 = vld [vmem:[#allocation2 + $0xe1] sm:$0xff] }
 0x25e   : > { %v4338_v9 = vadd.f32 %v2162_v27, %v2007_v32 }
 0x260   : > { %v1540_v43 = vpop.f32.mrf.mxu0 }
 0x261   : > { %v4344_v46 = vadd.f32 %v1540_v43, %v4185_v52 }
 0x263   : > { %v4346_v21 = vpop.f32.mrf.mxu2  ;;  %3399 = vmatmul.msk.bf16.gmra.mxu0 %vm434_vm1, %v4195_v14 }
 0x264   : > { %v4348_v20 = vpop.f32.mrf.mxu3  ;;  %v1722_v25 = vpop.f32.mrf.mxu1 }
 0x265   : > { %v1787_v44 = vadd.f32 %v1722_v25, %v4169_v18  ;;  %v2268_v25 = vld [vmem:[#allocation2 + $0xd9] sm:$0xff] }
 0x267   : > { %3356 = vmatmul.msk.bf16.gmra.mxu1 %vm434_vm1, %v4900_v30  ;;  %v1617_v30 = vld [vmem:[#allocation2 + $0x181] sm:$0xff] }
 0x268   : > { %3373 = vmatmul.msk.bf16.gmra.mxu2 %vm434_vm1, %v4901_v39  ;;  %v1542_v58 = vpop.f32.mrf.mxu0  ;;  %v2062_v39 = vld [vmem:[#allocation2 + $0x198] sm:$0xff] }
 0x269   : > { %3390 = vmatmul.msk.bf16.gmra.mxu3 %vm434_vm1, %v4051_v54  ;;  %v4360_v52 = vadd.f32 %v1542_v58, %v4193_v45  ;;  %v2292_v54 = vpack.c.bf16 %v2267_v48, %v2266_v19 }
 0x26b   : > { %v1944_v63 = vpop.f32.mrf.mxu2 }
 0x26c   : > { %v2009_v11 = vadd.f32 %v1944_v63, %v1787_v44  ;;  %v2167_v42 = vpop.f32.mrf.mxu3  ;;  %v1724_v14 = vpop.f32.mrf.mxu1  ;;  %v1618_v63 = vld [vmem:[#allocation2 + $0x189] sm:$0xff] }
 0x26d   : > { %v4365_v18 = vadd.f32 %v1724_v14, %v4183_v31  ;;  %v4903_v31 = vld [vmem:[#allocation13_spill] sm:$0xff]  ;;  %v4399_v19 = vpack.c.bf16 %v1618_v63, %v1617_v30 }
 0x26e   : > { %v4362_v36 = vadd.f32 %v2167_v42, %v2009_v11  ;;  %v1839_v11 = vld [vmem:[#allocation2 + $0x182] sm:$0xff]  ;;  %v1840_v42 = vld [vmem:[#allocation2 + $0x18a] sm:$0xff] }
 0x270   : > { %v1545_v35 = vpop.f32.mrf.mxu0 }
 0x271   : > { %v4368_v60 = vadd.f32 %v1545_v35, %v4209_v29 }
 0x273   : > { %v4370_v3 = vpop.f32.mrf.mxu2  ;;  %3400 = vmatmul.msk.bf16.gmra.mxu0 %vm434_vm1, %v2292_v54 }
 0x274   : > { %v4372_v45 = vpop.f32.mrf.mxu3  ;;  %v1727_v8 = vpop.f32.mrf.mxu1 }
 0x275   : > { %v1789_v40 = vadd.f32 %v1727_v8, %v4189_v50 }
 0x277   : > { %3357 = vmatmul.msk.bf16.gmra.mxu1 %vm434_vm1, %v4902_v26 }
 0x278   : > { %3374 = vmatmul.msk.bf16.gmra.mxu2 %vm434_vm1, %v4903_v31  ;;  %v1547_v29 = vpop.f32.mrf.mxu0 }
 0x279   : > { %3391 = vmatmul.msk.bf16.gmra.mxu3 %vm434_vm1, %v4211_v7  ;;  %v4383_v53 = vadd.f32 %v1547_v29, %v4219_v17  ;;  %v2293_v7 = vpack.c.bf16 %v2269_v4, %v2268_v25  ;;  %v2063_v17 = vld [vmem:[#allocation2 + $0x1a0] sm:$0xff] }
 0x27a   : > { %v2079_v48 = vpack.c.bf16 %v2063_v17, %v2062_v39 }
 0x27b   : > { %v1949_v6 = vpop.f32.mrf.mxu2 }
 0x27c   : > { %v2011_v37 = vadd.f32 %v1949_v6, %v1789_v40  ;;  %v2172_v22 = vpop.f32.mrf.mxu3  ;;  %v1729_v32 = vpop.f32.mrf.mxu1 }
 0x27d   : > { %v4388_v50 = vadd.f32 %v1729_v32, %v4207_v59  ;;  %v2270_v32 = vld [vmem:[#allocation2 + $0xf1] sm:$0xff] }
 0x27e   : > { %v4385_v27 = vadd.f32 %v2172_v22, %v2011_v37  ;;  %v2271_v37 = vld [vmem:[#allocation2 + $0xf9] sm:$0xff] }
 0x280   : > { %v1550_v43 = vpop.f32.mrf.mxu0 }
 0x281   : > { %v4391_v44 = vadd.f32 %v1550_v43, %v4239_v5  ;;  %v4401_v5 = vpack.c.bf16 %v1840_v42, %v1839_v11  ;;  %v2294_v43 = vpack.c.bf16 %v2271_v37, %v2270_v32 }
 0x283   : > { %v4393_v58 = vpop.f32.mrf.mxu2  ;;  %3401 = vmatmul.msk.bf16.gmra.mxu0 %vm434_vm1, %v2293_v7  ;;  %v2477_v7 = vld [vmem:[#allocation2 + $0x3a] sm:$0xff] }
 0x284   : > { %v4395_v14 = vpop.f32.mrf.mxu3  ;;  %v1732_v59 = vpop.f32.mrf.mxu1 }
 0x285   : > { %v1791_v35 = vadd.f32 %v1732_v59, %v4215_v33 }
 0x287   : > { %3358 = vmatmul.msk.bf16.gmra.mxu1 %vm434_vm1, %v4399_v19 }
 0x288   : > { %3375 = vmatmul.msk.bf16.gmra.mxu2 %vm434_vm1, %v4401_v5  ;;  %v1552_v54 = vpop.f32.mrf.mxu0 }
 0x289   : > { %3392 = vmatmul.msk.bf16.gmra.mxu3 %vm434_vm1, %v2079_v48  ;;  %v4409_v8 = vadd.f32 %v1552_v54, %v4249_v28  ;;  %v2476_v28 = vld [vmem:[#allocation2 + $0x32] sm:$0xff] }
 0x28b   : > { %v1954_v40 = vpop.f32.mrf.mxu2 }
 0x28c   : > { %v2013_v26 = vadd.f32 %v1954_v40, %v1791_v35  ;;  %v2177_v31 = vpop.f32.mrf.mxu3  ;;  %v1734_v33 = vpop.f32.mrf.mxu1  ;;  %v2273_v40 = vld [vmem:[#allocation2 + $0x111] sm:$0xff] }
 0x28d   : > { %v4414_v6 = vadd.f32 %v1734_v33, %v4237_v10  ;;  %v2508_v10 = vpack.c.bf16 %v2477_v7, %v2476_v28 }
 0x28e   : > { %v4411_v29 = vadd.f32 %v2177_v31, %v2013_v26  ;;  %v2272_v31 = vld [vmem:[#allocation2 + $0x109] sm:$0xff] }
 0x28f   : > { %v2295_v33 = vpack.c.bf16 %v2273_v40, %v2272_v31  ;;  %v2274_v40 = vld [vmem:[#allocation2 + $0x121] sm:$0xff] }
 0x290   : > { %v2364_v22 = vpop.f32.mrf.mxu0 }
 0x291   : > { %v4417_v4 = vadd.f32 %v2364_v22, %v4263_v34  ;;  %v2479_v22 = vld [vmem:[#allocation2 + $0x52] sm:$0xff] }
 0x293   : > { %v4419_v25 = vpop.f32.mrf.mxu2  ;;  %3402 = vmatmul.msk.bf16.gmra.mxu0 %vm434_vm1, %v2294_v43 }
 0x294   : > { %v4421_v30 = vpop.f32.mrf.mxu3  ;;  %v1737_v39 = vpop.f32.mrf.mxu1 }
 0x295   : > { %v1793_v17 = vadd.f32 %v1737_v39, %v4245_v23 }
 0x297   : > { %3411 = vmatmul.msk.bf16.vlgmr.msra.gmra.mxu1 %vm434_vm1, %v2508_v10 }
 0x298   : > { %v2366_v63 = vpop.f32.mrf.mxu0 }
 0x299   : > { %v4427_v11 = vadd.f32 %v2366_v63, %v4269_v49  ;;  %v2478_v49 = vld [vmem:[#allocation2 + $0x4a] sm:$0xff] }
 0x29b   : > { %v1959_v34 = vpop.f32.mrf.mxu2 }
 0x29c   : > { %v2015_v42 = vadd.f32 %v1959_v34, %v1793_v17  ;;  %v2182_v59 = vpop.f32.mrf.mxu3  ;;  %v1739_v48 = vpop.f32.mrf.mxu1 }
 0x29d   : > { %v4432_v54 = vadd.f32 %v1739_v48, %v4260_v2  ;;  %v2509_v2 = vpack.c.bf16 %v2479_v22, %v2478_v49 }
 0x29e   : > { %v4429_v35 = vadd.f32 %v2182_v59, %v2015_v42  ;;  %v2275_v59 = vld [vmem:[#allocation2 + $0x129] sm:$0xff] }
 0x2a0   : > { %v2369_v26 = vpop.f32.mrf.mxu0 }
 0x2a1   : > { %v4435_v23 = vadd.f32 %v2369_v26, %v4281_v41  ;;  %v2296_v26 = vpack.c.bf16 %v2275_v59, %v2274_v40  ;;  %v2277_v59 = vld [vmem:[#allocation2 + $0x141] sm:$0xff]  ;;  %v2276_v40 = vld [vmem:[#allocation2 + $0x139] sm:$0xff] }
 0x2a3   : > { %v4437_v37 = vpop.f32.mrf.mxu2  ;;  %3403 = vmatmul.msk.bf16.gmra.mxu0 %vm434_vm1, %v2295_v33  ;;  %v2481_v33 = vld [vmem:[#allocation2 + $0x6a] sm:$0xff] }
 0x2a4   : > { %v4439_v32 = vpop.f32.mrf.mxu3  ;;  %v1742_v43 = vpop.f32.mrf.mxu1 }
 0x2a5   : > { %v1795_v28 = vadd.f32 %v1742_v43, %v4266_v38 }
 0x2a7   : > { %3412 = vmatmul.msk.bf16.gmra.mxu1 %vm434_vm1, %v2509_v2 }
 0x2a8   : > { %v2371_v7 = vpop.f32.mrf.mxu0 }
 0x2a9   : > { %v4445_v39 = vadd.f32 %v2371_v7, %v4288_v16  ;;  %v2480_v16 = vld [vmem:[#allocation2 + $0x62] sm:$0xff] }
 0x2ab   : > { %v1964_v41 = vpop.f32.mrf.mxu2 }
 0x2ac   : > { %v2017_v17 = vadd.f32 %v1964_v41, %v1795_v28  ;;  %v2187_v10 = vpop.f32.mrf.mxu3  ;;  %v1744_v63 = vpop.f32.mrf.mxu1 }
 0x2ad   : > { %v4450_v42 = vadd.f32 %v1744_v63, %v4279_v12  ;;  %v2510_v12 = vpack.c.bf16 %v2481_v33, %v2480_v16  ;;  %v2483_v33 = vld [vmem:[#allocation2 + $0x82] sm:$0xff] }
 0x2ae   : > { %v4447_v34 = vadd.f32 %v2187_v10, %v2017_v17 }
 0x2b0   : > { %v2374_v48 = vpop.f32.mrf.mxu0 }
 0x2b1   : > { %v4453_v38 = vadd.f32 %v2374_v48, %v4300_v56 }
 0x2b3   : > { %v4455_v31 = vpop.f32.mrf.mxu2  ;;  %3404 = vmatmul.msk.bf16.gmra.mxu0 %vm434_vm1, %v2296_v26  ;;  %v2297_v26 = vpack.c.bf16 %v2277_v59, %v2276_v40  ;;  %v2279_v40 = vld [vmem:[#allocation2 + $0x159] sm:$0xff] }
 0x2b4   : > { %v4457_v49 = vpop.f32.mrf.mxu3  ;;  %v1747_v22 = vpop.f32.mrf.mxu1 }
 0x2b5   : > { %v1797_v43 = vadd.f32 %v1747_v22, %v4285_v0 }
 0x2b7   : > { %3413 = vmatmul.msk.bf16.gmra.mxu1 %vm434_vm1, %v2510_v12 }
 0x2b8   : > { %v2376_v28 = vpop.f32.mrf.mxu0 }
 0x2b9   : > { %v4463_v2 = vadd.f32 %v2376_v28, %v4307_v47  ;;  %v2482_v47 = vld [vmem:[#allocation2 + $0x7a] sm:$0xff] }
 0x2bb   : > { %v1969_v56 = vpop.f32.mrf.mxu2 }
 0x2bc   : > { %v2019_v7 = vadd.f32 %v1969_v56, %v1797_v43  ;;  %v2192_v41 = vpop.f32.mrf.mxu3  ;;  %v1749_v17 = vpop.f32.mrf.mxu1 }
 0x2bd   : > { %v4468_v63 = vadd.f32 %v1749_v17, %v4298_v62  ;;  %v2511_v62 = vpack.c.bf16 %v2483_v33, %v2482_v47  ;;  %v2484_v47 = vld [vmem:[#allocation2 + $0x92] sm:$0xff]  ;;  %v2485_v33 = vld [vmem:[#allocation2 + $0x9a] sm:$0xff] }
 0x2be   : > { %v4465_v10 = vadd.f32 %v2192_v41, %v2019_v7 }
 0x2c0   : > { %4904 = vst [vmem:[#allocation3_spill] sm:$0xff] %v4465_v10  ;;  %v2379_v48 = vpop.f32.mrf.mxu0 }
 0x2c1   : > { %v4471_v0 = vadd.f32 %v2379_v48, %v4319_v1 }
 0x2c3   : > { %v4473_v16 = vpop.f32.mrf.mxu2  ;;  %3405 = vmatmul.msk.bf16.gmra.mxu0 %vm434_vm1, %v2297_v26  ;;  %v2278_v26 = vld [vmem:[#allocation2 + $0x151] sm:$0xff] }
 0x2c4   : > { %v4475_v22 = vpop.f32.mrf.mxu3  ;;  %v1752_v43 = vpop.f32.mrf.mxu1  ;;  %v2298_v10 = vpack.c.bf16 %v2279_v40, %v2278_v26  ;;  %v2281_v40 = vld [vmem:[#allocation2 + $0x171] sm:$0xff]  ;;  %v2280_v26 = vld [vmem:[#allocation2 + $0x169] sm:$0xff] }
 0x2c5   : > { %v1799_v12 = vadd.f32 %v1752_v43, %v4304_v13 }
 0x2c7   : > { %3414 = vmatmul.msk.bf16.gmra.mxu1 %vm434_vm1, %v2511_v62  ;;  %v2512_v62 = vpack.c.bf16 %v2485_v33, %v2484_v47 }
 0x2c8   : > { %v2381_v28 = vpop.f32.mrf.mxu0 }
 0x2c9   : > { %v4481_v56 = vadd.f32 %v2381_v28, %v4326_v24 }
 0x2cb   : > { %v1974_v1 = vpop.f32.mrf.mxu2 }
 0x2cc   : > { %v2021_v7 = vadd.f32 %v1974_v1, %v1799_v12  ;;  %v2197_v41 = vpop.f32.mrf.mxu3  ;;  %v1754_v17 = vpop.f32.mrf.mxu1 }
 0x2cd   : > { %v4486_v48 = vadd.f32 %v1754_v17, %v4317_v55 }
 0x2ce   : > { %v4483_v59 = vadd.f32 %v2197_v41, %v2021_v7 }
 0x2d0   : > { %4905 = vst [vmem:[#allocation4_spill] sm:$0xff] %v4483_v59  ;;  %v2299_v59 = vpack.c.bf16 %v2281_v40, %v2280_v26  ;;  %v2892_v26 = vld [vmem:[%s4524_s11 + $0x8] sm:$0xff] }
 0x2d3   : > { %v4488_v13 = vpop.f32.mrf.mxu2  ;;  %3406 = vmatmul.msk.bf16.gmra.mxu0 %vm434_vm1, %v2298_v10 }
 0x2d4   : > { %v4490_v43 = vpop.f32.mrf.mxu3  ;;  %v1757_v24 = vpop.f32.mrf.mxu1 }
 0x2d5   : > { %4906 = vst [vmem:[#allocation5_spill] sm:$0xff] %v4490_v43  ;;  %v1801_v12 = vadd.f32 %v1757_v24, %v4323_v51 }
 0x2d7   : > { %3415 = vmatmul.msk.bf16.gmra.mxu1 %vm434_vm1, %v2512_v62 }
 0x2db   : > { %v1979_v28 = vpop.f32.mrf.mxu2 }
 0x2dc   : > { %v2023_v55 = vadd.f32 %v1979_v28, %v1801_v12  ;;  %v2202_v1 = vpop.f32.mrf.mxu3  ;;  %v1759_v7 = vpop.f32.mrf.mxu1 }
 0x2dd   : > { %v4498_v17 = vadd.f32 %v1759_v7, %v4336_v15 }
 0x2de   : > { %v4495_v41 = vadd.f32 %v2202_v1, %v2023_v55  ;;  %v2488_v1 = vld [vmem:[#allocation2 + $0xc2] sm:$0xff] }
 0x2e3   : > { %v4500_v43 = vpop.f32.mrf.mxu2  ;;  %3407 = vmatmul.msk.bf16.gmra.mxu0 %vm434_vm1, %v2299_v59  ;;  %v2489_v59 = vld [vmem:[#allocation2 + $0xca] sm:$0xff] }
 0x2e4   : > { %v4502_v10 = vpop.f32.mrf.mxu3  ;;  %v1762_v51 = vpop.f32.mrf.mxu1  ;;  %v2514_v40 = vpack.c.bf16 %v2489_v59, %v2488_v1 }
 0x2e5   : > { %v1803_v47 = vadd.f32 %v1762_v51, %v4344_v46 }
 0x2e7   : > { %3416 = vmatmul.msk.bf16.gmra.mxu1 %vm434_vm1, %v4197_v57 }
 0x2eb   : > { %v1984_v33 = vpop.f32.mrf.mxu2 }
 0x2ec   : > { %v2025_v24 = vadd.f32 %v1984_v33, %v1803_v47  ;;  %v2207_v15 = vpop.f32.mrf.mxu3  ;;  %v1764_v12 = vpop.f32.mrf.mxu1 }
 0x2ed   : > { %v4511_v28 = vadd.f32 %v1764_v12, %v4360_v52  ;;  %v2891_v52 = vld [vmem:[%s4524_s11] sm:$0xff] }
 0x2ee   : > { %v4508_v62 = vadd.f32 %v2207_v15, %v2025_v24  ;;  %v2923_v47 = vpack.c.bf16 %v2892_v26, %v2891_v52  ;;  %v2284_v15 = vld [vmem:[#allocation2 + $0x199] sm:$0xff] }
 0x2f0   : > { %4907 = vst [vmem:[#allocation6_spill] sm:$0xff] %v4508_v62  ;;  %3443 = vmatmul.msk.bf16.vlgmr.msra.gmra.mxu3 %vm434_vm1, %v2923_v47  ;;  %v2491_v62 = vld [vmem:[#allocation2 + $0xe2] sm:$0xff]  ;;  %v2893_v47 = vld [vmem:[%s4524_s11 + $0x10] sm:$0xff] }
 0x2f3   : > { %v4513_v55 = vpop.f32.mrf.mxu2  ;;  %3408 = vmatmul.msk.bf16.gmra.mxu0 %vm434_vm1, %v4399_v19 }
 0x2f4   : > { %v4515_v7 = vpop.f32.mrf.mxu3  ;;  %v1767_v46 = vpop.f32.mrf.mxu1 }
 0x2f5   : > { %v1805_v57 = vadd.f32 %v1767_v46, %v4368_v60  ;;  %v2285_v60 = vld [vmem:[#allocation2 + $0x1a1] sm:$0xff] }
 0x2f6   : > { %v2301_v59 = vpack.c.bf16 %v2285_v60, %v2284_v15 }
 0x2f7   : > { %3417 = vmatmul.msk.bf16.gmra.mxu1 %vm434_vm1, %v2514_v40  ;;  %v2490_v40 = vld [vmem:[#allocation2 + $0xda] sm:$0xff] }
 0x2fb   : > { %v1989_v51 = vpop.f32.mrf.mxu2 }
 0x2fc   : > { %v2027_v33 = vadd.f32 %v1989_v51, %v1805_v57  ;;  %v2212_v24 = vpop.f32.mrf.mxu3  ;;  %v1769_v19 = vpop.f32.mrf.mxu1  ;;  %v2515_v51 = vpack.c.bf16 %v2491_v62, %v2490_v40  ;;  %v2493_v62 = vld [vmem:[#allocation2 + $0xfa] sm:$0xff] }
 0x2fd   : > { %v4533_v1 = vadd.f32 %v1769_v19, %v4383_v53  ;;  %v2894_v53 = vld [vmem:[%s4524_s11 + $0x18] sm:$0xff] }
 0x2fe   : > { %v4530_v12 = vadd.f32 %v2212_v24, %v2027_v33  ;;  %v2924_v24 = vpack.c.bf16 %v2894_v53, %v2893_v47 }
 0x300   : > { %4908 = vst [vmem:[#allocation7_spill] sm:$0xff] %v4530_v12  ;;  %3444 = vmatmul.msk.bf16.gmra.mxu3 %vm434_vm1, %v2924_v24 }
 0x303   : > { %v4535_v46 = vpop.f32.mrf.mxu2  ;;  %3409 = vmatmul.msk.bf16.gmra.mxu0 %vm434_vm1, %v2301_v59 }
 0x304   : > { %v4537_v52 = vpop.f32.mrf.mxu3  ;;  %v1772_v57 = vpop.f32.mrf.mxu1 }
 0x305   : > { %4909 = vst [vmem:[#allocation8_spill] sm:$0xff] %v4537_v52  ;;  %v1807_v26 = vadd.f32 %v1772_v57, %v4391_v44  ;;  %v2492_v44 = vld [vmem:[#allocation2 + $0xf2] sm:$0xff]  ;;  %v2896_v52 = vld [vmem:[%s4524_s11 + $0x28] sm:$0xff] }
 0x306   : > { %v2516_v57 = vpack.c.bf16 %v2493_v62, %v2492_v44  ;;  %v2495_v44 = vld [vmem:[#allocation2 + $0x112] sm:$0xff] }
 0x307   : > { %3418 = vmatmul.msk.bf16.gmra.mxu1 %vm434_vm1, %v2515_v51  ;;  %v2895_v51 = vld [vmem:[%s4524_s11 + $0x20] sm:$0xff] }
 0x308   : > { %v2925_v47 = vpack.c.bf16 %v2896_v52, %v2895_v51  ;;  %v2897_v52 = vld [vmem:[%s4524_s11 + $0x30] sm:$0xff]  ;;  %v2898_v51 = vld [vmem:[%s4524_s11 + $0x38] sm:$0xff] }
 0x30b   : > { %v1994_v33 = vpop.f32.mrf.mxu2 }
 0x30c   : > { %v2029_v19 = vadd.f32 %v1994_v33, %v1807_v26  ;;  %v2217_v15 = vpop.f32.mrf.mxu3  ;;  %v1774_v60 = vpop.f32.mrf.mxu1 }
 0x30d   : > { %v4546_v12 = vadd.f32 %v1774_v60, %v4409_v8  ;;  %v2494_v60 = vld [vmem:[#allocation2 + $0x10a] sm:$0xff] }
 0x30e   : > { %v4548_v59 = vadd.f32 %v2217_v15, %v2029_v19  ;;  %v2384_v15 = vpop.f32.mrf.mxu0 }
 0x310   : > { %3445 = vmatmul.msk.bf16.gmra.mxu3 %vm434_vm1, %v2925_v47 }
 0x314   : > { %v2586_v40 = vpop.f32.mrf.mxu1 }
 0x315   : > { %v2666_v26 = vadd.f32 %v2586_v40, %v4417_v4  ;;  %v2926_v4 = vpack.c.bf16 %v2898_v51, %v2897_v52 }
 0x317   : > { %3419 = vmatmul.msk.bf16.gmra.mxu1 %vm434_vm1, %v2516_v57  ;;  %v2698_v33 = vmax.f32 %v2666_v26, 0.0  ;;  %v2517_v57 = vpack.c.bf16 %v2495_v44, %v2494_v60 }
 0x31c   : > { %v2588_v53 = vpop.f32.mrf.mxu1 }
 0x31d   : > { %v2667_v8 = vadd.f32 %v2588_v53, %v4427_v11  ;;  %v2386_v11 = vpop.f32.mrf.mxu0 }
 0x31f   : > { %v2699_v24 = vmax.f32 %v2667_v8, 0.0 }
 0x320   : > { %3446 = vmatmul.msk.bf16.gmra.mxu3 %vm434_vm1, %v2926_v4 }
 0x321   : > { %v2730_v19 = vpack.c.bf16 %v2699_v24, %v2698_v33  ;;  %v2496_v24 = vld [vmem:[#allocation2 + $0x122] sm:$0xff] }
 0x323   : > { %3427 = vmatmul.msk.bf16.vlgmr.msra.gmra.mxu2 %vm434_vm1, %v2730_v19  ;;  %v2497_v19 = vld [vmem:[#allocation2 + $0x12a] sm:$0xff] }
 0x324   : > { %v2591_v62 = vpop.f32.mrf.mxu1  ;;  %v2518_v44 = vpack.c.bf16 %v2497_v19, %v2496_v24 }
 0x325   : > { %v2668_v40 = vadd.f32 %v2591_v62, %v4435_v23  ;;  %v2899_v23 = vld [vmem:[%s4524_s11 + $0x40] sm:$0xff]  ;;  %v2900_v62 = vld [vmem:[%s4524_s11 + $0x48] sm:$0xff] }
 0x326   : > { %v2927_v52 = vpack.c.bf16 %v2900_v62, %v2899_v23  ;;  %v2902_v23 = vld [vmem:[%s4524_s11 + $0x58] sm:$0xff] }
 0x327   : > { %3420 = vmatmul.msk.bf16.gmra.mxu1 %vm434_vm1, %v2517_v57  ;;  %v2700_v53 = vmax.f32 %v2668_v40, 0.0  ;;  %v2389_v57 = vpop.f32.mrf.mxu0 }
 0x32c   : > { %v2593_v47 = vpop.f32.mrf.mxu1 }
 0x32d   : > { %v2669_v26 = vadd.f32 %v2593_v47, %v4445_v39 }
 0x32f   : > { %v2701_v8 = vmax.f32 %v2669_v26, 0.0  ;;  %v2391_v26 = vpop.f32.mrf.mxu0 }
 0x330   : > { %3447 = vmatmul.msk.bf16.gmra.mxu3 %vm434_vm1, %v2927_v52 }
 0x331   : > { %v2731_v33 = vpack.c.bf16 %v2701_v8, %v2700_v53  ;;  %v2498_v8 = vld [vmem:[#allocation2 + $0x13a] sm:$0xff] }
 0x333   : > { %3428 = vmatmul.msk.bf16.gmra.mxu2 %vm434_vm1, %v2731_v33  ;;  %v2499_v33 = vld [vmem:[#allocation2 + $0x142] sm:$0xff] }
 0x334   : > { %v2596_v60 = vpop.f32.mrf.mxu1  ;;  %v2519_v19 = vpack.c.bf16 %v2499_v33, %v2498_v8  ;;  %v2008_v33 = vadd.f32 %v4346_v21, %v4341_v61 }
 0x335   : > { %v2670_v51 = vadd.f32 %v2596_v60, %v4453_v38 }
 0x337   : > { %3421 = vmatmul.msk.bf16.gmra.mxu1 %vm434_vm1, %v2518_v44  ;;  %v2702_v40 = vmax.f32 %v2670_v51, 0.0  ;;  %v2901_v44 = vld [vmem:[%s4524_s11 + $0x50] sm:$0xff]  ;;  %v2394_v38 = vpop.f32.mrf.mxu0 }
 0x338   : > { %v2928_v60 = vpack.c.bf16 %v2902_v23, %v2901_v44  ;;  %v2904_v44 = vld [vmem:[%s4524_s11 + $0x68] sm:$0xff] }
 0x33c   : > { %v2598_v39 = vpop.f32.mrf.mxu1 }
 0x33d   : > { %v2671_v4 = vadd.f32 %v2598_v39, %v4463_v2 }
 0x33f   : > { %v2703_v47 = vmax.f32 %v2671_v4, 0.0 }
 0x340   : > { %3448 = vmatmul.msk.bf16.gmra.mxu3 %vm434_vm1, %v2928_v60 }
 0x341   : > { %v2732_v53 = vpack.c.bf16 %v2703_v47, %v2702_v40  ;;  %v2500_v40 = vld [vmem:[#allocation2 + $0x152] sm:$0xff]  ;;  %v2501_v47 = vld [vmem:[#allocation2 + $0x15a] sm:$0xff] }
 0x343   : > { %3429 = vmatmul.msk.bf16.gmra.mxu2 %vm434_vm1, %v2732_v53  ;;  %v2396_v53 = vpop.f32.mrf.mxu0 }
 0x344   : > { %v2601_v24 = vpop.f32.mrf.mxu1 }
 0x345   : > { %v2672_v62 = vadd.f32 %v2601_v24, %v4471_v0  ;;  %v2520_v0 = vpack.c.bf16 %v2501_v47, %v2500_v40  ;;  %v2231_v24 = vadd.f32 %v4348_v20, %v2008_v33  ;;  %v2503_v40 = vld [vmem:[#allocation2 + $0x172] sm:$0xff]  ;;  %v2010_v20 = vadd.f32 %v4370_v3, %v4365_v18 }
 0x346   : > { %v2905_v33 = vld [vmem:[%s4524_s11 + $0x70] sm:$0xff] }
 0x347   : > { %3422 = vmatmul.msk.bf16.gmra.mxu1 %vm434_vm1, %v2519_v19  ;;  %v2704_v51 = vmax.f32 %v2672_v62, 0.0  ;;  %v2452_v19 = vadd.f32 %v2384_v15, %v4338_v9  ;;  %v2453_v60 = vadd.f32 %v2386_v11, %v2231_v24  ;;  %v2233_v47 = vadd.f32 %v4372_v45, %v2010_v20 }
 0x34c   : > { %v2603_v52 = vpop.f32.mrf.mxu1 }
 0x34d   : > { %v2673_v2 = vadd.f32 %v2603_v52, %v4481_v56  ;;  %v2903_v56 = vld [vmem:[%s4524_s11 + $0x60] sm:$0xff] }
 0x34e   : > { %v2929_v23 = vpack.c.bf16 %v2904_v44, %v2903_v56 }
 0x34f   : > { %v2705_v39 = vmax.f32 %v2673_v2, 0.0 }
 0x350   : > { %3449 = vmatmul.msk.bf16.gmra.mxu3 %vm434_vm1, %v2929_v23 }
 0x351   : > { %v2733_v4 = vpack.c.bf16 %v2705_v39, %v2704_v51  ;;  %v2399_v51 = vpop.f32.mrf.mxu0 }
 0x353   : > { %3430 = vmatmul.msk.bf16.gmra.mxu2 %vm434_vm1, %v2733_v4  ;;  %v2502_v4 = vld [vmem:[#allocation2 + $0x16a] sm:$0xff] }
 0x354   : > { %v2606_v8 = vpop.f32.mrf.mxu1  ;;  %v2521_v15 = vpack.c.bf16 %v2503_v40, %v2502_v4 }
 0x355   : > { %v2674_v62 = vadd.f32 %v2606_v8, %v2452_v19  ;;  %v2454_v8 = vadd.f32 %v2389_v57, %v4362_v36  ;;  %v2455_v19 = vadd.f32 %v2391_v26, %v2233_v47  ;;  %v2012_v36 = vadd.f32 %v4393_v58, %v4388_v50  ;;  %v2907_v57 = vld [vmem:[%s4524_s11 + $0x80] sm:$0xff]  ;;  %v2908_v26 = vld [vmem:[%s4524_s11 + $0x88] sm:$0xff] }
 0x357   : > { %3423 = vmatmul.msk.bf16.gmra.mxu1 %vm434_vm1, %v2520_v0  ;;  %v2706_v61 = vmax.f32 %v2674_v62, 0.0  ;;  %v2906_v0 = vld [vmem:[%s4524_s11 + $0x78] sm:$0xff] }
 0x358   : > { %v2930_v24 = vpack.c.bf16 %v2906_v0, %v2905_v33 }
 0x359   : > { %v2401_v11 = vpop.f32.mrf.mxu0 }
 0x35c   : > { %v2608_v52 = vpop.f32.mrf.mxu1 }
 0x35d   : > { %v2675_v2 = vadd.f32 %v2608_v52, %v2453_v60  ;;  %v4602_v52 = vpop.f32.mrf.mxu3 }
 0x35f   : > { %v2707_v21 = vmax.f32 %v2675_v2, 0.0  ;;  %v2931_v2 = vpack.c.bf16 %v2908_v26, %v2907_v57 }
 0x360   : > { %3450 = vmatmul.msk.bf16.gmra.mxu3 %vm434_vm1, %v2930_v24  ;;  %v2458_v24 = vadd.f32 %v2399_v51, %v4411_v29  ;;  %v2016_v29 = vadd.f32 %v4437_v37, %v4432_v54 }
 0x361   : > { %v2734_v39 = vpack.c.bf16 %v2707_v21, %v2706_v61  ;;  %v2404_v62 = vpop.f32.mrf.mxu0  ;;  %v2235_v61 = vadd.f32 %v4395_v14, %v2012_v36  ;;  %v2456_v21 = vadd.f32 %v2394_v38, %v4385_v27  ;;  %v2014_v27 = vadd.f32 %v4419_v25, %v4414_v6 }
 0x362   : > { %v2460_v26 = vadd.f32 %v2404_v62, %v4429_v35  ;;  %v4635_v35 = vld [vmem:[%s4869_s9] ss:$0 sm:$0xff] }
 0x363   : > { %3431 = vmatmul.msk.bf16.gmra.mxu2 %vm434_vm1, %v2734_v39  ;;  %v2457_v39 = vadd.f32 %v2396_v53, %v2235_v61  ;;  %v2237_v0 = vadd.f32 %v4421_v30, %v2014_v27  ;;  %v2911_v61 = vld [vmem:[%s4524_s11 + $0xa0] sm:$0xff] }
 0x364   : > { %v2611_v9 = vpop.f32.mrf.mxu1  ;;  %v4641_v62 = vld [vmem:[%s4867_s7] ss:$0 sm:$0xff] }
 0x365   : > { %v2676_v56 = vadd.f32 %v2611_v9, %v2454_v8 }
 0x367   : > { %3424 = vmatmul.msk.bf16.gmra.mxu1 %vm434_vm1, %v2521_v15  ;;  %v2708_v18 = vmax.f32 %v2676_v56, 0.0  ;;  %v2507_v15 = vld [vmem:[#allocation2 + $0x1a2] sm:$0xff]  ;;  %v2910_v56 = vld [vmem:[%s4524_s11 + $0x98] sm:$0xff] }
 0x369   : > { %v2406_v40 = vpop.f32.mrf.mxu0 }
 0x36c   : > { %v2613_v44 = vpop.f32.mrf.mxu1 }
 0x36d   : > { %v2677_v23 = vadd.f32 %v2613_v44, %v2455_v19  ;;  %v2909_v19 = vld [vmem:[%s4524_s11 + $0x90] sm:$0xff]  ;;  %v2459_v44 = vadd.f32 %v2401_v11, %v2237_v0  ;;  %v2239_v11 = vadd.f32 %v4439_v32, %v2016_v29 }
 0x36f   : > { %v2709_v3 = vmax.f32 %v2677_v23, 0.0 }
 0x370   : > { %3451 = vmatmul.msk.bf16.gmra.mxu3 %vm434_vm1, %v2931_v2 }
 0x371   : > { %v2735_v60 = vpack.c.bf16 %v2709_v3, %v2708_v18  ;;  %v2409_v38 = vpop.f32.mrf.mxu0  ;;  %v2932_v18 = vpack.c.bf16 %v2910_v56, %v2909_v19 }
 0x372   : > { %v2462_v19 = vadd.f32 %v2409_v38, %v4447_v34 }
 0x373   : > { %3432 = vmatmul.msk.bf16.gmra.mxu2 %vm434_vm1, %v2735_v60  ;;  %v3004_v47 = vpop.f32.mrf.mxu3 }
 0x374   : > { %v2616_v45 = vpop.f32.mrf.mxu1 }
 0x375   : > { %v2678_v4 = vadd.f32 %v2616_v45, %v2456_v21  ;;  %v2912_v21 = vld [vmem:[%s4524_s11 + $0xa8] sm:$0xff] }
 0x377   : > { %3425 = vmatmul.msk.bf16.gmra.mxu1 %vm434_vm1, %v4401_v5  ;;  %v2710_v50 = vmax.f32 %v2678_v4, 0.0  ;;  %v2506_v5 = vld [vmem:[#allocation2 + $0x19a] sm:$0xff] }
 0x378   : > { %v2523_v14 = vpack.c.bf16 %v2507_v15, %v2506_v5 }
 0x379   : > { %v2411_v45 = vpop.f32.mrf.mxu0 }
 0x37b   : > { %v4611_v53 = vpop.f32.mrf.mxu3 }
 0x37c   : > { %v2618_v9 = vpop.f32.mrf.mxu1 }
 0x37d   : > { %v2679_v20 = vadd.f32 %v2618_v9, %v2457_v39  ;;  %v2461_v39 = vadd.f32 %v2406_v40, %v2239_v11  ;;  %v2933_v9 = vpack.c.bf16 %v2912_v21, %v2911_v61  ;;  %v2020_v61 = vadd.f32 %v4473_v16, %v4468_v63 }
 0x37f   : > { %v2711_v58 = vmax.f32 %v2679_v20, 0.0 }
 0x380   : > { %3452 = vmatmul.msk.bf16.gmra.mxu3 %vm434_vm1, %v2932_v18 }
 0x381   : > { %v2736_v8 = vpack.c.bf16 %v2711_v58, %v2710_v50  ;;  %v2414_v2 = vpop.f32.mrf.mxu0  ;;  %v4628_v58 = vpop.f32.mrf.mxu2 }
 0x383   : > { %3433 = vmatmul.msk.bf16.gmra.mxu2 %vm434_vm1, %v2736_v8  ;;  %v3009_v36 = vpop.f32.mrf.mxu3  ;;  %v2018_v8 = vadd.f32 %v4455_v31, %v4450_v42  ;;  %v2913_v42 = vld [vmem:[%s4524_s11 + $0xb0] sm:$0xff]  ;;  %v2914_v31 = vld [vmem:[%s4524_s11 + $0xb8] sm:$0xff] }
 0x384   : > { %v2621_v33 = vpop.f32.mrf.mxu1  ;;  %v2934_v18 = vpack.c.bf16 %v2914_v31, %v2913_v42 }
 0x385   : > { %v2680_v23 = vadd.f32 %v2621_v33, %v2458_v24  ;;  %v2241_v24 = vadd.f32 %v4457_v49, %v2018_v8 }
 0x387   : > { %3426 = vmatmul.msk.bf16.gmra.mxu1 %vm434_vm1, %v2523_v14  ;;  %v2712_v6 = vmax.f32 %v2680_v23, 0.0  ;;  %v3005_v14 = vadd.f32 %v4635_v35, %v3004_v47  ;;  %v2463_v47 = vadd.f32 %v2411_v45, %v2241_v24 }
 0x389   : > { %v2416_v40 = vpop.f32.mrf.mxu0 }
 0x38b   : > { %v4621_v51 = vpop.f32.mrf.mxu3 }
 0x38c   : > { %v2623_v3 = vpop.f32.mrf.mxu1 }
 0x38d   : > { %v2681_v60 = vadd.f32 %v2623_v3, %v2459_v44 }
 0x38f   : > { %v2713_v25 = vmax.f32 %v2681_v60, 0.0 }
 0x390   : > { %3453 = vmatmul.msk.bf16.gmra.mxu3 %vm434_vm1, %v2933_v9 }
 0x391   : > { %v2737_v57 = vpack.c.bf16 %v2713_v25, %v2712_v6  ;;  %v2419_v34 = vpop.f32.mrf.mxu0  ;;  %v3007_v6 = vadd.f32 %v4635_v35, %v4611_v53  ;;  %v3010_v53 = vadd.f32 %v4635_v35, %v3009_v36 }
 0x393   : > { %3434 = vmatmul.msk.bf16.gmra.mxu2 %vm434_vm1, %v2737_v57  ;;  %v4630_v37 = vpop.f32.mrf.mxu3 }
 0x394   : > { %v2626_v30 = vpop.f32.mrf.mxu1 }
 0x395   : > { %v2682_v4 = vadd.f32 %v2626_v30, %v2460_v26 }
 0x397   : > { %v2714_v5 = vmax.f32 %v2682_v4, 0.0 }
 0x399   : > { %v2421_v4 = vpop.f32.mrf.mxu0 }
 0x39b   : > { %v4647_v0 = vpop.f32.mrf.mxu3 }
 0x39c   : > { %v2628_v20 = vpop.f32.mrf.mxu1 }
 0x39d   : > { %v2683_v50 = vadd.f32 %v2628_v20, %v2461_v39  ;;  %v2243_v20 = vadd.f32 %v4475_v22, %v2020_v61  ;;  %v3012_v22 = vadd.f32 %v4635_v35, %v4621_v51  ;;  %v3015_v51 = vadd.f32 %v4635_v35, %v4630_v37 }
 0x39f   : > { %v2715_v54 = vmax.f32 %v2683_v50, 0.0  ;;  %v4910_v50 = vld [vmem:[#allocation3_spill] sm:$0xff]  ;;  %v2465_v8 = vadd.f32 %v2416_v40, %v2243_v20 }
 0x3a0   : > { %3454 = vmatmul.msk.bf16.gmra.mxu3 %vm434_vm1, %v2934_v18 }
 0x3a1   : > { %v2738_v32 = vpack.c.bf16 %v2715_v54, %v2714_v5  ;;  %v2464_v5 = vadd.f32 %v2414_v2, %v4910_v50  ;;  %v2424_v31 = vpop.f32.mrf.mxu0 }
 0x3a3   : > { %3435 = vmatmul.msk.bf16.gmra.mxu2 %vm434_vm1, %v2738_v32  ;;  %v4665_v45 = vpop.f32.mrf.mxu3  ;;  %v2915_v32 = vld [vmem:[%s4524_s11 + $0xc0] sm:$0xff] }
 0x3a4   : > { %v2631_v15 = vpop.f32.mrf.mxu1 }
 0x3a5   : > { %v2684_v44 = vadd.f32 %v2631_v15, %v2462_v19  ;;  %v2916_v15 = vld [vmem:[%s4524_s11 + $0xc8] sm:$0xff] }
 0x3a6   : > { %v2811_v33 = vpop.f32.mrf.mxu2 }
 0x3a7   : > { %v2812_v27 = vadd.f32 %v4641_v62, %v2811_v33  ;;  %v2716_v60 = vmax.f32 %v2684_v44, 0.0 }
 0x3a9   : > { %v3084_v56 = vadd.f32 %v3005_v14, %v2812_v27  ;;  %v2935_v14 = vpack.c.bf16 %v2916_v15, %v2915_v32  ;;  %v2426_v61 = vpop.f32.mrf.mxu0 }
 0x3ab   : > { %v3116_v23 = vmax.f32 %v3084_v56, 0.0  ;;  %v4674_v9 = vpop.f32.mrf.mxu3 }
 0x3ac   : > { %v2633_v3 = vpop.f32.mrf.mxu1 }
 0x3ad   : > { %3149 = vst.msk [vmem:[%s4655_s20] sm:$0xff] %vm3148_vm3, %v3116_v23  ;;  %v2685_v49 = vadd.f32 %v2633_v3, %v2463_v47  ;;  %v2022_v23 = vadd.f32 %v4488_v13, %v4486_v48 }
 0x3ae   : > { %v2813_v38 = vpop.f32.mrf.mxu2 }
 0x3af   : > { %v2717_v25 = vmax.f32 %v2685_v49, 0.0  ;;  %v2814_v57 = vadd.f32 %v4641_v62, %v2813_v38  ;;  %v4911_v38 = vld [vmem:[#allocation5_spill] sm:$0xff] }
 0x3b0   : > { %3455 = vmatmul.msk.bf16.gmra.mxu3 %vm434_vm1, %v2935_v14 }
 0x3b1   : > { %v2739_v30 = vpack.c.bf16 %v2717_v25, %v2716_v60  ;;  %v3085_v29 = vadd.f32 %v3007_v6, %v2814_v57  ;;  %v2245_v60 = vadd.f32 %v4911_v38, %v2022_v23  ;;  %v4912_v6 = vld [vmem:[#allocation4_spill] sm:$0xff] }
 0x3b2   : > { %v2466_v25 = vadd.f32 %v2419_v34, %v4912_v6  ;;  %v3017_v34 = vadd.f32 %v4635_v35, %v4647_v0  ;;  %v3020_v0 = vadd.f32 %v4635_v35, %v4665_v45  ;;  %v2026_v6 = vadd.f32 %v4513_v55, %v4511_v28 }
 0x3b3   : > { %v3117_v11 = vmax.f32 %v3085_v29, 0.0  ;;  %3436 = vmatmul.msk.bf16.gmra.mxu2 %vm434_vm1, %v2739_v30  ;;  %v4686_v56 = vpop.f32.mrf.mxu3  ;;  %v2917_v30 = vld [vmem:[%s4524_s11 + $0xd0] sm:$0xff]  ;;  %v2918_v29 = vld [vmem:[%s4524_s11 + $0xd8] sm:$0xff] }
 0x3b4   : > { %v2636_v26 = vpop.f32.mrf.mxu1 }
 0x3b5   : > { %3150 = vst.msk [vmem:[%s4655_s20 + $0x8] sm:$0xff] %vm3148_vm3, %v3117_v11  ;;  %v2686_v63 = vadd.f32 %v2636_v26, %v2464_v5  ;;  %v2467_v11 = vadd.f32 %v2421_v4, %v2245_v60  ;;  %v2936_v26 = vpack.c.bf16 %v2918_v29, %v2917_v30  ;;  %v2249_v29 = vadd.f32 %v4515_v7, %v2026_v6 }
 0x3b6   : > { %v2816_v21 = vpop.f32.mrf.mxu2 }
 0x3b7   : > { %v2817_v39 = vadd.f32 %v4641_v62, %v2816_v21  ;;  %v2718_v24 = vmax.f32 %v2686_v63, 0.0  ;;  %v2429_v63 = vpop.f32.mrf.mxu0 }
 0x3b9   : > { %v3086_v54 = vadd.f32 %v3010_v53, %v2817_v39 }
 0x3bb   : > { %v3118_v16 = vmax.f32 %v3086_v54, 0.0  ;;  %v4696_v49 = vpop.f32.mrf.mxu3 }
 0x3bc   : > { %v2638_v33 = vpop.f32.mrf.mxu1  ;;  %v3027_v7 = vadd.f32 %v4635_v35, %v4696_v49 }
 0x3bd   : > { %3151 = vst.msk [vmem:[%s4655_s20 + $0x10] sm:$0xff] %vm3148_vm3, %v3118_v16  ;;  %v2687_v36 = vadd.f32 %v2638_v33, %v2465_v8  ;;  %v2024_v8 = vadd.f32 %v4500_v43, %v4498_v17 }
 0x3be   : > { %v2818_v27 = vpop.f32.mrf.mxu2 }
 0x3bf   : > { %v2719_v2 = vmax.f32 %v2687_v36, 0.0  ;;  %v2819_v19 = vadd.f32 %v4641_v62, %v2818_v27  ;;  %v2247_v36 = vadd.f32 %v4502_v10, %v2024_v8  ;;  %v2468_v27 = vadd.f32 %v2424_v31, %v4495_v41  ;;  %v2431_v23 = vpop.f32.mrf.mxu0 }
 0x3c0   : > { %3456 = vmatmul.msk.bf16.gmra.mxu3 %vm434_vm1, %v2936_v26  ;;  %v3022_v10 = vadd.f32 %v4635_v35, %v4674_v9  ;;  %v3025_v9 = vadd.f32 %v4635_v35, %v4686_v56  ;;  %v2471_v28 = vadd.f32 %v2431_v23, %v2249_v29 }
 0x3c1   : > { %v2740_v40 = vpack.c.bf16 %v2719_v2, %v2718_v24  ;;  %v3087_v42 = vadd.f32 %v3012_v22, %v2819_v19  ;;  %v2919_v22 = vld [vmem:[%s4524_s11 + $0xe0] sm:$0xff]  ;;  %v2920_v2 = vld [vmem:[%s4524_s11 + $0xe8] sm:$0xff]  ;;  %v2469_v43 = vadd.f32 %v2426_v61, %v2247_v36  ;;  %v2921_v61 = vld [vmem:[%s4524_s11 + $0xf0] sm:$0xff] }
 0x3c3   : > { %v3119_v47 = vmax.f32 %v3087_v42, 0.0  ;;  %3437 = vmatmul.msk.bf16.gmra.mxu2 %vm434_vm1, %v2740_v40  ;;  %v4708_v4 = vpop.f32.mrf.mxu3  ;;  %v2937_v40 = vpack.c.bf16 %v2920_v2, %v2919_v22  ;;  %v4915_v22 = vld [vmem:[#allocation7_spill] sm:$0xff] }
 0x3c4   : > { %v2641_v44 = vpop.f32.mrf.mxu1  ;;  %v3030_v49 = vadd.f32 %v4635_v35, %v4708_v4 }
 0x3c5   : > { %3152 = vst.msk [vmem:[%s4655_s20 + $0x18] sm:$0xff] %vm3148_vm3, %v3119_v47  ;;  %v2688_v48 = vadd.f32 %v2641_v44, %v2466_v25 }
 0x3c6   : > { %v2821_v18 = vpop.f32.mrf.mxu2 }
 0x3c7   : > { %v2822_v3 = vadd.f32 %v4641_v62, %v2821_v18  ;;  %v2720_v39 = vmax.f32 %v2688_v48, 0.0  ;;  %v2434_v26 = vpop.f32.mrf.mxu0 }
 0x3c8   : > { %v2472_v2 = vadd.f32 %v2434_v26, %v4915_v22 }
 0x3c9   : > { %v3088_v57 = vadd.f32 %v3015_v51, %v2822_v3 }
 0x3cb   : > { %v3120_v13 = vmax.f32 %v3088_v57, 0.0  ;;  %v4718_v33 = vpop.f32.mrf.mxu3 }
 0x3cc   : > { %v2643_v53 = vpop.f32.mrf.mxu1 }
 0x3cd   : > { %3153 = vst.msk [vmem:[%s4655_s20 + $0x20] sm:$0xff] %vm3148_vm3, %v3120_v13  ;;  %v2689_v37 = vadd.f32 %v2643_v53, %v2467_v11  ;;  %v4913_v11 = vld [vmem:[#allocation6_spill] sm:$0xff]  ;;  %v2922_v53 = vld [vmem:[%s4524_s11 + $0xf8] sm:$0xff] }
 0x3ce   : > { %v2823_v21 = vpop.f32.mrf.mxu2  ;;  %v2470_v48 = vadd.f32 %v2429_v63, %v4913_v11 }
 0x3cf   : > { %v2721_v20 = vmax.f32 %v2689_v37, 0.0  ;;  %v2824_v50 = vadd.f32 %v4641_v62, %v2823_v21  ;;  %v2938_v21 = vpack.c.bf16 %v2922_v53, %v2921_v61 }
 0x3d0   : > { %3457 = vmatmul.msk.bf16.gmra.mxu3 %vm434_vm1, %v2937_v40 }
 0x3d1   : > { %v2741_v5 = vpack.c.bf16 %v2721_v20, %v2720_v39  ;;  %v3089_v54 = vadd.f32 %v3017_v34, %v2824_v50 }
 0x3d3   : > { %v3121_v32 = vmax.f32 %v3089_v54, 0.0  ;;  %3438 = vmatmul.msk.bf16.gmra.mxu2 %vm434_vm1, %v2741_v5  ;;  %v4730_v51 = vpop.f32.mrf.mxu3 }
 0x3d4   : > { %v2646_v15 = vpop.f32.mrf.mxu1 }
 0x3d5   : > { %3154 = vst.msk [vmem:[%s4655_s20 + $0x28] sm:$0xff] %vm3148_vm3, %v3121_v32  ;;  %v2690_v17 = vadd.f32 %v2646_v15, %v2468_v27  ;;  %v4914_v27 = vld [vmem:[#allocation8_spill] sm:$0xff] }
 0x3d6   : > { %v2826_v16 = vpop.f32.mrf.mxu2 }
 0x3d7   : > { %v2827_v14 = vadd.f32 %v4641_v62, %v2826_v16  ;;  %v2722_v44 = vmax.f32 %v2690_v17, 0.0  ;;  %v2028_v16 = vadd.f32 %v4535_v46, %v4533_v1 }
 0x3d9   : > { %v3090_v24 = vadd.f32 %v3020_v0, %v2827_v14  ;;  %v2436_v0 = vpop.f32.mrf.mxu0 }
 0x3db   : > { %v3122_v19 = vmax.f32 %v3090_v24, 0.0  ;;  %v4740_v30 = vpop.f32.mrf.mxu3  ;;  %v2251_v24 = vadd.f32 %v4914_v27, %v2028_v16 }
 0x3dc   : > { %v2648_v42 = vpop.f32.mrf.mxu1  ;;  %v3037_v53 = vadd.f32 %v4635_v35, %v4740_v30 }
 0x3dd   : > { %3155 = vst.msk [vmem:[%s4655_s20 + $0x30] sm:$0xff] %vm3148_vm3, %v3122_v19  ;;  %v2691_v45 = vadd.f32 %v2648_v42, %v2469_v43  ;;  %v2473_v17 = vadd.f32 %v2436_v0, %v2251_v24 }
 0x3de   : > { %v2828_v47 = vpop.f32.mrf.mxu2 }
 0x3df   : > { %v2723_v41 = vmax.f32 %v2691_v45, 0.0  ;;  %v2829_v31 = vadd.f32 %v4641_v62, %v2828_v47 }
 0x3e0   : > { %3458 = vmatmul.msk.bf16.gmra.mxu3 %vm434_vm1, %v2938_v21 }
 0x3e1   : > { %v2742_v18 = vpack.c.bf16 %v2723_v41, %v2722_v44  ;;  %v3091_v3 = vadd.f32 %v3022_v10, %v2829_v31  ;;  %v2439_v46 = vpop.f32.mrf.mxu0  ;;  %v3032_v44 = vadd.f32 %v4635_v35, %v4718_v33 }
 0x3e2   : > { %v2474_v29 = vadd.f32 %v2439_v46, %v4548_v59 }
 0x3e3   : > { %v3123_v38 = vmax.f32 %v3091_v3, 0.0  ;;  %3439 = vmatmul.msk.bf16.gmra.mxu2 %vm434_vm1, %v2742_v18  ;;  %v3039_v15 = vpop.f32.mrf.mxu3 }
 0x3e4   : > { %v2651_v60 = vpop.f32.mrf.mxu1 }
 0x3e5   : > { %3156 = vst.msk [vmem:[%s4655_s20 + $0x38] sm:$0xff] %vm3148_vm3, %v3123_v38  ;;  %v2692_v55 = vadd.f32 %v2651_v60, %v2470_v48  ;;  %v2030_v38 = vadd.f32 %v4628_v58, %v4546_v12  ;;  %v3035_v60 = vadd.f32 %v4635_v35, %v4730_v51 }
 0x3e6   : > { %v2831_v25 = vpop.f32.mrf.mxu2 }
 0x3e7   : > { %v2832_v57 = vadd.f32 %v4641_v62, %v2831_v25  ;;  %v2724_v20 = vmax.f32 %v2692_v55, 0.0 }
 0x3e9   : > { %v3092_v13 = vadd.f32 %v3025_v9, %v2832_v57  ;;  %v2441_v25 = vpop.f32.mrf.mxu0  ;;  %v2253_v57 = vadd.f32 %v4602_v52, %v2030_v38 }
 0x3eb   : > { %v3124_v37 = vmax.f32 %v3092_v13, 0.0  ;;  %v3041_v45 = vpop.f32.mrf.mxu3  ;;  %v2475_v48 = vadd.f32 %v2441_v25, %v2253_v57 }
 0x3ec   : > { %v2653_v39 = vpop.f32.mrf.mxu1 }
 0x3ed   : > { %3157 = vst.msk [vmem:[%s4655_s20 + $0x40] sm:$0xff] %vm3148_vm3, %v3124_v37  ;;  %v2693_v56 = vadd.f32 %v2653_v39, %v2471_v28  ;;  %v3040_v39 = vadd.f32 %v4635_v35, %v3039_v15 }
 0x3ee   : > { %v2833_v34 = vpop.f32.mrf.mxu2 }
 0x3ef   : > { %v2725_v50 = vmax.f32 %v2693_v56, 0.0  ;;  %v2834_v5 = vadd.f32 %v4641_v62, %v2833_v34 }
 0x3f1   : > { %v2743_v54 = vpack.c.bf16 %v2725_v50, %v2724_v20  ;;  %v3093_v32 = vadd.f32 %v3027_v7, %v2834_v5  ;;  %v3042_v5 = vadd.f32 %v4635_v35, %v3041_v45 }
 0x3f3   : > { %v3125_v8 = vmax.f32 %v3093_v32, 0.0  ;;  %3440 = vmatmul.msk.bf16.gmra.mxu2 %vm434_vm1, %v2743_v54  ;;  %v3044_v33 = vpop.f32.mrf.mxu3 }
 0x3f4   : > { %v2656_v63 = vpop.f32.mrf.mxu1  ;;  %v3045_v15 = vadd.f32 %v4635_v35, %v3044_v33 }
 0x3f5   : > { %3158 = vst.msk [vmem:[%s4655_s20 + $0x48] sm:$0xff] %vm3148_vm3, %v3125_v8  ;;  %v2694_v19 = vadd.f32 %v2656_v63, %v2472_v2 }
 0x3f6   : > { %v2836_v14 = vpop.f32.mrf.mxu2 }
 0x3f7   : > { %v2837_v36 = vadd.f32 %v4641_v62, %v2836_v14  ;;  %v2726_v4 = vmax.f32 %v2694_v19, 0.0 }
 0x3f9   : > { %v3094_v43 = vadd.f32 %v3030_v49, %v2837_v36 }
 0x3fb   : > { %v3126_v40 = vmax.f32 %v3094_v43, 0.0  ;;  %v3046_v55 = vpop.f32.mrf.mxu3 }
 0x3fc   : > { %v2658_v42 = vpop.f32.mrf.mxu1  ;;  %v3047_v24 = vadd.f32 %v4635_v35, %v3046_v55 }
 0x3fd   : > { %3159 = vst.msk [vmem:[%s4655_s20 + $0x50] sm:$0xff] %vm3148_vm3, %v3126_v40  ;;  %v2695_v1 = vadd.f32 %v2658_v42, %v2473_v17 }
 0x3fe   : > { %v2838_v47 = vpop.f32.mrf.mxu2 }
 0x3ff   : > { %v2727_v10 = vmax.f32 %v2695_v1, 0.0  ;;  %v2839_v41 = vadd.f32 %v4641_v62, %v2838_v47 }
 0x401   : > { %v2744_v31 = vpack.c.bf16 %v2727_v10, %v2726_v4  ;;  %v3095_v23 = vadd.f32 %v3032_v44, %v2839_v41 }
 0x403   : > { %v3127_v18 = vmax.f32 %v3095_v23, 0.0  ;;  %3441 = vmatmul.msk.bf16.gmra.mxu2 %vm434_vm1, %v2744_v31  ;;  %v3049_v30 = vpop.f32.mrf.mxu3 }
 0x404   : > { %v2661_v3 = vpop.f32.mrf.mxu1  ;;  %v3050_v17 = vadd.f32 %v4635_v35, %v3049_v30 }
 0x405   : > { %3160 = vst.msk [vmem:[%s4655_s20 + $0x58] sm:$0xff] %vm3148_vm3, %v3127_v18  ;;  %v2696_v13 = vadd.f32 %v2661_v3, %v2474_v29 }
 0x406   : > { %v2841_v6 = vpop.f32.mrf.mxu2 }
 0x407   : > { %v2842_v9 = vadd.f32 %v4641_v62, %v2841_v6  ;;  %v2728_v51 = vmax.f32 %v2696_v13, 0.0 }
 0x409   : > { %v3096_v11 = vadd.f32 %v3035_v60, %v2842_v9 }
 0x40b   : > { %v3128_v26 = vmax.f32 %v3096_v11, 0.0  ;;  %v3051_v0 = vpop.f32.mrf.mxu3 }
 0x40c   : > { %v2663_v12 = vpop.f32.mrf.mxu1  ;;  %v3052_v47 = vadd.f32 %v4635_v35, %v3051_v0 }
 0x40d   : > { %3161 = vst.msk [vmem:[%s4655_s20 + $0x60] sm:$0xff] %vm3148_vm3, %v3128_v26  ;;  %v2697_v58 = vadd.f32 %v2663_v12, %v2475_v48 }
 0x40e   : > { %v2843_v61 = vpop.f32.mrf.mxu2 }
 0x40f   : > { %v2729_v28 = vmax.f32 %v2697_v58, 0.0  ;;  %v2844_v52 = vadd.f32 %v4641_v62, %v2843_v61 }
 0x411   : > { %v2745_v59 = vpack.c.bf16 %v2729_v28, %v2728_v51  ;;  %v3097_v37 = vadd.f32 %v3037_v53, %v2844_v52 }
 0x413   : > { %v3129_v21 = vmax.f32 %v3097_v37, 0.0  ;;  %3442 = vmatmul.msk.bf16.gmra.mxu2 %vm434_vm1, %v2745_v59  ;;  %v3054_v27 = vpop.f32.mrf.mxu3 }
 0x414   : > { %v3055_v31 = vadd.f32 %v4635_v35, %v3054_v27 }
 0x415   : > { %3162 = vst.msk [vmem:[%s4655_s20 + $0x68] sm:$0xff] %vm3148_vm3, %v3129_v21 }
 0x416   : > { %v2846_v56 = vpop.f32.mrf.mxu2 }
 0x417   : > { %v2847_v34 = vadd.f32 %v4641_v62, %v2846_v56 }
 0x419   : > { %v3098_v20 = vadd.f32 %v3040_v39, %v2847_v34 }
 0x41b   : > { %v3130_v7 = vmax.f32 %v3098_v20, 0.0  ;;  %v3056_v42 = vpop.f32.mrf.mxu3 }
 0x41c   : > { %v3057_v33 = vadd.f32 %v4635_v35, %v3056_v42 }
 0x41d   : > { %3163 = vst.msk [vmem:[%s4655_s20 + $0x70] sm:$0xff] %vm3148_vm3, %v3130_v7 }
 0x41e   : > { %v2848_v50 = vpop.f32.mrf.mxu2 }
 0x41f   : > { %v2849_v54 = vadd.f32 %v4641_v62, %v2848_v50 }
 0x421   : > { %v3099_v32 = vadd.f32 %v3042_v5, %v2849_v54 }
 0x423   : > { %v3131_v8 = vmax.f32 %v3099_v32, 0.0  ;;  %v3059_v10 = vpop.f32.mrf.mxu3 }
 0x424   : > { %v3060_v29 = vadd.f32 %v4635_v35, %v3059_v10 }
 0x425   : > { %3164 = vst.msk [vmem:[%s4655_s20 + $0x78] sm:$0xff] %vm3148_vm3, %v3131_v8 }
 0x426   : > { %v2851_v63 = vpop.f32.mrf.mxu2 }
 0x427   : > { %v2852_v16 = vadd.f32 %v4641_v62, %v2851_v63 }
 0x429   : > { %v3100_v49 = vadd.f32 %v3045_v15, %v2852_v16 }
 0x42b   : > { %v3132_v14 = vmax.f32 %v3100_v49, 0.0  ;;  %v3061_v60 = vpop.f32.mrf.mxu3 }
 0x42c   : > { %v3062_v61 = vadd.f32 %v4635_v35, %v3061_v60 }
 0x42d   : > { %3165 = vst.msk [vmem:[%s4655_s20 + $0x80] sm:$0xff] %vm3148_vm3, %v3132_v14 }
 0x42e   : > { %v2853_v36 = vpop.f32.mrf.mxu2 }
 0x42f   : > { %v2854_v22 = vadd.f32 %v4641_v62, %v2853_v36 }
 0x431   : > { %v3101_v2 = vadd.f32 %v3047_v24, %v2854_v22 }
 0x433   : > { %v3133_v43 = vmax.f32 %v3101_v2, 0.0  ;;  %v3064_v48 = vpop.f32.mrf.mxu3 }
 0x434   : > { %v3065_v55 = vadd.f32 %v4635_v35, %v3064_v48 }
 0x435   : > { %3166 = vst.msk [vmem:[%s4655_s20 + $0x88] sm:$0xff] %vm3148_vm3, %v3133_v43 }
 0x436   : > { %v2856_v19 = vpop.f32.mrf.mxu2 }
 0x437   : > { %v2857_v40 = vadd.f32 %v4641_v62, %v2856_v19 }
 0x439   : > { %v3102_v45 = vadd.f32 %v3050_v17, %v2857_v40 }
 0x43b   : > { %v3134_v1 = vmax.f32 %v3102_v45, 0.0  ;;  %v3066_v53 = vpop.f32.mrf.mxu3 }
 0x43c   : > { %v3067_v20 = vadd.f32 %v4635_v35, %v3066_v53 }
 0x43d   : > { %3167 = vst.msk [vmem:[%s4655_s20 + $0x90] sm:$0xff] %vm3148_vm3, %v3134_v1 }
 0x43e   : > { %v2858_v46 = vpop.f32.mrf.mxu2 }
 0x43f   : > { %v2859_v4 = vadd.f32 %v4641_v62, %v2858_v46 }
 0x441   : > { %v3103_v44 = vadd.f32 %v3052_v47, %v2859_v4 }
 0x443   : > { %v3135_v41 = vmax.f32 %v3103_v44, 0.0  ;;  %v3069_v39 = vpop.f32.mrf.mxu3 }
 0x444   : > { %v3070_v54 = vadd.f32 %v4635_v35, %v3069_v39 }
 0x445   : > { %3168 = vst.msk [vmem:[%s4655_s20 + $0x98] sm:$0xff] %vm3148_vm3, %v3135_v41 }
 0x446   : > { %v2861_v23 = vpop.f32.mrf.mxu2 }
 0x447   : > { %v2862_v18 = vadd.f32 %v4641_v62, %v2861_v23 }
 0x449   : > { %v3104_v3 = vadd.f32 %v3055_v31, %v2862_v18 }
 0x44b   : > { %v3136_v38 = vmax.f32 %v3104_v3, 0.0  ;;  %v3071_v5 = vpop.f32.mrf.mxu3 }
 0x44c   : > { %v3072_v49 = vadd.f32 %v4635_v35, %v3071_v5 }
 0x44d   : > { %3169 = vst.msk [vmem:[%s4655_s20 + $0xa0] sm:$0xff] %vm3148_vm3, %v3136_v38 }
 0x44e   : > { %v2863_v6 = vpop.f32.mrf.mxu2 }
 0x44f   : > { %v2864_v9 = vadd.f32 %v4641_v62, %v2863_v6 }
 0x451   : > { %v3105_v25 = vadd.f32 %v3057_v33, %v2864_v9 }
 0x453   : > { %v3137_v57 = vmax.f32 %v3105_v25, 0.0  ;;  %v3074_v16 = vpop.f32.mrf.mxu3 }
 0x454   : > { %v3075_v24 = vadd.f32 %v4635_v35, %v3074_v16 }
 0x455   : > { %3170 = vst.msk [vmem:[%s4655_s20 + $0xa8] sm:$0xff] %vm3148_vm3, %v3137_v57 }
 0x456   : > { %v2866_v11 = vpop.f32.mrf.mxu2 }
 0x457   : > { %v2867_v13 = vadd.f32 %v4641_v62, %v2866_v11 }
 0x459   : > { %v3106_v26 = vadd.f32 %v3060_v29, %v2867_v13 }
 0x45b   : > { %v3138_v12 = vmax.f32 %v3106_v26, 0.0  ;;  %v3076_v43 = vpop.f32.mrf.mxu3 }
 0x45c   : > { %v3077_v42 = vadd.f32 %v4635_v35, %v3076_v43 }
 0x45d   : > { %3171 = vst.msk [vmem:[%s4655_s20 + $0xb0] sm:$0xff] %vm3148_vm3, %v3138_v12 }
 0x45e   : > { %v2868_v58 = vpop.f32.mrf.mxu2 }
 0x45f   : > { %v2869_v51 = vadd.f32 %v4641_v62, %v2868_v58 }
 0x461   : > { %v3107_v28 = vadd.f32 %v3062_v61, %v2869_v51 }
 0x463   : > { %v3139_v52 = vmax.f32 %v3107_v28, 0.0  ;;  %v3079_v46 = vpop.f32.mrf.mxu3 }
 0x464   : > { %v3080_v4 = vadd.f32 %v4635_v35, %v3079_v46 }
 0x465   : > { %3172 = vst.msk [vmem:[%s4655_s20 + $0xb8] sm:$0xff] %vm3148_vm3, %v3139_v52 }
 0x466   : > { %v2871_v59 = vpop.f32.mrf.mxu2 }
 0x467   : > { %v2872_v37 = vadd.f32 %v4641_v62, %v2871_v59 }
 0x469   : > { %v3108_v21 = vadd.f32 %v3065_v55, %v2872_v37 }
 0x46b   : > { %v3140_v56 = vmax.f32 %v3108_v21, 0.0  ;;  %v3081_v23 = vpop.f32.mrf.mxu3 }
 0x46c   : > { %v3082_v3 = vadd.f32 %v4635_v35, %v3081_v23 }
 0x46d   : > { %3173 = vst.msk [vmem:[%s4655_s20 + $0xc0] sm:$0xff] %vm3148_vm3, %v3140_v56 }
 0x46e   : > { %v2873_v34 = vpop.f32.mrf.mxu2 }
 0x46f   : > { %v2874_v30 = vadd.f32 %v4641_v62, %v2873_v34 }
 0x471   : > { %v3109_v7 = vadd.f32 %v3067_v20, %v2874_v30 }
 0x473   : > { %v3141_v50 = vmax.f32 %v3109_v7, 0.0 }
 0x475   : > { %3174 = vst.msk [vmem:[%s4655_s20 + $0xc8] sm:$0xff] %vm3148_vm3, %v3141_v50 }
 0x476   : > { %v2876_v32 = vpop.f32.mrf.mxu2 }
 0x477   : > { %v2877_v8 = vadd.f32 %v4641_v62, %v2876_v32 }
 0x479   : > { %v3110_v0 = vadd.f32 %v3070_v54, %v2877_v8 }
 0x47b   : > { %v3142_v15 = vmax.f32 %v3110_v0, 0.0 }
 0x47d   : > { %3175 = vst.msk [vmem:[%s4655_s20 + $0xd0] sm:$0xff] %vm3148_vm3, %v3142_v15 }
 0x47e   : > { %v2878_v63 = vpop.f32.mrf.mxu2 }
 0x47f   : > { %v2879_v14 = vadd.f32 %v4641_v62, %v2878_v63 }
 0x481   : > { %v3111_v36 = vadd.f32 %v3072_v49, %v2879_v14 }
 0x483   : > { %v3143_v27 = vmax.f32 %v3111_v36, 0.0 }
 0x485   : > { %3176 = vst.msk [vmem:[%s4655_s20 + $0xd8] sm:$0xff] %vm3148_vm3, %v3143_v27 }
 0x486   : > { %v2881_v22 = vpop.f32.mrf.mxu2 }
 0x487   : > { %v2882_v2 = vadd.f32 %v4641_v62, %v2881_v22 }
 0x489   : > { %v3112_v17 = vadd.f32 %v3075_v24, %v2882_v2 }
 0x48b   : > { %v3144_v19 = vmax.f32 %v3112_v17, 0.0 }
 0x48d   : > { %3177 = vst.msk [vmem:[%s4655_s20 + $0xe0] sm:$0xff] %vm3148_vm3, %v3144_v19 }
 0x48e   : > { %v2883_v40 = vpop.f32.mrf.mxu2 }
 0x48f   : > { %v2884_v45 = vadd.f32 %v4641_v62, %v2883_v40 }
 0x491   : > { %v3113_v1 = vadd.f32 %v3077_v42, %v2884_v45 }
 0x493   : > { %v3145_v47 = vmax.f32 %v3113_v1, 0.0 }
 0x495   : > { %3178 = vst.msk [vmem:[%s4655_s20 + $0xe8] sm:$0xff] %vm3148_vm3, %v3145_v47 }
 0x496   : > { %v2886_v44 = vpop.f32.mrf.mxu2 }
 0x497   : > { %v2887_v10 = vadd.f32 %v4641_v62, %v2886_v44 }
 0x499   : > { %v3114_v41 = vadd.f32 %v3080_v4, %v2887_v10 }
 0x49b   : > { %v3146_v31 = vmax.f32 %v3114_v41, 0.0 }
 0x49d   : > { %3179 = vst.msk [vmem:[%s4655_s20 + $0xf0] sm:$0xff] %vm3148_vm3, %v3146_v31 }
 0x49e   : > { %v2888_v18 = vpop.f32.mrf.mxu2 }
 0x49f   : > { %v2889_v38 = vadd.f32 %v4641_v62, %v2888_v18 }
 0x4a1   : > { %v3115_v60 = vadd.f32 %v3082_v3, %v2889_v38 }
 0x4a3   : > { %v3147_v6 = vmax.f32 %v3115_v60, 0.0 }
 0x4a5   : > { %3180 = vst.msk [vmem:[%s4655_s20 + $0xf8] sm:$0xff] %vm3148_vm3, %v3147_v6 }
 0x4a6 PF: > { %s20_s13 = sadd.s32 1, %s3483_s13  }
 0x4a7   : > { %p17_p4 = scmp.ge.s32.totalorder %s20_s13, 4  }
 0x4a9   :  { %19 = sbr.rel (!%p17_p4) target bundleno = 1 (0x1), region = 103 }

</bundles_post_ra>
